<compile_context>
chip_gen: v7x
topology: tpu7x:2x2x1
jax: 0.10.0
libtpu: 0.0.40
codegen_flags: <defaults>
</compile_context>

<pallas_src>
import jax
import jax.numpy as jnp
from jax.experimental import pallas as pl
from jax.experimental.pallas import tpu as pltpu


# -----------------------------------------------------------------------------
# Fused forward kernel (one batch element per grid step)
# -----------------------------------------------------------------------------
def _autoencoder_kernel(x_ref,
                        w1_ref, b1_ref, w2_ref, b2_ref, w3_ref, b3_ref,
                        w4_ref, b4_ref, w5_ref, b5_ref, w6_ref, b6_ref,
                        o_ref):
    f32 = jnp.float32

    def spread(x, stride, offset, l_pad):
        # Place input column l at output column stride*l + offset, zeros
        # elsewhere.  Implements zero-padding (stride=1) and zero-upsampling
        # + padding (stride=2, for ConvTranspose1d) as one small matmul.
        L = x.shape[1]
        r = jax.lax.broadcasted_iota(jnp.int32, (L, l_pad), 0)
        c = jax.lax.broadcasted_iota(jnp.int32, (L, l_pad), 1)
        sel = jnp.where(c == stride * r + offset, 1.0, 0.0).astype(f32)
        return jnp.dot(x, sel, preferred_element_type=f32)

    def pool2(x):
        # MaxPool1d(kernel=2, stride=2): adjacent max on the VPU (one
        # lane-shifted slice), then a single 0/1 selection matmul picks the
        # even-indexed columns.  Exact (0/1 matmul), floor division on L.
        L = x.shape[1]
        Lh = L // 2
        m = jnp.maximum(x[:, 0:L - 1], x[:, 1:L])            # (C, L-1)
        r = jax.lax.broadcasted_iota(jnp.int32, (L - 1, Lh), 0)
        c = jax.lax.broadcasted_iota(jnp.int32, (L - 1, Lh), 1)
        sel = jnp.where(r == 2 * c, 1.0, 0.0).astype(f32)
        return jnp.dot(m, sel, preferred_element_type=f32)   # (C, Lh)

    def conv_layer(x, w_ref, b_ref, pad, stride, apply_sigmoid):
        # x: (Cin, L) value; w_ref: (K, Cout, Cin); b_ref: (Cout, 1).
        K, Cout, Cin = w_ref.shape
        L = x.shape[1]
        l_pad = (L - 1) * stride + 1 + 2 * pad
        xp = spread(x, stride, pad, l_pad)              # (Cin, l_pad)
        l_out = l_pad - K + 1
        acc = jnp.zeros((Cout, l_out), f32)
        for k in range(K):                              # shift-and-accumulate
            wk = w_ref[k]                               # (Cout, Cin)
            xs = xp[:, k:k + l_out]                     # (Cin, l_out)
            if Cin == 1:
                acc = acc + wk * xs                     # outer product on VPU
            else:
                acc = acc + jnp.dot(wk, xs, preferred_element_type=f32)
        acc = acc + b_ref[...]
        if apply_sigmoid:
            acc = 1.0 / (1.0 + jnp.exp(-acc))           # exp on EUP, div on VPU
        return acc

    h = x_ref[0].astype(f32)                                         # (1, L_in)
    # ---- encoder ----
    h = pool2(conv_layer(h, w1_ref, b1_ref, 8, 1, True))             # (32, .)
    h = pool2(conv_layer(h, w2_ref, b2_ref, 7, 1, True))             # (16, .)
    h = pool2(conv_layer(h, w3_ref, b3_ref, 7, 1, True))             # (8, .)
    # ---- decoder (ConvTranspose1d == upsample + conv with flipped kernel) ----
    h = conv_layer(h, w4_ref, b4_ref, w4_ref.shape[0] - 1, 2, True)  # (16, .)
    h = conv_layer(h, w5_ref, b5_ref, w5_ref.shape[0] - 1, 2, True)  # (8, .)
    h = conv_layer(h, w6_ref, b6_ref, w6_ref.shape[0] - 1, 1, False) # (1, .)
    o_ref[0] = h.astype(o_ref.dtype)


# -----------------------------------------------------------------------------
# Wrapper
# -----------------------------------------------------------------------------
def _output_length(L):
    l = L + 2 * 8 - 9 + 1
    l //= 2
    l = l + 2 * 7 - 8 + 1
    l //= 2
    l = l + 2 * 7 - 8 + 1
    l //= 2
    l = (l - 1) * 2 + 10
    l = (l - 1) * 2 + 11
    l = (l - 1) * 1 + 10
    return l


def prepare_params(params):
    """One-time layout prep (hoisted out of the hot path):
    cast to f32, weights -> (K, Cout, Cin), biases -> (Cout, 1),
    decoder kernels flipped/transposed into equivalent-conv form."""
    prep = {}
    for name in ("e1", "e2", "e3"):
        w = params[name + "_w"].astype(jnp.float32)          # (Cout, Cin, K)
        prep[name + "_w"] = jnp.transpose(w, (2, 0, 1))      # (K, Cout, Cin)
        prep[name + "_b"] = params[name + "_b"].astype(jnp.float32).reshape(-1, 1)
    for name in ("d1", "d2", "d3"):
        w = params[name + "_w"].astype(jnp.float32)          # (Cin, Cout, K)
        w = jnp.flip(w, axis=2)
        prep[name + "_w"] = jnp.transpose(w, (2, 1, 0))      # (K, Cout, Cin)
        prep[name + "_b"] = params[name + "_b"].astype(jnp.float32).reshape(-1, 1)
    return prep


def autoencoder_cnn_forward(x, prep):
    N, _, L = x.shape
    L_out = _output_length(L)
    args = [x.astype(jnp.float32)]
    in_specs = [pl.BlockSpec((1, 1, L), lambda n: (n, 0, 0))]
    for name in ("e1", "e2", "e3", "d1", "d2", "d3"):
        w = prep[name + "_w"]
        b = prep[name + "_b"]
        args += [w, b]
        # Same block every grid step -> weights stay resident in VMEM.
        in_specs.append(pl.BlockSpec(w.shape, lambda n: (0, 0, 0)))
        in_specs.append(pl.BlockSpec(b.shape, lambda n: (0, 0)))
    return pl.pallas_call(
        _autoencoder_kernel,
        out_shape=jax.ShapeDtypeStruct((N, 1, L_out), jnp.float32),
        grid=(N,),
        in_specs=in_specs,
        out_specs=pl.BlockSpec((1, 1, L_out), lambda n: (n, 0, 0)),
        compiler_params=pltpu.CompilerParams(
            dimension_semantics=("parallel",)),
    )(*args)


# -----------------------------------------------------------------------------
# Pure-JAX reference (PyTorch semantics) for a numerical sanity check
# -----------------------------------------------------------------------------
def reference_forward(x, params):
    hi = jax.lax.Precision.HIGHEST

    def conv1d(x, w, b, pad):
        out = jax.lax.conv_general_dilated(
            x, w, window_strides=(1,), padding=[(pad, pad)],
            dimension_numbers=("NCH", "OIH", "NCH"), precision=hi)
        return out + b[None, :, None]

    def conv_t1d(x, w, b, stride):
        K = w.shape[2]
        wc = jnp.flip(jnp.transpose(w, (1, 0, 2)), axis=2)
        out = jax.lax.conv_general_dilated(
            x, wc, window_strides=(1,), padding=[(K - 1, K - 1)],
            lhs_dilation=(stride,),
            dimension_numbers=("NCH", "OIH", "NCH"), precision=hi)
        return out + b[None, :, None]

    def pool(x):
        Lh = x.shape[2] // 2
        return jnp.maximum(x[:, :, 0:2 * Lh:2], x[:, :, 1:2 * Lh:2])

    sig = jax.nn.sigmoid
    y = pool(sig(conv1d(x, params["e1_w"], params["e1_b"], 8)))
    y = pool(sig(conv1d(y, params["e2_w"], params["e2_b"], 7)))
    y = pool(sig(conv1d(y, params["e3_w"], params["e3_b"], 7)))
    z = sig(conv_t1d(y, params["d1_w"], params["d1_b"], 2))
    z = sig(conv_t1d(z, params["d2_w"], params["d2_b"], 2))
    z = conv_t1d(z, params["d3_w"], params["d3_b"], 1)
    return z


def init_params(key):
    """Deterministic synthetic parameter init (uniform ±1/sqrt(fan_in), like torch)."""
    def u(k, shape, fan_in):
        s = 1.0 / jnp.sqrt(float(fan_in))
        return jax.random.uniform(k, shape, jnp.float32, -s, s)

    ks = jax.random.split(key, 12)
    return {
        # Conv1d weights: (Cout, Cin, K)
        "e1_w": u(ks[0], (32, 1, 9), 1 * 9),   "e1_b": u(ks[1], (32,), 1 * 9),
        "e2_w": u(ks[2], (16, 32, 8), 32 * 8), "e2_b": u(ks[3], (16,), 32 * 8),
        "e3_w": u(ks[4], (8, 16, 8), 16 * 8),  "e3_b": u(ks[5], (8,), 16 * 8),
        # ConvTranspose1d weights: (Cin, Cout, K)
        "d1_w": u(ks[6], (8, 16, 10), 8 * 10),  "d1_b": u(ks[7], (16,), 8 * 10),
        "d2_w": u(ks[8], (16, 8, 11), 16 * 11), "d2_b": u(ks[9], (8,), 16 * 11),
        "d3_w": u(ks[10], (8, 1, 10), 8 * 10),  "d3_b": u(ks[11], (1,), 8 * 10),
    }


if __name__ == "__main__":
    key = jax.random.PRNGKey(0)
    k_x, k_p = jax.random.split(key)

    # Small input consistent with the module: (batch=2, channels=1, length=32).
    x = jax.random.normal(k_x, (2, 1, 32), jnp.float32)
    params = init_params(k_p)
    prep = prepare_params(params)        # one-time layout prep

    fwd = jax.jit(autoencoder_cnn_forward)
    z = fwd(x, prep)
    jax.block_until_ready(z)

    # Expected output shape for L=32: encoder -> (2, 8, 10), decoder -> (2, 1, 74).
    assert z.shape == (2, 1, 74), z.shape
    assert bool(jnp.all(jnp.isfinite(z)))

    z_ref = reference_forward(x, params)
    assert bool(jnp.allclose(z, z_ref, atol=1e-3, rtol=1e-3)), (
        float(jnp.max(jnp.abs(z - z_ref))))
    print("KERNEL_OK")
</pallas_src>

<mosaic_0001>
module attributes {stable_mosaic.version = 11 : i64} {
  func.func @_autoencoder_kernel(%arg0: i32, %arg1: memref<1x1x32xf32, #tpu.memory_space<vmem>>, %arg2: memref<9x32x1xf32, #tpu.memory_space<vmem>>, %arg3: memref<32x1xf32, #tpu.memory_space<vmem>>, %arg4: memref<8x16x32xf32, #tpu.memory_space<vmem>>, %arg5: memref<16x1xf32, #tpu.memory_space<vmem>>, %arg6: memref<8x8x16xf32, #tpu.memory_space<vmem>>, %arg7: memref<8x1xf32, #tpu.memory_space<vmem>>, %arg8: memref<10x16x8xf32, #tpu.memory_space<vmem>>, %arg9: memref<16x1xf32, #tpu.memory_space<vmem>>, %arg10: memref<11x8x16xf32, #tpu.memory_space<vmem>>, %arg11: memref<8x1xf32, #tpu.memory_space<vmem>>, %arg12: memref<10x1x8xf32, #tpu.memory_space<vmem>>, %arg13: memref<1x1xf32, #tpu.memory_space<vmem>>, %arg14: memref<1x1x74xf32, #tpu.memory_space<vmem>>) attributes {dimension_semantics = [#tpu.dimension_semantics<parallel>], iteration_bounds = array<i64: 2>, scalar_prefetch = 0 : i64, scratch_operands = 0 : i64, tpu.core_type = #tpu.core_type<tc>, window_params = [{transform_indices = @transform_0, window_bounds = array<i64: 1, 1, 32>}, {pipeline_mode = #tpu.pipeline_mode<synchronous>, transform_indices = @transform_1, window_bounds = array<i64: 9, 32, 1>}, {pipeline_mode = #tpu.pipeline_mode<synchronous>, transform_indices = @transform_2, window_bounds = array<i64: 32, 1>}, {pipeline_mode = #tpu.pipeline_mode<synchronous>, transform_indices = @transform_3, window_bounds = array<i64: 8, 16, 32>}, {pipeline_mode = #tpu.pipeline_mode<synchronous>, transform_indices = @transform_4, window_bounds = array<i64: 16, 1>}, {pipeline_mode = #tpu.pipeline_mode<synchronous>, transform_indices = @transform_5, window_bounds = array<i64: 8, 8, 16>}, {pipeline_mode = #tpu.pipeline_mode<synchronous>, transform_indices = @transform_6, window_bounds = array<i64: 8, 1>}, {pipeline_mode = #tpu.pipeline_mode<synchronous>, transform_indices = @transform_7, window_bounds = array<i64: 10, 16, 8>}, {pipeline_mode = #tpu.pipeline_mode<synchronous>, transform_indices = @transform_8, window_bounds = array<i64: 16, 1>}, {pipeline_mode = #tpu.pipeline_mode<synchronous>, transform_indices = @transform_9, window_bounds = array<i64: 11, 8, 16>}, {pipeline_mode = #tpu.pipeline_mode<synchronous>, transform_indices = @transform_10, window_bounds = array<i64: 8, 1>}, {pipeline_mode = #tpu.pipeline_mode<synchronous>, transform_indices = @transform_11, window_bounds = array<i64: 10, 1, 8>}, {pipeline_mode = #tpu.pipeline_mode<synchronous>, transform_indices = @transform_12, window_bounds = array<i64: 1, 1>}, {transform_indices = @transform_13, window_bounds = array<i64: 1, 1, 74>}]} {
    %c0 = arith.constant 0 : index
    %c0_0 = arith.constant 0 : index
    %c0_1 = arith.constant 0 : index
    %0 = vector.load %arg1[%c0, %c0_0, %c0_1] : memref<1x1x32xf32, #tpu.memory_space<vmem>>, vector<1x1x32xf32>
    %1 = vector.shape_cast %0 : vector<1x1x32xf32> to vector<1x32xf32>
    %2 = tpu.iota {dimensions = array<i32: 0>} : vector<32x48xi32>
    %3 = tpu.iota {dimensions = array<i32: 1>} : vector<32x48xi32>
    %c1_i32 = arith.constant 1 : i32
    %4 = vector.broadcast %c1_i32 : i32 to vector<32x48xi32>
    %5 = arith.muli %4, %2 : vector<32x48xi32>
    %c8_i32 = arith.constant 8 : i32
    %6 = vector.broadcast %c8_i32 : i32 to vector<32x48xi32>
    %7 = arith.addi %5, %6 : vector<32x48xi32>
    %8 = arith.cmpi eq, %3, %7 : vector<32x48xi32>
    %cst = arith.constant 1.000000e+00 : f32
    %cst_2 = arith.constant 0.000000e+00 : f32
    %9 = vector.broadcast %cst : f32 to vector<32x48xf32>
    %10 = vector.broadcast %cst_2 : f32 to vector<32x48xf32>
    %11 = arith.select %8, %9, %10 : vector<32x48xi1>, vector<32x48xf32>
    %cst_3 = arith.constant dense<0.000000e+00> : vector<1x48xf32>
    %12 = tpu.matmul %1, %11, %cst_3 {dimension_numbers = #tpu.dot_dimension_numbers<[1], [0], [0], [1], [0, 0, 1, 1], [], []>} : vector<1x32xf32>, vector<32x48xf32>, vector<1x48xf32> -> vector<1x48xf32>
    %cst_4 = arith.constant 0.000000e+00 : f32
    %13 = vector.broadcast %cst_4 : f32 to vector<32x40xf32>
    %c0_5 = arith.constant 0 : index
    %c0_6 = arith.constant 0 : index
    %c0_7 = arith.constant 0 : index
    %14 = vector.load %arg2[%c0_5, %c0_6, %c0_7] : memref<9x32x1xf32, #tpu.memory_space<vmem>>, vector<1x32x1xf32>
    %15 = vector.shape_cast %14 : vector<1x32x1xf32> to vector<32x1xf32>
    %16 = vector.extract_strided_slice %12 {offsets = [0, 0], sizes = [1, 40], strides = [1, 1]} : vector<1x48xf32> to vector<1x40xf32>
    %17 = vector.broadcast %15 : vector<32x1xf32> to vector<32x40xf32>
    %18 = vector.broadcast %16 : vector<1x40xf32> to vector<32x40xf32>
    %19 = arith.mulf %17, %18 : vector<32x40xf32>
    %20 = arith.addf %13, %19 : vector<32x40xf32>
    %c1 = arith.constant 1 : index
    %c0_8 = arith.constant 0 : index
    %c0_9 = arith.constant 0 : index
    %21 = vector.load %arg2[%c1, %c0_8, %c0_9] : memref<9x32x1xf32, #tpu.memory_space<vmem>>, vector<1x32x1xf32>
    %22 = vector.shape_cast %21 : vector<1x32x1xf32> to vector<32x1xf32>
    %23 = vector.extract_strided_slice %12 {offsets = [0, 1], sizes = [1, 40], strides = [1, 1]} : vector<1x48xf32> to vector<1x40xf32>
    %24 = vector.broadcast %22 : vector<32x1xf32> to vector<32x40xf32>
    %25 = vector.broadcast %23 : vector<1x40xf32> to vector<32x40xf32>
    %26 = arith.mulf %24, %25 : vector<32x40xf32>
    %27 = arith.addf %20, %26 : vector<32x40xf32>
    %c2 = arith.constant 2 : index
    %c0_10 = arith.constant 0 : index
    %c0_11 = arith.constant 0 : index
    %28 = vector.load %arg2[%c2, %c0_10, %c0_11] : memref<9x32x1xf32, #tpu.memory_space<vmem>>, vector<1x32x1xf32>
    %29 = vector.shape_cast %28 : vector<1x32x1xf32> to vector<32x1xf32>
    %30 = vector.extract_strided_slice %12 {offsets = [0, 2], sizes = [1, 40], strides = [1, 1]} : vector<1x48xf32> to vector<1x40xf32>
    %31 = vector.broadcast %29 : vector<32x1xf32> to vector<32x40xf32>
    %32 = vector.broadcast %30 : vector<1x40xf32> to vector<32x40xf32>
    %33 = arith.mulf %31, %32 : vector<32x40xf32>
    %34 = arith.addf %27, %33 : vector<32x40xf32>
    %c3 = arith.constant 3 : index
    %c0_12 = arith.constant 0 : index
    %c0_13 = arith.constant 0 : index
    %35 = vector.load %arg2[%c3, %c0_12, %c0_13] : memref<9x32x1xf32, #tpu.memory_space<vmem>>, vector<1x32x1xf32>
    %36 = vector.shape_cast %35 : vector<1x32x1xf32> to vector<32x1xf32>
    %37 = vector.extract_strided_slice %12 {offsets = [0, 3], sizes = [1, 40], strides = [1, 1]} : vector<1x48xf32> to vector<1x40xf32>
    %38 = vector.broadcast %36 : vector<32x1xf32> to vector<32x40xf32>
    %39 = vector.broadcast %37 : vector<1x40xf32> to vector<32x40xf32>
    %40 = arith.mulf %38, %39 : vector<32x40xf32>
    %41 = arith.addf %34, %40 : vector<32x40xf32>
    %c4 = arith.constant 4 : index
    %c0_14 = arith.constant 0 : index
    %c0_15 = arith.constant 0 : index
    %42 = vector.load %arg2[%c4, %c0_14, %c0_15] : memref<9x32x1xf32, #tpu.memory_space<vmem>>, vector<1x32x1xf32>
    %43 = vector.shape_cast %42 : vector<1x32x1xf32> to vector<32x1xf32>
    %44 = vector.extract_strided_slice %12 {offsets = [0, 4], sizes = [1, 40], strides = [1, 1]} : vector<1x48xf32> to vector<1x40xf32>
    %45 = vector.broadcast %43 : vector<32x1xf32> to vector<32x40xf32>
    %46 = vector.broadcast %44 : vector<1x40xf32> to vector<32x40xf32>
    %47 = arith.mulf %45, %46 : vector<32x40xf32>
    %48 = arith.addf %41, %47 : vector<32x40xf32>
    %c5 = arith.constant 5 : index
    %c0_16 = arith.constant 0 : index
    %c0_17 = arith.constant 0 : index
    %49 = vector.load %arg2[%c5, %c0_16, %c0_17] : memref<9x32x1xf32, #tpu.memory_space<vmem>>, vector<1x32x1xf32>
    %50 = vector.shape_cast %49 : vector<1x32x1xf32> to vector<32x1xf32>
    %51 = vector.extract_strided_slice %12 {offsets = [0, 5], sizes = [1, 40], strides = [1, 1]} : vector<1x48xf32> to vector<1x40xf32>
    %52 = vector.broadcast %50 : vector<32x1xf32> to vector<32x40xf32>
    %53 = vector.broadcast %51 : vector<1x40xf32> to vector<32x40xf32>
    %54 = arith.mulf %52, %53 : vector<32x40xf32>
    %55 = arith.addf %48, %54 : vector<32x40xf32>
    %c6 = arith.constant 6 : index
    %c0_18 = arith.constant 0 : index
    %c0_19 = arith.constant 0 : index
    %56 = vector.load %arg2[%c6, %c0_18, %c0_19] : memref<9x32x1xf32, #tpu.memory_space<vmem>>, vector<1x32x1xf32>
    %57 = vector.shape_cast %56 : vector<1x32x1xf32> to vector<32x1xf32>
    %58 = vector.extract_strided_slice %12 {offsets = [0, 6], sizes = [1, 40], strides = [1, 1]} : vector<1x48xf32> to vector<1x40xf32>
    %59 = vector.broadcast %57 : vector<32x1xf32> to vector<32x40xf32>
    %60 = vector.broadcast %58 : vector<1x40xf32> to vector<32x40xf32>
    %61 = arith.mulf %59, %60 : vector<32x40xf32>
    %62 = arith.addf %55, %61 : vector<32x40xf32>
    %c7 = arith.constant 7 : index
    %c0_20 = arith.constant 0 : index
    %c0_21 = arith.constant 0 : index
    %63 = vector.load %arg2[%c7, %c0_20, %c0_21] : memref<9x32x1xf32, #tpu.memory_space<vmem>>, vector<1x32x1xf32>
    %64 = vector.shape_cast %63 : vector<1x32x1xf32> to vector<32x1xf32>
    %65 = vector.extract_strided_slice %12 {offsets = [0, 7], sizes = [1, 40], strides = [1, 1]} : vector<1x48xf32> to vector<1x40xf32>
    %66 = vector.broadcast %64 : vector<32x1xf32> to vector<32x40xf32>
    %67 = vector.broadcast %65 : vector<1x40xf32> to vector<32x40xf32>
    %68 = arith.mulf %66, %67 : vector<32x40xf32>
    %69 = arith.addf %62, %68 : vector<32x40xf32>
    %c8 = arith.constant 8 : index
    %c0_22 = arith.constant 0 : index
    %c0_23 = arith.constant 0 : index
    %70 = vector.load %arg2[%c8, %c0_22, %c0_23] : memref<9x32x1xf32, #tpu.memory_space<vmem>>, vector<1x32x1xf32>
    %71 = vector.shape_cast %70 : vector<1x32x1xf32> to vector<32x1xf32>
    %72 = vector.extract_strided_slice %12 {offsets = [0, 8], sizes = [1, 40], strides = [1, 1]} : vector<1x48xf32> to vector<1x40xf32>
    %73 = vector.broadcast %71 : vector<32x1xf32> to vector<32x40xf32>
    %74 = vector.broadcast %72 : vector<1x40xf32> to vector<32x40xf32>
    %75 = arith.mulf %73, %74 : vector<32x40xf32>
    %76 = arith.addf %69, %75 : vector<32x40xf32>
    %c0_24 = arith.constant 0 : index
    %c0_25 = arith.constant 0 : index
    %77 = vector.load %arg3[%c0_24, %c0_25] : memref<32x1xf32, #tpu.memory_space<vmem>>, vector<32x1xf32>
    %78 = vector.broadcast %77 : vector<32x1xf32> to vector<32x40xf32>
    %79 = arith.addf %76, %78 : vector<32x40xf32>
    %cst_26 = arith.constant 0.000000e+00 : f32
    %80 = vector.broadcast %cst_26 : f32 to vector<32x40xf32>
    %81 = arith.subf %80, %79 : vector<32x40xf32>
    %82 = math.exp %81 : vector<32x40xf32>
    %cst_27 = arith.constant 1.000000e+00 : f32
    %83 = vector.broadcast %cst_27 : f32 to vector<32x40xf32>
    %84 = arith.addf %83, %82 : vector<32x40xf32>
    %cst_28 = arith.constant 1.000000e+00 : f32
    %85 = vector.broadcast %cst_28 : f32 to vector<32x40xf32>
    %86 = arith.divf %85, %84 : vector<32x40xf32>
    %87 = vector.extract_strided_slice %86 {offsets = [0, 0], sizes = [32, 39], strides = [1, 1]} : vector<32x40xf32> to vector<32x39xf32>
    %88 = vector.extract_strided_slice %86 {offsets = [0, 1], sizes = [32, 39], strides = [1, 1]} : vector<32x40xf32> to vector<32x39xf32>
    %89 = arith.maximumf %87, %88 : vector<32x39xf32>
    %90 = tpu.iota {dimensions = array<i32: 0>} : vector<39x20xi32>
    %91 = tpu.iota {dimensions = array<i32: 1>} : vector<39x20xi32>
    %c2_i32 = arith.constant 2 : i32
    %92 = vector.broadcast %c2_i32 : i32 to vector<39x20xi32>
    %93 = arith.muli %92, %91 : vector<39x20xi32>
    %94 = arith.cmpi eq, %90, %93 : vector<39x20xi32>
    %cst_29 = arith.constant 1.000000e+00 : f32
    %cst_30 = arith.constant 0.000000e+00 : f32
    %95 = vector.broadcast %cst_29 : f32 to vector<39x20xf32>
    %96 = vector.broadcast %cst_30 : f32 to vector<39x20xf32>
    %97 = arith.select %94, %95, %96 : vector<39x20xi1>, vector<39x20xf32>
    %cst_31 = arith.constant dense<0.000000e+00> : vector<32x20xf32>
    %98 = tpu.matmul %89, %97, %cst_31 {dimension_numbers = #tpu.dot_dimension_numbers<[1], [0], [0], [1], [0, 0, 1, 1], [], []>} : vector<32x39xf32>, vector<39x20xf32>, vector<32x20xf32> -> vector<32x20xf32>
    %99 = tpu.iota {dimensions = array<i32: 0>} : vector<20x34xi32>
    %100 = tpu.iota {dimensions = array<i32: 1>} : vector<20x34xi32>
    %c1_i32_32 = arith.constant 1 : i32
    %101 = vector.broadcast %c1_i32_32 : i32 to vector<20x34xi32>
    %102 = arith.muli %101, %99 : vector<20x34xi32>
    %c7_i32 = arith.constant 7 : i32
    %103 = vector.broadcast %c7_i32 : i32 to vector<20x34xi32>
    %104 = arith.addi %102, %103 : vector<20x34xi32>
    %105 = arith.cmpi eq, %100, %104 : vector<20x34xi32>
    %cst_33 = arith.constant 1.000000e+00 : f32
    %cst_34 = arith.constant 0.000000e+00 : f32
    %106 = vector.broadcast %cst_33 : f32 to vector<20x34xf32>
    %107 = vector.broadcast %cst_34 : f32 to vector<20x34xf32>
    %108 = arith.select %105, %106, %107 : vector<20x34xi1>, vector<20x34xf32>
    %cst_35 = arith.constant dense<0.000000e+00> : vector<32x34xf32>
    %109 = tpu.matmul %98, %108, %cst_35 {dimension_numbers = #tpu.dot_dimension_numbers<[1], [0], [0], [1], [0, 0, 1, 1], [], []>} : vector<32x20xf32>, vector<20x34xf32>, vector<32x34xf32> -> vector<32x34xf32>
    %cst_36 = arith.constant 0.000000e+00 : f32
    %110 = vector.broadcast %cst_36 : f32 to vector<16x27xf32>
    %c0_37 = arith.constant 0 : index
    %c0_38 = arith.constant 0 : index
    %c0_39 = arith.constant 0 : index
    %111 = vector.load %arg4[%c0_37, %c0_38, %c0_39] : memref<8x16x32xf32, #tpu.memory_space<vmem>>, vector<1x16x32xf32>
    %112 = vector.shape_cast %111 : vector<1x16x32xf32> to vector<16x32xf32>
    %113 = vector.extract_strided_slice %109 {offsets = [0, 0], sizes = [32, 27], strides = [1, 1]} : vector<32x34xf32> to vector<32x27xf32>
    %cst_40 = arith.constant dense<0.000000e+00> : vector<16x27xf32>
    %114 = tpu.matmul %112, %113, %cst_40 {dimension_numbers = #tpu.dot_dimension_numbers<[1], [0], [0], [1], [0, 0, 1, 1], [], []>} : vector<16x32xf32>, vector<32x27xf32>, vector<16x27xf32> -> vector<16x27xf32>
    %115 = arith.addf %110, %114 : vector<16x27xf32>
    %c1_41 = arith.constant 1 : index
    %c0_42 = arith.constant 0 : index
    %c0_43 = arith.constant 0 : index
    %116 = vector.load %arg4[%c1_41, %c0_42, %c0_43] : memref<8x16x32xf32, #tpu.memory_space<vmem>>, vector<1x16x32xf32>
    %117 = vector.shape_cast %116 : vector<1x16x32xf32> to vector<16x32xf32>
    %118 = vector.extract_strided_slice %109 {offsets = [0, 1], sizes = [32, 27], strides = [1, 1]} : vector<32x34xf32> to vector<32x27xf32>
    %cst_44 = arith.constant dense<0.000000e+00> : vector<16x27xf32>
    %119 = tpu.matmul %117, %118, %cst_44 {dimension_numbers = #tpu.dot_dimension_numbers<[1], [0], [0], [1], [0, 0, 1, 1], [], []>} : vector<16x32xf32>, vector<32x27xf32>, vector<16x27xf32> -> vector<16x27xf32>
    %120 = arith.addf %115, %119 : vector<16x27xf32>
    %c2_45 = arith.constant 2 : index
    %c0_46 = arith.constant 0 : index
    %c0_47 = arith.constant 0 : index
    %121 = vector.load %arg4[%c2_45, %c0_46, %c0_47] : memref<8x16x32xf32, #tpu.memory_space<vmem>>, vector<1x16x32xf32>
    %122 = vector.shape_cast %121 : vector<1x16x32xf32> to vector<16x32xf32>
    %123 = vector.extract_strided_slice %109 {offsets = [0, 2], sizes = [32, 27], strides = [1, 1]} : vector<32x34xf32> to vector<32x27xf32>
    %cst_48 = arith.constant dense<0.000000e+00> : vector<16x27xf32>
    %124 = tpu.matmul %122, %123, %cst_48 {dimension_numbers = #tpu.dot_dimension_numbers<[1], [0], [0], [1], [0, 0, 1, 1], [], []>} : vector<16x32xf32>, vector<32x27xf32>, vector<16x27xf32> -> vector<16x27xf32>
    %125 = arith.addf %120, %124 : vector<16x27xf32>
    %c3_49 = arith.constant 3 : index
    %c0_50 = arith.constant 0 : index
    %c0_51 = arith.constant 0 : index
    %126 = vector.load %arg4[%c3_49, %c0_50, %c0_51] : memref<8x16x32xf32, #tpu.memory_space<vmem>>, vector<1x16x32xf32>
    %127 = vector.shape_cast %126 : vector<1x16x32xf32> to vector<16x32xf32>
    %128 = vector.extract_strided_slice %109 {offsets = [0, 3], sizes = [32, 27], strides = [1, 1]} : vector<32x34xf32> to vector<32x27xf32>
    %cst_52 = arith.constant dense<0.000000e+00> : vector<16x27xf32>
    %129 = tpu.matmul %127, %128, %cst_52 {dimension_numbers = #tpu.dot_dimension_numbers<[1], [0], [0], [1], [0, 0, 1, 1], [], []>} : vector<16x32xf32>, vector<32x27xf32>, vector<16x27xf32> -> vector<16x27xf32>
    %130 = arith.addf %125, %129 : vector<16x27xf32>
    %c4_53 = arith.constant 4 : index
    %c0_54 = arith.constant 0 : index
    %c0_55 = arith.constant 0 : index
    %131 = vector.load %arg4[%c4_53, %c0_54, %c0_55] : memref<8x16x32xf32, #tpu.memory_space<vmem>>, vector<1x16x32xf32>
    %132 = vector.shape_cast %131 : vector<1x16x32xf32> to vector<16x32xf32>
    %133 = vector.extract_strided_slice %109 {offsets = [0, 4], sizes = [32, 27], strides = [1, 1]} : vector<32x34xf32> to vector<32x27xf32>
    %cst_56 = arith.constant dense<0.000000e+00> : vector<16x27xf32>
    %134 = tpu.matmul %132, %133, %cst_56 {dimension_numbers = #tpu.dot_dimension_numbers<[1], [0], [0], [1], [0, 0, 1, 1], [], []>} : vector<16x32xf32>, vector<32x27xf32>, vector<16x27xf32> -> vector<16x27xf32>
    %135 = arith.addf %130, %134 : vector<16x27xf32>
    %c5_57 = arith.constant 5 : index
    %c0_58 = arith.constant 0 : index
    %c0_59 = arith.constant 0 : index
    %136 = vector.load %arg4[%c5_57, %c0_58, %c0_59] : memref<8x16x32xf32, #tpu.memory_space<vmem>>, vector<1x16x32xf32>
    %137 = vector.shape_cast %136 : vector<1x16x32xf32> to vector<16x32xf32>
    %138 = vector.extract_strided_slice %109 {offsets = [0, 5], sizes = [32, 27], strides = [1, 1]} : vector<32x34xf32> to vector<32x27xf32>
    %cst_60 = arith.constant dense<0.000000e+00> : vector<16x27xf32>
    %139 = tpu.matmul %137, %138, %cst_60 {dimension_numbers = #tpu.dot_dimension_numbers<[1], [0], [0], [1], [0, 0, 1, 1], [], []>} : vector<16x32xf32>, vector<32x27xf32>, vector<16x27xf32> -> vector<16x27xf32>
    %140 = arith.addf %135, %139 : vector<16x27xf32>
    %c6_61 = arith.constant 6 : index
    %c0_62 = arith.constant 0 : index
    %c0_63 = arith.constant 0 : index
    %141 = vector.load %arg4[%c6_61, %c0_62, %c0_63] : memref<8x16x32xf32, #tpu.memory_space<vmem>>, vector<1x16x32xf32>
    %142 = vector.shape_cast %141 : vector<1x16x32xf32> to vector<16x32xf32>
    %143 = vector.extract_strided_slice %109 {offsets = [0, 6], sizes = [32, 27], strides = [1, 1]} : vector<32x34xf32> to vector<32x27xf32>
    %cst_64 = arith.constant dense<0.000000e+00> : vector<16x27xf32>
    %144 = tpu.matmul %142, %143, %cst_64 {dimension_numbers = #tpu.dot_dimension_numbers<[1], [0], [0], [1], [0, 0, 1, 1], [], []>} : vector<16x32xf32>, vector<32x27xf32>, vector<16x27xf32> -> vector<16x27xf32>
    %145 = arith.addf %140, %144 : vector<16x27xf32>
    %c7_65 = arith.constant 7 : index
    %c0_66 = arith.constant 0 : index
    %c0_67 = arith.constant 0 : index
    %146 = vector.load %arg4[%c7_65, %c0_66, %c0_67] : memref<8x16x32xf32, #tpu.memory_space<vmem>>, vector<1x16x32xf32>
    %147 = vector.shape_cast %146 : vector<1x16x32xf32> to vector<16x32xf32>
    %148 = vector.extract_strided_slice %109 {offsets = [0, 7], sizes = [32, 27], strides = [1, 1]} : vector<32x34xf32> to vector<32x27xf32>
    %cst_68 = arith.constant dense<0.000000e+00> : vector<16x27xf32>
    %149 = tpu.matmul %147, %148, %cst_68 {dimension_numbers = #tpu.dot_dimension_numbers<[1], [0], [0], [1], [0, 0, 1, 1], [], []>} : vector<16x32xf32>, vector<32x27xf32>, vector<16x27xf32> -> vector<16x27xf32>
    %150 = arith.addf %145, %149 : vector<16x27xf32>
    %c0_69 = arith.constant 0 : index
    %c0_70 = arith.constant 0 : index
    %151 = vector.load %arg5[%c0_69, %c0_70] : memref<16x1xf32, #tpu.memory_space<vmem>>, vector<16x1xf32>
    %152 = vector.broadcast %151 : vector<16x1xf32> to vector<16x27xf32>
    %153 = arith.addf %150, %152 : vector<16x27xf32>
    %cst_71 = arith.constant 0.000000e+00 : f32
    %154 = vector.broadcast %cst_71 : f32 to vector<16x27xf32>
    %155 = arith.subf %154, %153 : vector<16x27xf32>
    %156 = math.exp %155 : vector<16x27xf32>
    %cst_72 = arith.constant 1.000000e+00 : f32
    %157 = vector.broadcast %cst_72 : f32 to vector<16x27xf32>
    %158 = arith.addf %157, %156 : vector<16x27xf32>
    %cst_73 = arith.constant 1.000000e+00 : f32
    %159 = vector.broadcast %cst_73 : f32 to vector<16x27xf32>
    %160 = arith.divf %159, %158 : vector<16x27xf32>
    %161 = vector.extract_strided_slice %160 {offsets = [0, 0], sizes = [16, 26], strides = [1, 1]} : vector<16x27xf32> to vector<16x26xf32>
    %162 = vector.extract_strided_slice %160 {offsets = [0, 1], sizes = [16, 26], strides = [1, 1]} : vector<16x27xf32> to vector<16x26xf32>
    %163 = arith.maximumf %161, %162 : vector<16x26xf32>
    %164 = tpu.iota {dimensions = array<i32: 0>} : vector<26x13xi32>
    %165 = tpu.iota {dimensions = array<i32: 1>} : vector<26x13xi32>
    %c2_i32_74 = arith.constant 2 : i32
    %166 = vector.broadcast %c2_i32_74 : i32 to vector<26x13xi32>
    %167 = arith.muli %166, %165 : vector<26x13xi32>
    %168 = arith.cmpi eq, %164, %167 : vector<26x13xi32>
    %cst_75 = arith.constant 1.000000e+00 : f32
    %cst_76 = arith.constant 0.000000e+00 : f32
    %169 = vector.broadcast %cst_75 : f32 to vector<26x13xf32>
    %170 = vector.broadcast %cst_76 : f32 to vector<26x13xf32>
    %171 = arith.select %168, %169, %170 : vector<26x13xi1>, vector<26x13xf32>
    %cst_77 = arith.constant dense<0.000000e+00> : vector<16x13xf32>
    %172 = tpu.matmul %163, %171, %cst_77 {dimension_numbers = #tpu.dot_dimension_numbers<[1], [0], [0], [1], [0, 0, 1, 1], [], []>} : vector<16x26xf32>, vector<26x13xf32>, vector<16x13xf32> -> vector<16x13xf32>
    %173 = tpu.iota {dimensions = array<i32: 0>} : vector<13x27xi32>
    %174 = tpu.iota {dimensions = array<i32: 1>} : vector<13x27xi32>
    %c1_i32_78 = arith.constant 1 : i32
    %175 = vector.broadcast %c1_i32_78 : i32 to vector<13x27xi32>
    %176 = arith.muli %175, %173 : vector<13x27xi32>
    %c7_i32_79 = arith.constant 7 : i32
    %177 = vector.broadcast %c7_i32_79 : i32 to vector<13x27xi32>
    %178 = arith.addi %176, %177 : vector<13x27xi32>
    %179 = arith.cmpi eq, %174, %178 : vector<13x27xi32>
    %cst_80 = arith.constant 1.000000e+00 : f32
    %cst_81 = arith.constant 0.000000e+00 : f32
    %180 = vector.broadcast %cst_80 : f32 to vector<13x27xf32>
    %181 = vector.broadcast %cst_81 : f32 to vector<13x27xf32>
    %182 = arith.select %179, %180, %181 : vector<13x27xi1>, vector<13x27xf32>
    %cst_82 = arith.constant dense<0.000000e+00> : vector<16x27xf32>
    %183 = tpu.matmul %172, %182, %cst_82 {dimension_numbers = #tpu.dot_dimension_numbers<[1], [0], [0], [1], [0, 0, 1, 1], [], []>} : vector<16x13xf32>, vector<13x27xf32>, vector<16x27xf32> -> vector<16x27xf32>
    %cst_83 = arith.constant 0.000000e+00 : f32
    %184 = vector.broadcast %cst_83 : f32 to vector<8x20xf32>
    %c0_84 = arith.constant 0 : index
    %c0_85 = arith.constant 0 : index
    %c0_86 = arith.constant 0 : index
    %185 = vector.load %arg6[%c0_84, %c0_85, %c0_86] : memref<8x8x16xf32, #tpu.memory_space<vmem>>, vector<1x8x16xf32>
    %186 = vector.shape_cast %185 : vector<1x8x16xf32> to vector<8x16xf32>
    %187 = vector.extract_strided_slice %183 {offsets = [0, 0], sizes = [16, 20], strides = [1, 1]} : vector<16x27xf32> to vector<16x20xf32>
    %cst_87 = arith.constant dense<0.000000e+00> : vector<8x20xf32>
    %188 = tpu.matmul %186, %187, %cst_87 {dimension_numbers = #tpu.dot_dimension_numbers<[1], [0], [0], [1], [0, 0, 1, 1], [], []>} : vector<8x16xf32>, vector<16x20xf32>, vector<8x20xf32> -> vector<8x20xf32>
    %189 = arith.addf %184, %188 : vector<8x20xf32>
    %c1_88 = arith.constant 1 : index
    %c0_89 = arith.constant 0 : index
    %c0_90 = arith.constant 0 : index
    %190 = vector.load %arg6[%c1_88, %c0_89, %c0_90] : memref<8x8x16xf32, #tpu.memory_space<vmem>>, vector<1x8x16xf32>
    %191 = vector.shape_cast %190 : vector<1x8x16xf32> to vector<8x16xf32>
    %192 = vector.extract_strided_slice %183 {offsets = [0, 1], sizes = [16, 20], strides = [1, 1]} : vector<16x27xf32> to vector<16x20xf32>
    %cst_91 = arith.constant dense<0.000000e+00> : vector<8x20xf32>
    %193 = tpu.matmul %191, %192, %cst_91 {dimension_numbers = #tpu.dot_dimension_numbers<[1], [0], [0], [1], [0, 0, 1, 1], [], []>} : vector<8x16xf32>, vector<16x20xf32>, vector<8x20xf32> -> vector<8x20xf32>
    %194 = arith.addf %189, %193 : vector<8x20xf32>
    %c2_92 = arith.constant 2 : index
    %c0_93 = arith.constant 0 : index
    %c0_94 = arith.constant 0 : index
    %195 = vector.load %arg6[%c2_92, %c0_93, %c0_94] : memref<8x8x16xf32, #tpu.memory_space<vmem>>, vector<1x8x16xf32>
    %196 = vector.shape_cast %195 : vector<1x8x16xf32> to vector<8x16xf32>
    %197 = vector.extract_strided_slice %183 {offsets = [0, 2], sizes = [16, 20], strides = [1, 1]} : vector<16x27xf32> to vector<16x20xf32>
    %cst_95 = arith.constant dense<0.000000e+00> : vector<8x20xf32>
    %198 = tpu.matmul %196, %197, %cst_95 {dimension_numbers = #tpu.dot_dimension_numbers<[1], [0], [0], [1], [0, 0, 1, 1], [], []>} : vector<8x16xf32>, vector<16x20xf32>, vector<8x20xf32> -> vector<8x20xf32>
    %199 = arith.addf %194, %198 : vector<8x20xf32>
    %c3_96 = arith.constant 3 : index
    %c0_97 = arith.constant 0 : index
    %c0_98 = arith.constant 0 : index
    %200 = vector.load %arg6[%c3_96, %c0_97, %c0_98] : memref<8x8x16xf32, #tpu.memory_space<vmem>>, vector<1x8x16xf32>
    %201 = vector.shape_cast %200 : vector<1x8x16xf32> to vector<8x16xf32>
    %202 = vector.extract_strided_slice %183 {offsets = [0, 3], sizes = [16, 20], strides = [1, 1]} : vector<16x27xf32> to vector<16x20xf32>
    %cst_99 = arith.constant dense<0.000000e+00> : vector<8x20xf32>
    %203 = tpu.matmul %201, %202, %cst_99 {dimension_numbers = #tpu.dot_dimension_numbers<[1], [0], [0], [1], [0, 0, 1, 1], [], []>} : vector<8x16xf32>, vector<16x20xf32>, vector<8x20xf32> -> vector<8x20xf32>
    %204 = arith.addf %199, %203 : vector<8x20xf32>
    %c4_100 = arith.constant 4 : index
    %c0_101 = arith.constant 0 : index
    %c0_102 = arith.constant 0 : index
    %205 = vector.load %arg6[%c4_100, %c0_101, %c0_102] : memref<8x8x16xf32, #tpu.memory_space<vmem>>, vector<1x8x16xf32>
    %206 = vector.shape_cast %205 : vector<1x8x16xf32> to vector<8x16xf32>
    %207 = vector.extract_strided_slice %183 {offsets = [0, 4], sizes = [16, 20], strides = [1, 1]} : vector<16x27xf32> to vector<16x20xf32>
    %cst_103 = arith.constant dense<0.000000e+00> : vector<8x20xf32>
    %208 = tpu.matmul %206, %207, %cst_103 {dimension_numbers = #tpu.dot_dimension_numbers<[1], [0], [0], [1], [0, 0, 1, 1], [], []>} : vector<8x16xf32>, vector<16x20xf32>, vector<8x20xf32> -> vector<8x20xf32>
    %209 = arith.addf %204, %208 : vector<8x20xf32>
    %c5_104 = arith.constant 5 : index
    %c0_105 = arith.constant 0 : index
    %c0_106 = arith.constant 0 : index
    %210 = vector.load %arg6[%c5_104, %c0_105, %c0_106] : memref<8x8x16xf32, #tpu.memory_space<vmem>>, vector<1x8x16xf32>
    %211 = vector.shape_cast %210 : vector<1x8x16xf32> to vector<8x16xf32>
    %212 = vector.extract_strided_slice %183 {offsets = [0, 5], sizes = [16, 20], strides = [1, 1]} : vector<16x27xf32> to vector<16x20xf32>
    %cst_107 = arith.constant dense<0.000000e+00> : vector<8x20xf32>
    %213 = tpu.matmul %211, %212, %cst_107 {dimension_numbers = #tpu.dot_dimension_numbers<[1], [0], [0], [1], [0, 0, 1, 1], [], []>} : vector<8x16xf32>, vector<16x20xf32>, vector<8x20xf32> -> vector<8x20xf32>
    %214 = arith.addf %209, %213 : vector<8x20xf32>
    %c6_108 = arith.constant 6 : index
    %c0_109 = arith.constant 0 : index
    %c0_110 = arith.constant 0 : index
    %215 = vector.load %arg6[%c6_108, %c0_109, %c0_110] : memref<8x8x16xf32, #tpu.memory_space<vmem>>, vector<1x8x16xf32>
    %216 = vector.shape_cast %215 : vector<1x8x16xf32> to vector<8x16xf32>
    %217 = vector.extract_strided_slice %183 {offsets = [0, 6], sizes = [16, 20], strides = [1, 1]} : vector<16x27xf32> to vector<16x20xf32>
    %cst_111 = arith.constant dense<0.000000e+00> : vector<8x20xf32>
    %218 = tpu.matmul %216, %217, %cst_111 {dimension_numbers = #tpu.dot_dimension_numbers<[1], [0], [0], [1], [0, 0, 1, 1], [], []>} : vector<8x16xf32>, vector<16x20xf32>, vector<8x20xf32> -> vector<8x20xf32>
    %219 = arith.addf %214, %218 : vector<8x20xf32>
    %c7_112 = arith.constant 7 : index
    %c0_113 = arith.constant 0 : index
    %c0_114 = arith.constant 0 : index
    %220 = vector.load %arg6[%c7_112, %c0_113, %c0_114] : memref<8x8x16xf32, #tpu.memory_space<vmem>>, vector<1x8x16xf32>
    %221 = vector.shape_cast %220 : vector<1x8x16xf32> to vector<8x16xf32>
    %222 = vector.extract_strided_slice %183 {offsets = [0, 7], sizes = [16, 20], strides = [1, 1]} : vector<16x27xf32> to vector<16x20xf32>
    %cst_115 = arith.constant dense<0.000000e+00> : vector<8x20xf32>
    %223 = tpu.matmul %221, %222, %cst_115 {dimension_numbers = #tpu.dot_dimension_numbers<[1], [0], [0], [1], [0, 0, 1, 1], [], []>} : vector<8x16xf32>, vector<16x20xf32>, vector<8x20xf32> -> vector<8x20xf32>
    %224 = arith.addf %219, %223 : vector<8x20xf32>
    %c0_116 = arith.constant 0 : index
    %c0_117 = arith.constant 0 : index
    %225 = vector.load %arg7[%c0_116, %c0_117] : memref<8x1xf32, #tpu.memory_space<vmem>>, vector<8x1xf32>
    %226 = vector.broadcast %225 : vector<8x1xf32> to vector<8x20xf32>
    %227 = arith.addf %224, %226 : vector<8x20xf32>
    %cst_118 = arith.constant 0.000000e+00 : f32
    %228 = vector.broadcast %cst_118 : f32 to vector<8x20xf32>
    %229 = arith.subf %228, %227 : vector<8x20xf32>
    %230 = math.exp %229 : vector<8x20xf32>
    %cst_119 = arith.constant 1.000000e+00 : f32
    %231 = vector.broadcast %cst_119 : f32 to vector<8x20xf32>
    %232 = arith.addf %231, %230 : vector<8x20xf32>
    %cst_120 = arith.constant 1.000000e+00 : f32
    %233 = vector.broadcast %cst_120 : f32 to vector<8x20xf32>
    %234 = arith.divf %233, %232 : vector<8x20xf32>
    %235 = vector.extract_strided_slice %234 {offsets = [0, 0], sizes = [8, 19], strides = [1, 1]} : vector<8x20xf32> to vector<8x19xf32>
    %236 = vector.extract_strided_slice %234 {offsets = [0, 1], sizes = [8, 19], strides = [1, 1]} : vector<8x20xf32> to vector<8x19xf32>
    %237 = arith.maximumf %235, %236 : vector<8x19xf32>
    %238 = tpu.iota {dimensions = array<i32: 0>} : vector<19x10xi32>
    %239 = tpu.iota {dimensions = array<i32: 1>} : vector<19x10xi32>
    %c2_i32_121 = arith.constant 2 : i32
    %240 = vector.broadcast %c2_i32_121 : i32 to vector<19x10xi32>
    %241 = arith.muli %240, %239 : vector<19x10xi32>
    %242 = arith.cmpi eq, %238, %241 : vector<19x10xi32>
    %cst_122 = arith.constant 1.000000e+00 : f32
    %cst_123 = arith.constant 0.000000e+00 : f32
    %243 = vector.broadcast %cst_122 : f32 to vector<19x10xf32>
    %244 = vector.broadcast %cst_123 : f32 to vector<19x10xf32>
    %245 = arith.select %242, %243, %244 : vector<19x10xi1>, vector<19x10xf32>
    %cst_124 = arith.constant dense<0.000000e+00> : vector<8x10xf32>
    %246 = tpu.matmul %237, %245, %cst_124 {dimension_numbers = #tpu.dot_dimension_numbers<[1], [0], [0], [1], [0, 0, 1, 1], [], []>} : vector<8x19xf32>, vector<19x10xf32>, vector<8x10xf32> -> vector<8x10xf32>
    %247 = tpu.iota {dimensions = array<i32: 0>} : vector<10x37xi32>
    %248 = tpu.iota {dimensions = array<i32: 1>} : vector<10x37xi32>
    %c2_i32_125 = arith.constant 2 : i32
    %249 = vector.broadcast %c2_i32_125 : i32 to vector<10x37xi32>
    %250 = arith.muli %249, %247 : vector<10x37xi32>
    %c9_i32 = arith.constant 9 : i32
    %251 = vector.broadcast %c9_i32 : i32 to vector<10x37xi32>
    %252 = arith.addi %250, %251 : vector<10x37xi32>
    %253 = arith.cmpi eq, %248, %252 : vector<10x37xi32>
    %cst_126 = arith.constant 1.000000e+00 : f32
    %cst_127 = arith.constant 0.000000e+00 : f32
    %254 = vector.broadcast %cst_126 : f32 to vector<10x37xf32>
    %255 = vector.broadcast %cst_127 : f32 to vector<10x37xf32>
    %256 = arith.select %253, %254, %255 : vector<10x37xi1>, vector<10x37xf32>
    %cst_128 = arith.constant dense<0.000000e+00> : vector<8x37xf32>
    %257 = tpu.matmul %246, %256, %cst_128 {dimension_numbers = #tpu.dot_dimension_numbers<[1], [0], [0], [1], [0, 0, 1, 1], [], []>} : vector<8x10xf32>, vector<10x37xf32>, vector<8x37xf32> -> vector<8x37xf32>
    %cst_129 = arith.constant 0.000000e+00 : f32
    %258 = vector.broadcast %cst_129 : f32 to vector<16x28xf32>
    %c0_130 = arith.constant 0 : index
    %c0_131 = arith.constant 0 : index
    %c0_132 = arith.constant 0 : index
    %259 = vector.load %arg8[%c0_130, %c0_131, %c0_132] : memref<10x16x8xf32, #tpu.memory_space<vmem>>, vector<1x16x8xf32>
    %260 = vector.shape_cast %259 : vector<1x16x8xf32> to vector<16x8xf32>
    %261 = vector.extract_strided_slice %257 {offsets = [0, 0], sizes = [8, 28], strides = [1, 1]} : vector<8x37xf32> to vector<8x28xf32>
    %cst_133 = arith.constant dense<0.000000e+00> : vector<16x28xf32>
    %262 = tpu.matmul %260, %261, %cst_133 {dimension_numbers = #tpu.dot_dimension_numbers<[1], [0], [0], [1], [0, 0, 1, 1], [], []>} : vector<16x8xf32>, vector<8x28xf32>, vector<16x28xf32> -> vector<16x28xf32>
    %263 = arith.addf %258, %262 : vector<16x28xf32>
    %c1_134 = arith.constant 1 : index
    %c0_135 = arith.constant 0 : index
    %c0_136 = arith.constant 0 : index
    %264 = vector.load %arg8[%c1_134, %c0_135, %c0_136] : memref<10x16x8xf32, #tpu.memory_space<vmem>>, vector<1x16x8xf32>
    %265 = vector.shape_cast %264 : vector<1x16x8xf32> to vector<16x8xf32>
    %266 = vector.extract_strided_slice %257 {offsets = [0, 1], sizes = [8, 28], strides = [1, 1]} : vector<8x37xf32> to vector<8x28xf32>
    %cst_137 = arith.constant dense<0.000000e+00> : vector<16x28xf32>
    %267 = tpu.matmul %265, %266, %cst_137 {dimension_numbers = #tpu.dot_dimension_numbers<[1], [0], [0], [1], [0, 0, 1, 1], [], []>} : vector<16x8xf32>, vector<8x28xf32>, vector<16x28xf32> -> vector<16x28xf32>
    %268 = arith.addf %263, %267 : vector<16x28xf32>
    %c2_138 = arith.constant 2 : index
    %c0_139 = arith.constant 0 : index
    %c0_140 = arith.constant 0 : index
    %269 = vector.load %arg8[%c2_138, %c0_139, %c0_140] : memref<10x16x8xf32, #tpu.memory_space<vmem>>, vector<1x16x8xf32>
    %270 = vector.shape_cast %269 : vector<1x16x8xf32> to vector<16x8xf32>
    %271 = vector.extract_strided_slice %257 {offsets = [0, 2], sizes = [8, 28], strides = [1, 1]} : vector<8x37xf32> to vector<8x28xf32>
    %cst_141 = arith.constant dense<0.000000e+00> : vector<16x28xf32>
    %272 = tpu.matmul %270, %271, %cst_141 {dimension_numbers = #tpu.dot_dimension_numbers<[1], [0], [0], [1], [0, 0, 1, 1], [], []>} : vector<16x8xf32>, vector<8x28xf32>, vector<16x28xf32> -> vector<16x28xf32>
    %273 = arith.addf %268, %272 : vector<16x28xf32>
    %c3_142 = arith.constant 3 : index
    %c0_143 = arith.constant 0 : index
    %c0_144 = arith.constant 0 : index
    %274 = vector.load %arg8[%c3_142, %c0_143, %c0_144] : memref<10x16x8xf32, #tpu.memory_space<vmem>>, vector<1x16x8xf32>
    %275 = vector.shape_cast %274 : vector<1x16x8xf32> to vector<16x8xf32>
    %276 = vector.extract_strided_slice %257 {offsets = [0, 3], sizes = [8, 28], strides = [1, 1]} : vector<8x37xf32> to vector<8x28xf32>
    %cst_145 = arith.constant dense<0.000000e+00> : vector<16x28xf32>
    %277 = tpu.matmul %275, %276, %cst_145 {dimension_numbers = #tpu.dot_dimension_numbers<[1], [0], [0], [1], [0, 0, 1, 1], [], []>} : vector<16x8xf32>, vector<8x28xf32>, vector<16x28xf32> -> vector<16x28xf32>
    %278 = arith.addf %273, %277 : vector<16x28xf32>
    %c4_146 = arith.constant 4 : index
    %c0_147 = arith.constant 0 : index
    %c0_148 = arith.constant 0 : index
    %279 = vector.load %arg8[%c4_146, %c0_147, %c0_148] : memref<10x16x8xf32, #tpu.memory_space<vmem>>, vector<1x16x8xf32>
    %280 = vector.shape_cast %279 : vector<1x16x8xf32> to vector<16x8xf32>
    %281 = vector.extract_strided_slice %257 {offsets = [0, 4], sizes = [8, 28], strides = [1, 1]} : vector<8x37xf32> to vector<8x28xf32>
    %cst_149 = arith.constant dense<0.000000e+00> : vector<16x28xf32>
    %282 = tpu.matmul %280, %281, %cst_149 {dimension_numbers = #tpu.dot_dimension_numbers<[1], [0], [0], [1], [0, 0, 1, 1], [], []>} : vector<16x8xf32>, vector<8x28xf32>, vector<16x28xf32> -> vector<16x28xf32>
    %283 = arith.addf %278, %282 : vector<16x28xf32>
    %c5_150 = arith.constant 5 : index
    %c0_151 = arith.constant 0 : index
    %c0_152 = arith.constant 0 : index
    %284 = vector.load %arg8[%c5_150, %c0_151, %c0_152] : memref<10x16x8xf32, #tpu.memory_space<vmem>>, vector<1x16x8xf32>
    %285 = vector.shape_cast %284 : vector<1x16x8xf32> to vector<16x8xf32>
    %286 = vector.extract_strided_slice %257 {offsets = [0, 5], sizes = [8, 28], strides = [1, 1]} : vector<8x37xf32> to vector<8x28xf32>
    %cst_153 = arith.constant dense<0.000000e+00> : vector<16x28xf32>
    %287 = tpu.matmul %285, %286, %cst_153 {dimension_numbers = #tpu.dot_dimension_numbers<[1], [0], [0], [1], [0, 0, 1, 1], [], []>} : vector<16x8xf32>, vector<8x28xf32>, vector<16x28xf32> -> vector<16x28xf32>
    %288 = arith.addf %283, %287 : vector<16x28xf32>
    %c6_154 = arith.constant 6 : index
    %c0_155 = arith.constant 0 : index
    %c0_156 = arith.constant 0 : index
    %289 = vector.load %arg8[%c6_154, %c0_155, %c0_156] : memref<10x16x8xf32, #tpu.memory_space<vmem>>, vector<1x16x8xf32>
    %290 = vector.shape_cast %289 : vector<1x16x8xf32> to vector<16x8xf32>
    %291 = vector.extract_strided_slice %257 {offsets = [0, 6], sizes = [8, 28], strides = [1, 1]} : vector<8x37xf32> to vector<8x28xf32>
    %cst_157 = arith.constant dense<0.000000e+00> : vector<16x28xf32>
    %292 = tpu.matmul %290, %291, %cst_157 {dimension_numbers = #tpu.dot_dimension_numbers<[1], [0], [0], [1], [0, 0, 1, 1], [], []>} : vector<16x8xf32>, vector<8x28xf32>, vector<16x28xf32> -> vector<16x28xf32>
    %293 = arith.addf %288, %292 : vector<16x28xf32>
    %c7_158 = arith.constant 7 : index
    %c0_159 = arith.constant 0 : index
    %c0_160 = arith.constant 0 : index
    %294 = vector.load %arg8[%c7_158, %c0_159, %c0_160] : memref<10x16x8xf32, #tpu.memory_space<vmem>>, vector<1x16x8xf32>
    %295 = vector.shape_cast %294 : vector<1x16x8xf32> to vector<16x8xf32>
    %296 = vector.extract_strided_slice %257 {offsets = [0, 7], sizes = [8, 28], strides = [1, 1]} : vector<8x37xf32> to vector<8x28xf32>
    %cst_161 = arith.constant dense<0.000000e+00> : vector<16x28xf32>
    %297 = tpu.matmul %295, %296, %cst_161 {dimension_numbers = #tpu.dot_dimension_numbers<[1], [0], [0], [1], [0, 0, 1, 1], [], []>} : vector<16x8xf32>, vector<8x28xf32>, vector<16x28xf32> -> vector<16x28xf32>
    %298 = arith.addf %293, %297 : vector<16x28xf32>
    %c8_162 = arith.constant 8 : index
    %c0_163 = arith.constant 0 : index
    %c0_164 = arith.constant 0 : index
    %299 = vector.load %arg8[%c8_162, %c0_163, %c0_164] : memref<10x16x8xf32, #tpu.memory_space<vmem>>, vector<1x16x8xf32>
    %300 = vector.shape_cast %299 : vector<1x16x8xf32> to vector<16x8xf32>
    %301 = vector.extract_strided_slice %257 {offsets = [0, 8], sizes = [8, 28], strides = [1, 1]} : vector<8x37xf32> to vector<8x28xf32>
    %cst_165 = arith.constant dense<0.000000e+00> : vector<16x28xf32>
    %302 = tpu.matmul %300, %301, %cst_165 {dimension_numbers = #tpu.dot_dimension_numbers<[1], [0], [0], [1], [0, 0, 1, 1], [], []>} : vector<16x8xf32>, vector<8x28xf32>, vector<16x28xf32> -> vector<16x28xf32>
    %303 = arith.addf %298, %302 : vector<16x28xf32>
    %c9 = arith.constant 9 : index
    %c0_166 = arith.constant 0 : index
    %c0_167 = arith.constant 0 : index
    %304 = vector.load %arg8[%c9, %c0_166, %c0_167] : memref<10x16x8xf32, #tpu.memory_space<vmem>>, vector<1x16x8xf32>
    %305 = vector.shape_cast %304 : vector<1x16x8xf32> to vector<16x8xf32>
    %306 = vector.extract_strided_slice %257 {offsets = [0, 9], sizes = [8, 28], strides = [1, 1]} : vector<8x37xf32> to vector<8x28xf32>
    %cst_168 = arith.constant dense<0.000000e+00> : vector<16x28xf32>
    %307 = tpu.matmul %305, %306, %cst_168 {dimension_numbers = #tpu.dot_dimension_numbers<[1], [0], [0], [1], [0, 0, 1, 1], [], []>} : vector<16x8xf32>, vector<8x28xf32>, vector<16x28xf32> -> vector<16x28xf32>
    %308 = arith.addf %303, %307 : vector<16x28xf32>
    %c0_169 = arith.constant 0 : index
    %c0_170 = arith.constant 0 : index
    %309 = vector.load %arg9[%c0_169, %c0_170] : memref<16x1xf32, #tpu.memory_space<vmem>>, vector<16x1xf32>
    %310 = vector.broadcast %309 : vector<16x1xf32> to vector<16x28xf32>
    %311 = arith.addf %308, %310 : vector<16x28xf32>
    %cst_171 = arith.constant 0.000000e+00 : f32
    %312 = vector.broadcast %cst_171 : f32 to vector<16x28xf32>
    %313 = arith.subf %312, %311 : vector<16x28xf32>
    %314 = math.exp %313 : vector<16x28xf32>
    %cst_172 = arith.constant 1.000000e+00 : f32
    %315 = vector.broadcast %cst_172 : f32 to vector<16x28xf32>
    %316 = arith.addf %315, %314 : vector<16x28xf32>
    %cst_173 = arith.constant 1.000000e+00 : f32
    %317 = vector.broadcast %cst_173 : f32 to vector<16x28xf32>
    %318 = arith.divf %317, %316 : vector<16x28xf32>
    %319 = tpu.iota {dimensions = array<i32: 0>} : vector<28x75xi32>
    %320 = tpu.iota {dimensions = array<i32: 1>} : vector<28x75xi32>
    %c2_i32_174 = arith.constant 2 : i32
    %321 = vector.broadcast %c2_i32_174 : i32 to vector<28x75xi32>
    %322 = arith.muli %321, %319 : vector<28x75xi32>
    %c10_i32 = arith.constant 10 : i32
    %323 = vector.broadcast %c10_i32 : i32 to vector<28x75xi32>
    %324 = arith.addi %322, %323 : vector<28x75xi32>
    %325 = arith.cmpi eq, %320, %324 : vector<28x75xi32>
    %cst_175 = arith.constant 1.000000e+00 : f32
    %cst_176 = arith.constant 0.000000e+00 : f32
    %326 = vector.broadcast %cst_175 : f32 to vector<28x75xf32>
    %327 = vector.broadcast %cst_176 : f32 to vector<28x75xf32>
    %328 = arith.select %325, %326, %327 : vector<28x75xi1>, vector<28x75xf32>
    %cst_177 = arith.constant dense<0.000000e+00> : vector<16x75xf32>
    %329 = tpu.matmul %318, %328, %cst_177 {dimension_numbers = #tpu.dot_dimension_numbers<[1], [0], [0], [1], [0, 0, 1, 1], [], []>} : vector<16x28xf32>, vector<28x75xf32>, vector<16x75xf32> -> vector<16x75xf32>
    %cst_178 = arith.constant 0.000000e+00 : f32
    %330 = vector.broadcast %cst_178 : f32 to vector<8x65xf32>
    %c0_179 = arith.constant 0 : index
    %c0_180 = arith.constant 0 : index
    %c0_181 = arith.constant 0 : index
    %331 = vector.load %arg10[%c0_179, %c0_180, %c0_181] : memref<11x8x16xf32, #tpu.memory_space<vmem>>, vector<1x8x16xf32>
    %332 = vector.shape_cast %331 : vector<1x8x16xf32> to vector<8x16xf32>
    %333 = vector.extract_strided_slice %329 {offsets = [0, 0], sizes = [16, 65], strides = [1, 1]} : vector<16x75xf32> to vector<16x65xf32>
    %cst_182 = arith.constant dense<0.000000e+00> : vector<8x65xf32>
    %334 = tpu.matmul %332, %333, %cst_182 {dimension_numbers = #tpu.dot_dimension_numbers<[1], [0], [0], [1], [0, 0, 1, 1], [], []>} : vector<8x16xf32>, vector<16x65xf32>, vector<8x65xf32> -> vector<8x65xf32>
    %335 = arith.addf %330, %334 : vector<8x65xf32>
    %c1_183 = arith.constant 1 : index
    %c0_184 = arith.constant 0 : index
    %c0_185 = arith.constant 0 : index
    %336 = vector.load %arg10[%c1_183, %c0_184, %c0_185] : memref<11x8x16xf32, #tpu.memory_space<vmem>>, vector<1x8x16xf32>
    %337 = vector.shape_cast %336 : vector<1x8x16xf32> to vector<8x16xf32>
    %338 = vector.extract_strided_slice %329 {offsets = [0, 1], sizes = [16, 65], strides = [1, 1]} : vector<16x75xf32> to vector<16x65xf32>
    %cst_186 = arith.constant dense<0.000000e+00> : vector<8x65xf32>
    %339 = tpu.matmul %337, %338, %cst_186 {dimension_numbers = #tpu.dot_dimension_numbers<[1], [0], [0], [1], [0, 0, 1, 1], [], []>} : vector<8x16xf32>, vector<16x65xf32>, vector<8x65xf32> -> vector<8x65xf32>
    %340 = arith.addf %335, %339 : vector<8x65xf32>
    %c2_187 = arith.constant 2 : index
    %c0_188 = arith.constant 0 : index
    %c0_189 = arith.constant 0 : index
    %341 = vector.load %arg10[%c2_187, %c0_188, %c0_189] : memref<11x8x16xf32, #tpu.memory_space<vmem>>, vector<1x8x16xf32>
    %342 = vector.shape_cast %341 : vector<1x8x16xf32> to vector<8x16xf32>
    %343 = vector.extract_strided_slice %329 {offsets = [0, 2], sizes = [16, 65], strides = [1, 1]} : vector<16x75xf32> to vector<16x65xf32>
    %cst_190 = arith.constant dense<0.000000e+00> : vector<8x65xf32>
    %344 = tpu.matmul %342, %343, %cst_190 {dimension_numbers = #tpu.dot_dimension_numbers<[1], [0], [0], [1], [0, 0, 1, 1], [], []>} : vector<8x16xf32>, vector<16x65xf32>, vector<8x65xf32> -> vector<8x65xf32>
    %345 = arith.addf %340, %344 : vector<8x65xf32>
    %c3_191 = arith.constant 3 : index
    %c0_192 = arith.constant 0 : index
    %c0_193 = arith.constant 0 : index
    %346 = vector.load %arg10[%c3_191, %c0_192, %c0_193] : memref<11x8x16xf32, #tpu.memory_space<vmem>>, vector<1x8x16xf32>
    %347 = vector.shape_cast %346 : vector<1x8x16xf32> to vector<8x16xf32>
    %348 = vector.extract_strided_slice %329 {offsets = [0, 3], sizes = [16, 65], strides = [1, 1]} : vector<16x75xf32> to vector<16x65xf32>
    %cst_194 = arith.constant dense<0.000000e+00> : vector<8x65xf32>
    %349 = tpu.matmul %347, %348, %cst_194 {dimension_numbers = #tpu.dot_dimension_numbers<[1], [0], [0], [1], [0, 0, 1, 1], [], []>} : vector<8x16xf32>, vector<16x65xf32>, vector<8x65xf32> -> vector<8x65xf32>
    %350 = arith.addf %345, %349 : vector<8x65xf32>
    %c4_195 = arith.constant 4 : index
    %c0_196 = arith.constant 0 : index
    %c0_197 = arith.constant 0 : index
    %351 = vector.load %arg10[%c4_195, %c0_196, %c0_197] : memref<11x8x16xf32, #tpu.memory_space<vmem>>, vector<1x8x16xf32>
    %352 = vector.shape_cast %351 : vector<1x8x16xf32> to vector<8x16xf32>
    %353 = vector.extract_strided_slice %329 {offsets = [0, 4], sizes = [16, 65], strides = [1, 1]} : vector<16x75xf32> to vector<16x65xf32>
    %cst_198 = arith.constant dense<0.000000e+00> : vector<8x65xf32>
    %354 = tpu.matmul %352, %353, %cst_198 {dimension_numbers = #tpu.dot_dimension_numbers<[1], [0], [0], [1], [0, 0, 1, 1], [], []>} : vector<8x16xf32>, vector<16x65xf32>, vector<8x65xf32> -> vector<8x65xf32>
    %355 = arith.addf %350, %354 : vector<8x65xf32>
    %c5_199 = arith.constant 5 : index
    %c0_200 = arith.constant 0 : index
    %c0_201 = arith.constant 0 : index
    %356 = vector.load %arg10[%c5_199, %c0_200, %c0_201] : memref<11x8x16xf32, #tpu.memory_space<vmem>>, vector<1x8x16xf32>
    %357 = vector.shape_cast %356 : vector<1x8x16xf32> to vector<8x16xf32>
    %358 = vector.extract_strided_slice %329 {offsets = [0, 5], sizes = [16, 65], strides = [1, 1]} : vector<16x75xf32> to vector<16x65xf32>
    %cst_202 = arith.constant dense<0.000000e+00> : vector<8x65xf32>
    %359 = tpu.matmul %357, %358, %cst_202 {dimension_numbers = #tpu.dot_dimension_numbers<[1], [0], [0], [1], [0, 0, 1, 1], [], []>} : vector<8x16xf32>, vector<16x65xf32>, vector<8x65xf32> -> vector<8x65xf32>
    %360 = arith.addf %355, %359 : vector<8x65xf32>
    %c6_203 = arith.constant 6 : index
    %c0_204 = arith.constant 0 : index
    %c0_205 = arith.constant 0 : index
    %361 = vector.load %arg10[%c6_203, %c0_204, %c0_205] : memref<11x8x16xf32, #tpu.memory_space<vmem>>, vector<1x8x16xf32>
    %362 = vector.shape_cast %361 : vector<1x8x16xf32> to vector<8x16xf32>
    %363 = vector.extract_strided_slice %329 {offsets = [0, 6], sizes = [16, 65], strides = [1, 1]} : vector<16x75xf32> to vector<16x65xf32>
    %cst_206 = arith.constant dense<0.000000e+00> : vector<8x65xf32>
    %364 = tpu.matmul %362, %363, %cst_206 {dimension_numbers = #tpu.dot_dimension_numbers<[1], [0], [0], [1], [0, 0, 1, 1], [], []>} : vector<8x16xf32>, vector<16x65xf32>, vector<8x65xf32> -> vector<8x65xf32>
    %365 = arith.addf %360, %364 : vector<8x65xf32>
    %c7_207 = arith.constant 7 : index
    %c0_208 = arith.constant 0 : index
    %c0_209 = arith.constant 0 : index
    %366 = vector.load %arg10[%c7_207, %c0_208, %c0_209] : memref<11x8x16xf32, #tpu.memory_space<vmem>>, vector<1x8x16xf32>
    %367 = vector.shape_cast %366 : vector<1x8x16xf32> to vector<8x16xf32>
    %368 = vector.extract_strided_slice %329 {offsets = [0, 7], sizes = [16, 65], strides = [1, 1]} : vector<16x75xf32> to vector<16x65xf32>
    %cst_210 = arith.constant dense<0.000000e+00> : vector<8x65xf32>
    %369 = tpu.matmul %367, %368, %cst_210 {dimension_numbers = #tpu.dot_dimension_numbers<[1], [0], [0], [1], [0, 0, 1, 1], [], []>} : vector<8x16xf32>, vector<16x65xf32>, vector<8x65xf32> -> vector<8x65xf32>
    %370 = arith.addf %365, %369 : vector<8x65xf32>
    %c8_211 = arith.constant 8 : index
    %c0_212 = arith.constant 0 : index
    %c0_213 = arith.constant 0 : index
    %371 = vector.load %arg10[%c8_211, %c0_212, %c0_213] : memref<11x8x16xf32, #tpu.memory_space<vmem>>, vector<1x8x16xf32>
    %372 = vector.shape_cast %371 : vector<1x8x16xf32> to vector<8x16xf32>
    %373 = vector.extract_strided_slice %329 {offsets = [0, 8], sizes = [16, 65], strides = [1, 1]} : vector<16x75xf32> to vector<16x65xf32>
    %cst_214 = arith.constant dense<0.000000e+00> : vector<8x65xf32>
    %374 = tpu.matmul %372, %373, %cst_214 {dimension_numbers = #tpu.dot_dimension_numbers<[1], [0], [0], [1], [0, 0, 1, 1], [], []>} : vector<8x16xf32>, vector<16x65xf32>, vector<8x65xf32> -> vector<8x65xf32>
    %375 = arith.addf %370, %374 : vector<8x65xf32>
    %c9_215 = arith.constant 9 : index
    %c0_216 = arith.constant 0 : index
    %c0_217 = arith.constant 0 : index
    %376 = vector.load %arg10[%c9_215, %c0_216, %c0_217] : memref<11x8x16xf32, #tpu.memory_space<vmem>>, vector<1x8x16xf32>
    %377 = vector.shape_cast %376 : vector<1x8x16xf32> to vector<8x16xf32>
    %378 = vector.extract_strided_slice %329 {offsets = [0, 9], sizes = [16, 65], strides = [1, 1]} : vector<16x75xf32> to vector<16x65xf32>
    %cst_218 = arith.constant dense<0.000000e+00> : vector<8x65xf32>
    %379 = tpu.matmul %377, %378, %cst_218 {dimension_numbers = #tpu.dot_dimension_numbers<[1], [0], [0], [1], [0, 0, 1, 1], [], []>} : vector<8x16xf32>, vector<16x65xf32>, vector<8x65xf32> -> vector<8x65xf32>
    %380 = arith.addf %375, %379 : vector<8x65xf32>
    %c10 = arith.constant 10 : index
    %c0_219 = arith.constant 0 : index
    %c0_220 = arith.constant 0 : index
    %381 = vector.load %arg10[%c10, %c0_219, %c0_220] : memref<11x8x16xf32, #tpu.memory_space<vmem>>, vector<1x8x16xf32>
    %382 = vector.shape_cast %381 : vector<1x8x16xf32> to vector<8x16xf32>
    %383 = vector.extract_strided_slice %329 {offsets = [0, 10], sizes = [16, 65], strides = [1, 1]} : vector<16x75xf32> to vector<16x65xf32>
    %cst_221 = arith.constant dense<0.000000e+00> : vector<8x65xf32>
    %384 = tpu.matmul %382, %383, %cst_221 {dimension_numbers = #tpu.dot_dimension_numbers<[1], [0], [0], [1], [0, 0, 1, 1], [], []>} : vector<8x16xf32>, vector<16x65xf32>, vector<8x65xf32> -> vector<8x65xf32>
    %385 = arith.addf %380, %384 : vector<8x65xf32>
    %c0_222 = arith.constant 0 : index
    %c0_223 = arith.constant 0 : index
    %386 = vector.load %arg11[%c0_222, %c0_223] : memref<8x1xf32, #tpu.memory_space<vmem>>, vector<8x1xf32>
    %387 = vector.broadcast %386 : vector<8x1xf32> to vector<8x65xf32>
    %388 = arith.addf %385, %387 : vector<8x65xf32>
    %cst_224 = arith.constant 0.000000e+00 : f32
    %389 = vector.broadcast %cst_224 : f32 to vector<8x65xf32>
    %390 = arith.subf %389, %388 : vector<8x65xf32>
    %391 = math.exp %390 : vector<8x65xf32>
    %cst_225 = arith.constant 1.000000e+00 : f32
    %392 = vector.broadcast %cst_225 : f32 to vector<8x65xf32>
    %393 = arith.addf %392, %391 : vector<8x65xf32>
    %cst_226 = arith.constant 1.000000e+00 : f32
    %394 = vector.broadcast %cst_226 : f32 to vector<8x65xf32>
    %395 = arith.divf %394, %393 : vector<8x65xf32>
    %396 = tpu.iota {dimensions = array<i32: 0>} : vector<65x83xi32>
    %397 = tpu.iota {dimensions = array<i32: 1>} : vector<65x83xi32>
    %c1_i32_227 = arith.constant 1 : i32
    %398 = vector.broadcast %c1_i32_227 : i32 to vector<65x83xi32>
    %399 = arith.muli %398, %396 : vector<65x83xi32>
    %c9_i32_228 = arith.constant 9 : i32
    %400 = vector.broadcast %c9_i32_228 : i32 to vector<65x83xi32>
    %401 = arith.addi %399, %400 : vector<65x83xi32>
    %402 = arith.cmpi eq, %397, %401 : vector<65x83xi32>
    %cst_229 = arith.constant 1.000000e+00 : f32
    %cst_230 = arith.constant 0.000000e+00 : f32
    %403 = vector.broadcast %cst_229 : f32 to vector<65x83xf32>
    %404 = vector.broadcast %cst_230 : f32 to vector<65x83xf32>
    %405 = arith.select %402, %403, %404 : vector<65x83xi1>, vector<65x83xf32>
    %cst_231 = arith.constant dense<0.000000e+00> : vector<8x83xf32>
    %406 = tpu.matmul %395, %405, %cst_231 {dimension_numbers = #tpu.dot_dimension_numbers<[1], [0], [0], [1], [0, 0, 1, 1], [], []>} : vector<8x65xf32>, vector<65x83xf32>, vector<8x83xf32> -> vector<8x83xf32>
    %cst_232 = arith.constant 0.000000e+00 : f32
    %407 = vector.broadcast %cst_232 : f32 to vector<1x74xf32>
    %c0_233 = arith.constant 0 : index
    %c0_234 = arith.constant 0 : index
    %c0_235 = arith.constant 0 : index
    %408 = vector.load %arg12[%c0_233, %c0_234, %c0_235] : memref<10x1x8xf32, #tpu.memory_space<vmem>>, vector<1x1x8xf32>
    %409 = vector.shape_cast %408 : vector<1x1x8xf32> to vector<1x8xf32>
    %410 = vector.extract_strided_slice %406 {offsets = [0, 0], sizes = [8, 74], strides = [1, 1]} : vector<8x83xf32> to vector<8x74xf32>
    %cst_236 = arith.constant dense<0.000000e+00> : vector<1x74xf32>
    %411 = tpu.matmul %409, %410, %cst_236 {dimension_numbers = #tpu.dot_dimension_numbers<[1], [0], [0], [1], [0, 0, 1, 1], [], []>} : vector<1x8xf32>, vector<8x74xf32>, vector<1x74xf32> -> vector<1x74xf32>
    %412 = arith.addf %407, %411 : vector<1x74xf32>
    %c1_237 = arith.constant 1 : index
    %c0_238 = arith.constant 0 : index
    %c0_239 = arith.constant 0 : index
    %413 = vector.load %arg12[%c1_237, %c0_238, %c0_239] : memref<10x1x8xf32, #tpu.memory_space<vmem>>, vector<1x1x8xf32>
    %414 = vector.shape_cast %413 : vector<1x1x8xf32> to vector<1x8xf32>
    %415 = vector.extract_strided_slice %406 {offsets = [0, 1], sizes = [8, 74], strides = [1, 1]} : vector<8x83xf32> to vector<8x74xf32>
    %cst_240 = arith.constant dense<0.000000e+00> : vector<1x74xf32>
    %416 = tpu.matmul %414, %415, %cst_240 {dimension_numbers = #tpu.dot_dimension_numbers<[1], [0], [0], [1], [0, 0, 1, 1], [], []>} : vector<1x8xf32>, vector<8x74xf32>, vector<1x74xf32> -> vector<1x74xf32>
    %417 = arith.addf %412, %416 : vector<1x74xf32>
    %c2_241 = arith.constant 2 : index
    %c0_242 = arith.constant 0 : index
    %c0_243 = arith.constant 0 : index
    %418 = vector.load %arg12[%c2_241, %c0_242, %c0_243] : memref<10x1x8xf32, #tpu.memory_space<vmem>>, vector<1x1x8xf32>
    %419 = vector.shape_cast %418 : vector<1x1x8xf32> to vector<1x8xf32>
    %420 = vector.extract_strided_slice %406 {offsets = [0, 2], sizes = [8, 74], strides = [1, 1]} : vector<8x83xf32> to vector<8x74xf32>
    %cst_244 = arith.constant dense<0.000000e+00> : vector<1x74xf32>
    %421 = tpu.matmul %419, %420, %cst_244 {dimension_numbers = #tpu.dot_dimension_numbers<[1], [0], [0], [1], [0, 0, 1, 1], [], []>} : vector<1x8xf32>, vector<8x74xf32>, vector<1x74xf32> -> vector<1x74xf32>
    %422 = arith.addf %417, %421 : vector<1x74xf32>
    %c3_245 = arith.constant 3 : index
    %c0_246 = arith.constant 0 : index
    %c0_247 = arith.constant 0 : index
    %423 = vector.load %arg12[%c3_245, %c0_246, %c0_247] : memref<10x1x8xf32, #tpu.memory_space<vmem>>, vector<1x1x8xf32>
    %424 = vector.shape_cast %423 : vector<1x1x8xf32> to vector<1x8xf32>
    %425 = vector.extract_strided_slice %406 {offsets = [0, 3], sizes = [8, 74], strides = [1, 1]} : vector<8x83xf32> to vector<8x74xf32>
    %cst_248 = arith.constant dense<0.000000e+00> : vector<1x74xf32>
    %426 = tpu.matmul %424, %425, %cst_248 {dimension_numbers = #tpu.dot_dimension_numbers<[1], [0], [0], [1], [0, 0, 1, 1], [], []>} : vector<1x8xf32>, vector<8x74xf32>, vector<1x74xf32> -> vector<1x74xf32>
    %427 = arith.addf %422, %426 : vector<1x74xf32>
    %c4_249 = arith.constant 4 : index
    %c0_250 = arith.constant 0 : index
    %c0_251 = arith.constant 0 : index
    %428 = vector.load %arg12[%c4_249, %c0_250, %c0_251] : memref<10x1x8xf32, #tpu.memory_space<vmem>>, vector<1x1x8xf32>
    %429 = vector.shape_cast %428 : vector<1x1x8xf32> to vector<1x8xf32>
    %430 = vector.extract_strided_slice %406 {offsets = [0, 4], sizes = [8, 74], strides = [1, 1]} : vector<8x83xf32> to vector<8x74xf32>
    %cst_252 = arith.constant dense<0.000000e+00> : vector<1x74xf32>
    %431 = tpu.matmul %429, %430, %cst_252 {dimension_numbers = #tpu.dot_dimension_numbers<[1], [0], [0], [1], [0, 0, 1, 1], [], []>} : vector<1x8xf32>, vector<8x74xf32>, vector<1x74xf32> -> vector<1x74xf32>
    %432 = arith.addf %427, %431 : vector<1x74xf32>
    %c5_253 = arith.constant 5 : index
    %c0_254 = arith.constant 0 : index
    %c0_255 = arith.constant 0 : index
    %433 = vector.load %arg12[%c5_253, %c0_254, %c0_255] : memref<10x1x8xf32, #tpu.memory_space<vmem>>, vector<1x1x8xf32>
    %434 = vector.shape_cast %433 : vector<1x1x8xf32> to vector<1x8xf32>
    %435 = vector.extract_strided_slice %406 {offsets = [0, 5], sizes = [8, 74], strides = [1, 1]} : vector<8x83xf32> to vector<8x74xf32>
    %cst_256 = arith.constant dense<0.000000e+00> : vector<1x74xf32>
    %436 = tpu.matmul %434, %435, %cst_256 {dimension_numbers = #tpu.dot_dimension_numbers<[1], [0], [0], [1], [0, 0, 1, 1], [], []>} : vector<1x8xf32>, vector<8x74xf32>, vector<1x74xf32> -> vector<1x74xf32>
    %437 = arith.addf %432, %436 : vector<1x74xf32>
    %c6_257 = arith.constant 6 : index
    %c0_258 = arith.constant 0 : index
    %c0_259 = arith.constant 0 : index
    %438 = vector.load %arg12[%c6_257, %c0_258, %c0_259] : memref<10x1x8xf32, #tpu.memory_space<vmem>>, vector<1x1x8xf32>
    %439 = vector.shape_cast %438 : vector<1x1x8xf32> to vector<1x8xf32>
    %440 = vector.extract_strided_slice %406 {offsets = [0, 6], sizes = [8, 74], strides = [1, 1]} : vector<8x83xf32> to vector<8x74xf32>
    %cst_260 = arith.constant dense<0.000000e+00> : vector<1x74xf32>
    %441 = tpu.matmul %439, %440, %cst_260 {dimension_numbers = #tpu.dot_dimension_numbers<[1], [0], [0], [1], [0, 0, 1, 1], [], []>} : vector<1x8xf32>, vector<8x74xf32>, vector<1x74xf32> -> vector<1x74xf32>
    %442 = arith.addf %437, %441 : vector<1x74xf32>
    %c7_261 = arith.constant 7 : index
    %c0_262 = arith.constant 0 : index
    %c0_263 = arith.constant 0 : index
    %443 = vector.load %arg12[%c7_261, %c0_262, %c0_263] : memref<10x1x8xf32, #tpu.memory_space<vmem>>, vector<1x1x8xf32>
    %444 = vector.shape_cast %443 : vector<1x1x8xf32> to vector<1x8xf32>
    %445 = vector.extract_strided_slice %406 {offsets = [0, 7], sizes = [8, 74], strides = [1, 1]} : vector<8x83xf32> to vector<8x74xf32>
    %cst_264 = arith.constant dense<0.000000e+00> : vector<1x74xf32>
    %446 = tpu.matmul %444, %445, %cst_264 {dimension_numbers = #tpu.dot_dimension_numbers<[1], [0], [0], [1], [0, 0, 1, 1], [], []>} : vector<1x8xf32>, vector<8x74xf32>, vector<1x74xf32> -> vector<1x74xf32>
    %447 = arith.addf %442, %446 : vector<1x74xf32>
    %c8_265 = arith.constant 8 : index
    %c0_266 = arith.constant 0 : index
    %c0_267 = arith.constant 0 : index
    %448 = vector.load %arg12[%c8_265, %c0_266, %c0_267] : memref<10x1x8xf32, #tpu.memory_space<vmem>>, vector<1x1x8xf32>
    %449 = vector.shape_cast %448 : vector<1x1x8xf32> to vector<1x8xf32>
    %450 = vector.extract_strided_slice %406 {offsets = [0, 8], sizes = [8, 74], strides = [1, 1]} : vector<8x83xf32> to vector<8x74xf32>
    %cst_268 = arith.constant dense<0.000000e+00> : vector<1x74xf32>
    %451 = tpu.matmul %449, %450, %cst_268 {dimension_numbers = #tpu.dot_dimension_numbers<[1], [0], [0], [1], [0, 0, 1, 1], [], []>} : vector<1x8xf32>, vector<8x74xf32>, vector<1x74xf32> -> vector<1x74xf32>
    %452 = arith.addf %447, %451 : vector<1x74xf32>
    %c9_269 = arith.constant 9 : index
    %c0_270 = arith.constant 0 : index
    %c0_271 = arith.constant 0 : index
    %453 = vector.load %arg12[%c9_269, %c0_270, %c0_271] : memref<10x1x8xf32, #tpu.memory_space<vmem>>, vector<1x1x8xf32>
    %454 = vector.shape_cast %453 : vector<1x1x8xf32> to vector<1x8xf32>
    %455 = vector.extract_strided_slice %406 {offsets = [0, 9], sizes = [8, 74], strides = [1, 1]} : vector<8x83xf32> to vector<8x74xf32>
    %cst_272 = arith.constant dense<0.000000e+00> : vector<1x74xf32>
    %456 = tpu.matmul %454, %455, %cst_272 {dimension_numbers = #tpu.dot_dimension_numbers<[1], [0], [0], [1], [0, 0, 1, 1], [], []>} : vector<1x8xf32>, vector<8x74xf32>, vector<1x74xf32> -> vector<1x74xf32>
    %457 = arith.addf %452, %456 : vector<1x74xf32>
    %c0_273 = arith.constant 0 : index
    %c0_274 = arith.constant 0 : index
    %458 = vector.load %arg13[%c0_273, %c0_274] : memref<1x1xf32, #tpu.memory_space<vmem>>, vector<1x1xf32>
    %459 = vector.broadcast %458 : vector<1x1xf32> to vector<1x74xf32>
    %460 = arith.addf %457, %459 : vector<1x74xf32>
    %c0_275 = arith.constant 0 : index
    %c0_276 = arith.constant 0 : index
    %c0_277 = arith.constant 0 : index
    %461 = vector.load %arg14[%c0_275, %c0_276, %c0_277] : memref<1x1x74xf32, #tpu.memory_space<vmem>>, vector<1x1x74xf32>
    %462 = vector.shape_cast %461 : vector<1x1x74xf32> to vector<1x74xf32>
    %463 = vector.shape_cast %460 : vector<1x74xf32> to vector<1x1x74xf32>
    tpu.vector_store %arg14[%c0_275, %c0_276, %c0_277], %463 {strides = array<i32>} : memref<1x1x74xf32, #tpu.memory_space<vmem>>, vector<1x1x74xf32>,
    return
  }
  func.func @transform_0(%arg0: i32) -> (i32, i32, i32) {
    %c0_i32 = arith.constant 0 : i32
    %c0_i32_0 = arith.constant 0 : i32
    %c0_i32_1 = arith.constant 0 : i32
    return %arg0, %c0_i32, %c0_i32_0 : i32, i32, i32
  }
  func.func @transform_1(%arg0: i32) -> (i32, i32, i32) {
    %c0_i32 = arith.constant 0 : i32
    %c0_i32_0 = arith.constant 0 : i32
    %c0_i32_1 = arith.constant 0 : i32
    %c0_i32_2 = arith.constant 0 : i32
    return %c0_i32, %c0_i32_0, %c0_i32_1 : i32, i32, i32
  }
  func.func @transform_2(%arg0: i32) -> (i32, i32) {
    %c0_i32 = arith.constant 0 : i32
    %c0_i32_0 = arith.constant 0 : i32
    %c0_i32_1 = arith.constant 0 : i32
    return %c0_i32, %c0_i32_0 : i32, i32
  }
  func.func @transform_3(%arg0: i32) -> (i32, i32, i32) {
    %c0_i32 = arith.constant 0 : i32
    %c0_i32_0 = arith.constant 0 : i32
    %c0_i32_1 = arith.constant 0 : i32
    %c0_i32_2 = arith.constant 0 : i32
    return %c0_i32, %c0_i32_0, %c0_i32_1 : i32, i32, i32
  }
  func.func @transform_4(%arg0: i32) -> (i32, i32) {
    %c0_i32 = arith.constant 0 : i32
    %c0_i32_0 = arith.constant 0 : i32
    %c0_i32_1 = arith.constant 0 : i32
    return %c0_i32, %c0_i32_0 : i32, i32
  }
  func.func @transform_5(%arg0: i32) -> (i32, i32, i32) {
    %c0_i32 = arith.constant 0 : i32
    %c0_i32_0 = arith.constant 0 : i32
    %c0_i32_1 = arith.constant 0 : i32
    %c0_i32_2 = arith.constant 0 : i32
    return %c0_i32, %c0_i32_0, %c0_i32_1 : i32, i32, i32
  }
  func.func @transform_6(%arg0: i32) -> (i32, i32) {
    %c0_i32 = arith.constant 0 : i32
    %c0_i32_0 = arith.constant 0 : i32
    %c0_i32_1 = arith.constant 0 : i32
    return %c0_i32, %c0_i32_0 : i32, i32
  }
  func.func @transform_7(%arg0: i32) -> (i32, i32, i32) {
    %c0_i32 = arith.constant 0 : i32
    %c0_i32_0 = arith.constant 0 : i32
    %c0_i32_1 = arith.constant 0 : i32
    %c0_i32_2 = arith.constant 0 : i32
    return %c0_i32, %c0_i32_0, %c0_i32_1 : i32, i32, i32
  }
  func.func @transform_8(%arg0: i32) -> (i32, i32) {
    %c0_i32 = arith.constant 0 : i32
    %c0_i32_0 = arith.constant 0 : i32
    %c0_i32_1 = arith.constant 0 : i32
    return %c0_i32, %c0_i32_0 : i32, i32
  }
  func.func @transform_9(%arg0: i32) -> (i32, i32, i32) {
    %c0_i32 = arith.constant 0 : i32
    %c0_i32_0 = arith.constant 0 : i32
    %c0_i32_1 = arith.constant 0 : i32
    %c0_i32_2 = arith.constant 0 : i32
    return %c0_i32, %c0_i32_0, %c0_i32_1 : i32, i32, i32
  }
  func.func @transform_10(%arg0: i32) -> (i32, i32) {
    %c0_i32 = arith.constant 0 : i32
    %c0_i32_0 = arith.constant 0 : i32
    %c0_i32_1 = arith.constant 0 : i32
    return %c0_i32, %c0_i32_0 : i32, i32
  }
  func.func @transform_11(%arg0: i32) -> (i32, i32, i32) {
    %c0_i32 = arith.constant 0 : i32
    %c0_i32_0 = arith.constant 0 : i32
    %c0_i32_1 = arith.constant 0 : i32
    %c0_i32_2 = arith.constant 0 : i32
    return %c0_i32, %c0_i32_0, %c0_i32_1 : i32, i32, i32
  }
  func.func @transform_12(%arg0: i32) -> (i32, i32) {
    %c0_i32 = arith.constant 0 : i32
    %c0_i32_0 = arith.constant 0 : i32
    %c0_i32_1 = arith.constant 0 : i32
    return %c0_i32, %c0_i32_0 : i32, i32
  }
  func.func @transform_13(%arg0: i32) -> (i32, i32, i32) {
    %c0_i32 = arith.constant 0 : i32
    %c0_i32_0 = arith.constant 0 : i32
    %c0_i32_1 = arith.constant 0 : i32
    return %arg0, %c0_i32, %c0_i32_0 : i32, i32, i32
  }
}

</mosaic_0001>

<bundles_post_ra>
// kernel: autoencoder_cnn_forward.1
= control target key start
LH: loop header
LB: loop body
LE: loop exit
PB: predicated region body
PF: predicated region fallthrough
CT: control target
= control target key end

     0   :  { %s8327_s0 = inlined_call_operand.vmem [shape: f32[2,1,32], index: 0, kind: input, shape index: {}]   ;;  %s8328_s1 = inlined_call_operand.vmem [shape: f32[9,32,1], index: 1, kind: input, shape index: {}]   ;;  %s8329_s2 = inlined_call_operand.vmem [shape: f32[32,1], index: 2, kind: input, shape index: {}]   ;;  %s8330_s3 = inlined_call_operand.vmem [shape: f32[8,16,32], index: 3, kind: input, shape index: {}]   ;;  %s8331_s4 = inlined_call_operand.vmem [shape: f32[16,1], index: 4, kind: input, shape index: {}]   ;;  %s8332_s5 = inlined_call_operand.vmem [shape: f32[8,8,16], index: 5, kind: input, shape index: {}]   ;;  %s8333_s6 = inlined_call_operand.vmem [shape: f32[8,1], index: 6, kind: input, shape index: {}]   ;;  %s8334_s7 = inlined_call_operand.vmem [shape: f32[10,16,8], index: 7, kind: input, shape index: {}]   ;;  %s8335_s8 = inlined_call_operand.vmem [shape: f32[16,1], index: 8, kind: input, shape index: {}]   ;;  %s8336_s9 = inlined_call_operand.vmem [shape: f32[11,8,16], index: 9, kind: input, shape index: {}]   ;;  %s8337_s10 = inlined_call_operand.vmem [shape: f32[8,1], index: 10, kind: input, shape index: {}]   ;;  %s8338_s11 = inlined_call_operand.vmem [shape: f32[10,1,8], index: 11, kind: input, shape index: {}]   ;;  %s8339_s12 = inlined_call_operand.<no memory space> [shape: f32[1,1], index: 12, kind: input, shape index: {}]   ;;  %s8340_s13 = inlined_call_operand.hbm [shape: f32[2,1,74], index: 13, kind: output, shape index: {}]  }
   0x1   :  { %8357 = sst [smem:[#allocation7_spill]] %s8327_s0  ;;  %v18_v0 = vstv %s8339_s12 }
   0x2   :  { %8358 = sst [smem:[#allocation8_spill]] %s8328_s1  ;;  %19 = vst [vmem:[#allocation2] sm:$0x1] %v18_v0 }
   0x3   :  { %8359 = sst [smem:[#allocation9_spill]] %s8329_s2 }
   0x4   :  { %8360 = sst [smem:[#allocation10_spill]] %s8330_s3 }
   0x5   :  { %20 = vsyncpa [#allocation4], 0 }
   0x6   :  { %22 = vsyncpa [#allocation4 + $0x1], 0  ;;  %s7424_s27 = smov 0   ;;  %s7426_s28 = smov 0  }
   0x7   :  { %s7428_s29 = smov 0   ;;  %s7430_s30 = smov 0  }
   0x8 LB: > { %s7445_s12 = sadd.s32 4294967295, %s7332_s30   ;;  %s5951_s14 = sadd.s32 4294967294, %s7332_s30   ;;  %s7332_s30 = sphi %s7430_s30, %s8382_s30   ;;  %s7328_s29 = sphi %s7428_s29, %s8381_s29   ;;  %s7324_s28 = sphi %s7426_s28, %s8380_s28   ;;  %s7320_s27 = sphi %s7424_s27, %s8379_s27  }
   0x9   : > { %s7449_s15 = sadd.s32 1, %s7332_s30   ;;  %s313_s16 = sadd.s32 1, %s7328_s29 }
   0xa   : > { %s310_s17 = ssub.s32 %s7332_s30, %s7449_s15  ;;  %p323_p0 = scmp.ne.s32.totalorder %s7328_s29, %s7324_s28 }
   0xb   : > { %p311_p1 = scmp.eq.s32.totalorder %s310_s17, 0  ;;  %p324_p2 = scmp.eq.s32.totalorder %s7445_s12, 1 }
   0xc   : > { %p329_p3 = scmp.ne.s32.totalorder %s7324_s28, %s7320_s27  ;;  %p330_p4 = scmp.eq.s32.totalorder %s5951_s14, 1 }
   0xd   : > { %s7460_s18 = scalar_select %p311_p1, %s7328_s29, %s313_s16  }
   0xe   : > { %p7462_p5 = por %p324_p2, %p323_p0  ;;  %p7466_p6 = por %p330_p4, %p329_p3 }
   0xf   : > { %8361 = sst [smem:[#allocation6_spill]] %s7460_s18  ;;  %p5954_p7 = scmp.ge.s32.totalorder %s7332_s30, 1 }
  0x10   : > { %p390_p8 = scmp.lt.s32.totalorder %s7332_s30, 3 }
  0x12   : > { %p391_p9 = pnand %p5954_p7, %p390_p8 }
  0x13   : > { %v435_v1 = vlaneseq (!%p391_p9)  ;;  %s8364_s1 = sld [smem:[#allocation8_spill]] (!%p391_p9)  ;;  %v7334_v3 = vmov (!%p391_p9), 0.0|0.0   ;;  %vm7335_vm0 = vmmov (!%p391_p9), 0   ;;  %v7336_v7 = vmov (!%p391_p9), 0.0   ;;  %p431_p10 = scmp.lt.s32.totalorder (!%p391_p9), %s7445_s12, 1 }
  0x14   : > { %394 = sbr.rel (%p391_p9) target bundleno = 4539 (0x11bb), region = 72  ;;  %6802 = vmatprep.subr.bf16.mxu0 (!%p391_p9), %v7334_v3  ;;  %6384 = vmatprep.mubr.msk.f32.mxu0 (!%p391_p9), %vm7335_vm0, %v7336_v7  ;;  %v7337_v8 = vmov (!%p391_p9), 0   ;;  %v7338_v19 = vmov (!%p391_p9), 1.0|1.0   ;;  %s8365_s0 = sld [smem:[#allocation7_spill]] (!%p391_p9)  ;;  %vm453_vm7 = vcmask (!%p391_p9), 261120  }
  0x15   : > { %v7479_v5 = vshrl.u32 (!%p391_p9), %v435_v1, 7  ;;  %v7481_v6 = vand.u32 (!%p391_p9), 127, %v435_v1  ;;  %7073 = vset.pattern.permute.xlu0 (!%p391_p9), %v7337_v8  ;;  %7074 = vset.pattern.permute.xlu1 (!%p391_p9), %v7337_v8  ;;  %s8366_s2 = sld [smem:[#allocation9_spill]] (!%p391_p9)  ;;  %s8351_s18 = smov (!%p391_p9), 127   ;;  %vm1052_vm14 = vcmask (!%p391_p9), 1046528  }
  0x16   : > { %s8343_s26 = smov (!%p391_p9), 126   ;;  %s8349_s16 = smov (!%p391_p9), 124  }
  0x17   : > { %v7487_v9 = vadd.s32 (!%p391_p9), 8, %v7479_v5  ;;  %v7490_v10 = vadd.s32 (!%p391_p9), 16, %v7479_v5  ;;  %v7493_v11 = vadd.s32 (!%p391_p9), 24, %v7479_v5  ;;  %v553_v63 = vsub.s32 (!%p391_p9), 0, %v7479_v5  ;;  %s8347_s21 = smov (!%p391_p9), 123   ;;  %s8353_s22 = smov (!%p391_p9), 122  }
  0x18   : > { %s8345_s23 = smov (!%p391_p9), 121   ;;  %s8341_s24 = smov (!%p391_p9), 120  }
  0x19   : > { %v5960_v2 = vld [vmem:[%s8364_s1 + $0x20] sm:$0xff] (!%p391_p9)  ;;  %v5961_v12 = vld [vmem:[%s8364_s1 + $0x28] sm:$0xff] (!%p391_p9)  ;;  %v442_v14 = vadd.s32 (!%p391_p9), 8, %v7487_v9  ;;  %vm445_vm1 = vcmp.eq.s32.totalorder (!%p391_p9), %v7481_v6, %v7487_v9  ;;  %v443_v15 = vadd.s32 (!%p391_p9), 8, %v7490_v10  ;;  %v444_v16 = vadd.s32 (!%p391_p9), 8, %v7493_v11  ;;  %v5962_v17 = vld [vmem:[%s8364_s1 + $0x30] sm:$0xff] (!%p391_p9) }
  0x1a   : > { %v5964_v4 = vld [vmem:[%s8364_s1 + $0x40] sm:$0xff] (!%p391_p9)  ;;  %570 = vperm.xlu0 (!%p391_p9), %7073, %v5960_v2   ;;  %v5965_v13 = vld [vmem:[%s8364_s1 + $0x48] sm:$0xff] (!%p391_p9)  ;;  %v5963_v20 = vld [vmem:[%s8364_s1 + $0x38] sm:$0xff] (!%p391_p9)  ;;  %s8369_s3 = sld [smem:[#allocation10_spill]] (!%p391_p9)  ;;  %s8374_s25 = smov (!%p391_p9), 120  }
  0x1b   : > { %619 = vperm.xlu1 %7074, %v5964_v4   ;;  %s432_s17 = scalar_select %p431_p10, %s7445_s12, 1  ;;  %vm446_vm2 = vcmp.eq.s32.totalorder %v7481_v6, %v442_v14  ;;  %vm447_vm3 = vcmp.eq.s32.totalorder %v7481_v6, %v443_v15  ;;  %vm448_vm4 = vcmp.eq.s32.totalorder %v7481_v6, %v444_v16  ;;  %v5968_v18 = vld [vmem:[%s8364_s1 + $0x60] sm:$0xff]  ;;  %v5969_v21 = vld [vmem:[%s8364_s1 + $0x68] sm:$0xff]  ;;  %v5966_v23 = vld [vmem:[%s8364_s1 + $0x50] sm:$0xff] }
  0x1c   : > { %vm6803_vm5 = vmpackc.low %vm446_vm2, %vm445_vm1  ;;  %v5972_v24 = vld [vmem:[%s8364_s1 + $0x80] sm:$0xff]  ;;  %v5967_v25 = vld [vmem:[%s8364_s1 + $0x58] sm:$0xff] }
  0x1d   : > { %6804 = vmatpush3.bf16.msk.msra.mxu0 %vm6803_vm5, %v7338_v19  ;;  %vm6806_vm6 = vmpackc.low %vm448_vm4, %vm447_vm3  ;;  %s433_s14 = scalar_lea.vmem %s8365_s0, %s432_s17  ;;  %v5973_v26 = vld [vmem:[%s8364_s1 + $0x88] sm:$0xff]  ;;  %v5970_v27 = vld [vmem:[%s8364_s1 + $0x70] sm:$0xff]  ;;  %vm1039_vm4 = vcmask 318464   ;;  %vm1163_vm5 = vcmask 1043456   ;;  %s8373_s17 = smov 124  }
  0x1e   : > { %575 = vperm.xlu0 %7073, %v5961_v12   ;;  %6805 = vmatprep.subr.bf16.mxu0 %v7334_v3  ;;  %v434_v22 = vld [vmem:[%s433_s14] sm:$0x1]  ;;  %v5971_v29 = vld [vmem:[%s8364_s1 + $0x78] sm:$0xff]  ;;  %v5977_v30 = vld [vmem:[%s8364_s1 + $0xa8] sm:$0xff]  ;;  %s8355_s14 = smov 125   ;;  %s7348_s0 = smov 119  }
  0x1f   : > { %624 = vperm.xlu1 %7074, %v5965_v13   ;;  %v5976_v28 = vld [vmem:[%s8364_s1 + $0xa0] sm:$0xff]  ;;  %v5974_v31 = vld [vmem:[%s8364_s1 + $0x90] sm:$0xff]  ;;  %v5975_v33 = vld [vmem:[%s8364_s1 + $0x98] sm:$0xff] }
  0x20   : > { %v5980_v32 = vld [vmem:[%s8364_s1 + $0xc0] sm:$0xff]  ;;  %v5981_v34 = vld [vmem:[%s8364_s1 + $0xc8] sm:$0xff]  ;;  %v5978_v35 = vld [vmem:[%s8364_s1 + $0xb0] sm:$0xff] }
  0x21   : > { %6807 = vmatpush3.bf16.msk.msra.mxu0 %vm6806_vm6, %v7338_v19  ;;  %v5984_v36 = vld [vmem:[%s8364_s1 + $0xe0] sm:$0xff]  ;;  %v5979_v37 = vld [vmem:[%s8364_s1 + $0xb8] sm:$0xff]  ;;  %v5985_v38 = vld [vmem:[%s8364_s1 + $0xe8] sm:$0xff] }
  0x22   : > { %580 = vperm.xlu0 %7073, %v5962_v17   ;;  %v5982_v39 = vld [vmem:[%s8364_s1 + $0xd0] sm:$0xff]  ;;  %v5988_v40 = vld [vmem:[%s8364_s1 + $0x100] sm:$0xff]  ;;  %v5983_v41 = vld [vmem:[%s8364_s1 + $0xd8] sm:$0xff] }
  0x23   : > { %668 = vperm.xlu1 %7074, %v5968_v18   ;;  %v5989_v42 = vld [vmem:[%s8364_s1 + $0x108] sm:$0xff]  ;;  %v5986_v43 = vld [vmem:[%s8364_s1 + $0xf0] sm:$0xff]  ;;  %v5987_v44 = vld [vmem:[%s8364_s1 + $0xf8] sm:$0xff] }
  0x24   : > { %6385 = vmatmul.mubr.msk.f32.vlgmr.msra.gmra.mrb[0].mxu0 %vm453_vm7, %v434_v22  ;;  %v5990_v45 = vld [vmem:[%s8364_s1 + $0x110] sm:$0xff]  ;;  %v5991_v46 = vld [vmem:[%s8364_s1 + $0x118] sm:$0xff]  ;;  %v527_v47 = vld [vmem:[%s8364_s1] sm:$0xff] }
  0x25   : > { %v528_v48 = vld [vmem:[%s8364_s1 + $0x8] sm:$0xff]  ;;  %v529_v49 = vld [vmem:[%s8364_s1 + $0x10] sm:$0xff]  ;;  %v530_v50 = vld [vmem:[%s8364_s1 + $0x18] sm:$0xff] }
  0x26   : > { %585 = vperm.xlu0 %7073, %v5963_v20   ;;  %v955_v51 = vld [vmem:[%s8366_s2] sm:$0xff]  ;;  %v956_v52 = vld [vmem:[%s8366_s2 + $0x8] sm:$0xff]  ;;  %v957_v53 = vld [vmem:[%s8366_s2 + $0x10] sm:$0xff] }
  0x27   : > { %673 = vperm.xlu1 %7074, %v5969_v21   ;;  %v958_v54 = vld [vmem:[%s8366_s2 + $0x18] sm:$0xff]  ;;  %s8377_s2 = smov 122  }
  0x2a   : > { %629 = vperm.xlu0 %7073, %v5966_v23  }
  0x2b   : > { %717 = vperm.xlu1 %7074, %v5972_v24  }
  0x2e   : > { %634 = vperm.xlu0 %7073, %v5967_v25  }
  0x2f   : > { %722 = vperm.xlu1 %7074, %v5973_v26  }
  0x32   : > { %678 = vperm.xlu0 %7073, %v5970_v27  }
  0x33   : > { %766 = vperm.xlu1 %7074, %v5976_v28  }
  0x36   : > { %683 = vperm.xlu0 %7073, %v5971_v29  }
  0x37   : > { %771 = vperm.xlu1 %7074, %v5977_v30  }
  0x3a   : > { %727 = vperm.xlu0 %7073, %v5974_v31  }
  0x3b   : > { %815 = vperm.xlu1 %7074, %v5980_v32  }
  0x3e   : > { %732 = vperm.xlu0 %7073, %v5975_v33  }
  0x3f   : > { %820 = vperm.xlu1 %7074, %v5981_v34  }
  0x42   : > { %776 = vperm.xlu0 %7073, %v5978_v35  }
  0x43   : > { %864 = vperm.xlu1 %7074, %v5984_v36  }
  0x46   : > { %781 = vperm.xlu0 %7073, %v5979_v37  }
  0x47   : > { %869 = vperm.xlu1 %7074, %v5985_v38  }
  0x4a   : > { %825 = vperm.xlu0 %7073, %v5982_v39  }
  0x4b   : > { %913 = vperm.xlu1 %7074, %v5988_v40  }
  0x4e   : > { %830 = vperm.xlu0 %7073, %v5983_v41  }
  0x4f   : > { %918 = vperm.xlu1 %7074, %v5989_v42  }
  0x52   : > { %874 = vperm.xlu0 %7073, %v5986_v43  }
  0x53   : > { %879 = vperm.xlu1 %7074, %v5987_v44  }
  0x56   : > { %923 = vperm.xlu0 %7073, %v5990_v45  }
  0x57   : > { %928 = vperm.xlu1 %7074, %v5991_v46  }
  0x5a   : > { %533 = vperm.xlu0 %7073, %v527_v47  }
  0x5b   : > { %538 = vperm.xlu1 %7074, %v528_v48  }
  0x5e   : > { %543 = vperm.xlu0 %7073, %v529_v49  }
  0x5f   : > { %548 = vperm.xlu1 %7074, %v530_v50  }
  0x62   : > { %961 = vperm.xlu0 %7073, %v955_v51  }
  0x63   : > { %966 = vperm.xlu1 %7074, %v956_v52  }
  0x66   : > { %971 = vperm.xlu0 %7073, %v957_v53  }
  0x67   : > { %976 = vperm.xlu1 %7074, %v958_v54  }
  0x99   : > { %v571_v56 = vpop.permute.xlu0 %570 }
  0x9a   : > { %v620_v55 = vpop.permute.xlu1 %619 }
  0x9d   : > { %v576_v58 = vpop.permute.xlu0 %575 }
  0x9e   : > { %v625_v57 = vpop.permute.xlu1 %624 }
  0xa1   : > { %v581_v60 = vpop.permute.xlu0 %580 }
  0xa2   : > { %v669_v59 = vpop.permute.xlu1 %668 }
  0xa5   : > { %v586_v62 = vpop.permute.xlu0 %585 }
  0xa6   : > { %v674_v61 = vpop.permute.xlu1 %673 }
  0xa9   : > { %v630_v1 = vpop.permute.xlu0 %629 }
  0xaa   : > { %v718_v0 = vpop.permute.xlu1 %717 }
  0xad   : > { %v635_v13 = vpop.permute.xlu0 %634 }
  0xae   : > { %v723_v12 = vpop.permute.xlu1 %722 }
  0xb1   : > { %v679_v20 = vpop.permute.xlu0 %678 }
  0xb2   : > { %v767_v17 = vpop.permute.xlu1 %766 }
  0xb5   : > { %v684_v24 = vpop.permute.xlu0 %683 }
  0xb6   : > { %v772_v23 = vpop.permute.xlu1 %771 }
  0xb9   : > { %v728_v30 = vpop.permute.xlu0 %727 }
  0xba   : > { %v816_v28 = vpop.permute.xlu1 %815 }
  0xbd   : > { %v733_v34 = vpop.permute.xlu0 %732 }
  0xbe   : > { %v821_v33 = vpop.permute.xlu1 %820 }
  0xc1   : > { %v777_v40 = vpop.permute.xlu0 %776 }
  0xc2   : > { %v865_v38 = vpop.permute.xlu1 %864 }
  0xc5   : > { %v782_v44 = vpop.permute.xlu0 %781 }
  0xc6   : > { %v870_v43 = vpop.permute.xlu1 %869 }
  0xc9   : > { %v826_v50 = vpop.permute.xlu0 %825 }
  0xca   : > { %v914_v48 = vpop.permute.xlu1 %913 }
  0xcd   : > { %v831_v54 = vpop.permute.xlu0 %830 }
  0xce   : > { %v919_v53 = vpop.permute.xlu1 %918 }
  0xf7   : > { %v523_v2 = vpop.f32.mrb[0].mxu0 }
  0xf8   : > { %v7628_v4 = vrot.slane %v523_v2, %v553_v63  ;;  %v6386_v8 = vpop.f32.mrb[1].mxu0 }
  0xfa   : > { %v588_v14 = vmul.f32 %v571_v56, %v7628_v4  ;;  %v589_v15 = vmul.f32 %v576_v58, %v7628_v4  ;;  %v638_v16 = vmul.f32 %v625_v57, %v7628_v4  ;;  %v637_v18 = vmul.f32 %v620_v55, %v7628_v4  ;;  %v880_v58 = vpop.permute.xlu1 %879 }
  0xfb   : > { %v686_v21 = vmul.f32 %v669_v59, %v7628_v4  ;;  %v590_v22 = vmul.f32 %v581_v60, %v7628_v4  ;;  %v687_v25 = vmul.f32 %v674_v61, %v7628_v4  ;;  %v591_v26 = vmul.f32 %v586_v62, %v7628_v4  ;;  %v875_v60 = vpop.permute.xlu0 %874 }
  0xfc   : > { %598 = vrot.lane.b32.xlu1 %v589_v15, %s8351_s18  ;;  %596 = vrot.lane.b32.xlu0 %v588_v14, %s8351_s18  ;;  %v735_v27 = vmul.f32 %v718_v0, %v7628_v4  ;;  %v639_v29 = vmul.f32 %v630_v1, %v7628_v4  ;;  %v736_v31 = vmul.f32 %v723_v12, %v7628_v4  ;;  %v7695_v12 = vmul.u32 2, %v7481_v6 }
  0xfd   : > { %v640_v32 = vmul.f32 %v635_v13, %v7628_v4  ;;  %v784_v35 = vmul.f32 %v767_v17, %v7628_v4  ;;  %v688_v36 = vmul.f32 %v679_v20, %v7628_v4  ;;  %v785_v37 = vmul.f32 %v772_v23, %v7628_v4 }
  0xfe   : > { %v689_v39 = vmul.f32 %v684_v24, %v7628_v4  ;;  %v737_v41 = vmul.f32 %v728_v30, %v7628_v4  ;;  %v833_v42 = vmul.f32 %v816_v28, %v7628_v4  ;;  %v834_v45 = vmul.f32 %v821_v33, %v7628_v4  ;;  %v929_v0 = vpop.permute.xlu1 %928 }
  0xff   : > { %v738_v46 = vmul.f32 %v733_v34, %v7628_v4  ;;  %v882_v47 = vmul.f32 %v865_v38, %v7628_v4  ;;  %v786_v49 = vmul.f32 %v777_v40, %v7628_v4  ;;  %v883_v51 = vmul.f32 %v870_v43, %v7628_v4  ;;  %v924_v1 = vpop.permute.xlu0 %923 }
 0x100   : > { %647 = vrot.lane.b32.xlu1 %v638_v16, %s8343_s26  ;;  %645 = vrot.lane.b32.xlu0 %v637_v18, %s8343_s26  ;;  %v787_v52 = vmul.f32 %v782_v44, %v7628_v4  ;;  %v835_v55 = vmul.f32 %v826_v50, %v7628_v4  ;;  %v931_v56 = vmul.f32 %v914_v48, %v7628_v4 }
 0x101   : > { %v932_v57 = vmul.f32 %v919_v53, %v7628_v4  ;;  %v836_v59 = vmul.f32 %v831_v54, %v7628_v4  ;;  %v885_v61 = vmul.f32 %v880_v58, %v7628_v4  ;;  %v884_v62 = vmul.f32 %v875_v60, %v7628_v4 }
 0x102   : > { %v934_v2 = vmul.f32 %v929_v0, %v7628_v4  ;;  %v933_v8 = vmul.f32 %v924_v1, %v7628_v4  ;;  %vm1029_vm8 = vcmp.eq.s32.totalorder %v7479_v5, %v7695_v12  ;;  %vm1030_vm9 = vcmp.eq.s32.totalorder %v7487_v9, %v7695_v12  ;;  %v539_v14 = vpop.permute.xlu1 %538 }
 0x103   : > { %vm7701_vm10 = vmpackc.low %vm1030_vm9, %vm1029_vm8  ;;  %v534_v15 = vpop.permute.xlu0 %533  ;;  %v556_v44 = vmul.f32 %v7628_v4, %v539_v14  ;;  %vm1031_vm11 = vcmp.eq.s32.totalorder %v7490_v10, %v7695_v12  ;;  %vm1032_vm12 = vcmp.eq.s32.totalorder %v7493_v11, %v7695_v12  ;;  %vm1150_vm8 = vcmask 162816  }
 0x104   : > { %694 = vrot.lane.b32.xlu1 %v686_v21, %s8355_s14  ;;  %600 = vrot.lane.b32.xlu0 %v590_v22, %s8351_s18  ;;  %vm6812_vm13 = vmpackc.low %vm1032_vm12, %vm1031_vm11 }
 0x105   : > { %6809 = vmatprep.subr.msk.bf16.mxu1 %vm7701_vm10, %v7338_v19 }
 0x106   : > { %6811 = vmatpush3.bf16.msk.msra.mxu1 %vm7701_vm10, %v7338_v19  ;;  %v549_v16 = vpop.permute.xlu1 %548 }
 0x107   : > { %v544_v17 = vpop.permute.xlu0 %543  ;;  %6813 = vmatprep.subr.msk.bf16.mxu1 %vm6812_vm13, %v7338_v19 }
 0x108   : > { %696 = vrot.lane.b32.xlu1 %v687_v25, %s8355_s14  ;;  %602 = vrot.lane.b32.xlu0 %v591_v26, %s8351_s18 }
 0x10a   : > { %v7711_v18 = vpop.permute.xlu1 %966  ;;  %6815 = vmatpush3.bf16.msk.msra.mxu1 %vm6812_vm13, %v7338_v19 }
 0x10b   : > { %v962_v20 = vpop.permute.xlu0 %961 }
 0x10c   : > { %743 = vrot.lane.b32.xlu1 %v735_v27, %s8349_s16  ;;  %649 = vrot.lane.b32.xlu0 %v639_v29, %s8343_s26 }
 0x10e   : > { %v7713_v21 = vpop.permute.xlu1 %976 }
 0x10f   : > { %v7715_v22 = vpop.permute.xlu0 %971 }
 0x110   : > { %745 = vrot.lane.b32.xlu1 %v736_v31, %s8349_s16  ;;  %651 = vrot.lane.b32.xlu0 %v640_v32, %s8343_s26 }
 0x114   : > { %792 = vrot.lane.b32.xlu1 %v784_v35, %s8347_s21  ;;  %698 = vrot.lane.b32.xlu0 %v688_v36, %s8355_s14 }
 0x118   : > { %794 = vrot.lane.b32.xlu1 %v785_v37, %s8347_s21  ;;  %700 = vrot.lane.b32.xlu0 %v689_v39, %s8355_s14 }
 0x11c   : > { %747 = vrot.lane.b32.xlu1 %v737_v41, %s8349_s16  ;;  %841 = vrot.lane.b32.xlu0 %v833_v42, %s8353_s22  ;;  %v555_v41 = vmul.f32 %v7628_v4, %v534_v15 }
 0x120   : > { %843 = vrot.lane.b32.xlu1 %v834_v45, %s8353_s22  ;;  %749 = vrot.lane.b32.xlu0 %v738_v46, %s8349_s16 }
 0x124   : > { %890 = vrot.lane.b32.xlu1 %v882_v47, %s8345_s23  ;;  %796 = vrot.lane.b32.xlu0 %v786_v49, %s8347_s21 }
 0x128   : > { %892 = vrot.lane.b32.xlu1 %v883_v51, %s8345_s23  ;;  %798 = vrot.lane.b32.xlu0 %v787_v52, %s8347_s21 }
 0x12c   : > { %845 = vrot.lane.b32.xlu1 %v835_v55, %s8353_s22  ;;  %939 = vrot.lane.b32.xlu0 %v931_v56, %s8341_s24  ;;  %v558_v56 = vmul.f32 %v7628_v4, %v549_v16 }
 0x130   : > { %941 = vrot.lane.b32.xlu1 %v932_v57, %s8341_s24  ;;  %847 = vrot.lane.b32.xlu0 %v836_v59, %s8353_s22  ;;  %v557_v59 = vmul.f32 %v7628_v4, %v544_v17 }
 0x134   : > { %896 = vrot.lane.b32.xlu1 %v885_v61, %s8345_s23  ;;  %894 = vrot.lane.b32.xlu0 %v884_v62, %s8345_s23 }
 0x138   : > { %945 = vrot.lane.b32.xlu1 %v934_v2, %s8341_s24  ;;  %943 = vrot.lane.b32.xlu0 %v933_v8, %s8341_s24 }
 0x16e   : > { %v599_v23 = vpop.permute.xlu1 %598  ;;  %v597_v24 = vpop.permute.xlu0 %596 }
 0x16f   : > { %v608_v42 = vadd.f32 %v597_v24, %v555_v41  ;;  %v609_v47 = vadd.f32 %v599_v23, %v556_v44 }
 0x172   : > { %v648_v25 = vpop.permute.xlu1 %647  ;;  %v646_v26 = vpop.permute.xlu0 %645 }
 0x173   : > { %v657_v46 = vadd.f32 %v646_v26, %v608_v42  ;;  %v658_v50 = vadd.f32 %v648_v25, %v609_v47 }
 0x176   : > { %v695_v27 = vpop.permute.xlu1 %694  ;;  %v601_v28 = vpop.permute.xlu0 %600 }
 0x177   : > { %v706_v48 = vadd.f32 %v695_v27, %v657_v46  ;;  %v610_v0 = vadd.f32 %v601_v28, %v557_v59 }
 0x17a   : > { %v697_v29 = vpop.permute.xlu1 %696  ;;  %v603_v30 = vpop.permute.xlu0 %602 }
 0x17b   : > { %v707_v53 = vadd.f32 %v697_v29, %v658_v50  ;;  %v611_v61 = vadd.f32 %v603_v30, %v558_v56 }
 0x17e   : > { %v744_v31 = vpop.permute.xlu1 %743  ;;  %v650_v32 = vpop.permute.xlu0 %649 }
 0x17f   : > { %v755_v52 = vadd.f32 %v744_v31, %v706_v48  ;;  %v659_v23 = vadd.f32 %v650_v32, %v610_v0  ;;  %v7747_v0 = vadd.s32 7, %v7487_v9 }
 0x181   : > { %vm1145_vm2 = vcmp.eq.s32.totalorder %v7481_v6, %v7747_v0 }
 0x182   : > { %v746_v33 = vpop.permute.xlu1 %745  ;;  %v652_v34 = vpop.permute.xlu0 %651 }
 0x183   : > { %v756_v57 = vadd.f32 %v746_v33, %v707_v53  ;;  %v660_v8 = vadd.f32 %v652_v34, %v611_v61 }
 0x186   : > { %v793_v35 = vpop.permute.xlu1 %792  ;;  %v699_v36 = vpop.permute.xlu0 %698 }
 0x187   : > { %v804_v54 = vadd.f32 %v793_v35, %v755_v52  ;;  %v708_v27 = vadd.f32 %v699_v36, %v659_v23 }
 0x18a   : > { %v795_v37 = vpop.permute.xlu1 %794  ;;  %v701_v38 = vpop.permute.xlu0 %700 }
 0x18b   : > { %v805_v62 = vadd.f32 %v795_v37, %v756_v57  ;;  %v709_v25 = vadd.f32 %v701_v38, %v660_v8 }
 0x18e   : > { %v748_v39 = vpop.permute.xlu1 %747  ;;  %v842_v40 = vpop.permute.xlu0 %841 }
 0x18f   : > { %v853_v60 = vadd.f32 %v842_v40, %v804_v54  ;;  %v757_v4 = vadd.f32 %v748_v39, %v708_v27  ;;  %v7737_v54 = vadd.s32 32, %v7479_v5 }
 0x191   : > { %vm1033_vm15 = vcmp.eq.s32.totalorder %v7737_v54, %v7695_v12 }
 0x192   : > { %v844_v43 = vpop.permute.xlu1 %843  ;;  %v750_v45 = vpop.permute.xlu0 %749 }
 0x193   : > { %v854_v14 = vadd.f32 %v844_v43, %v805_v62  ;;  %v758_v31 = vadd.f32 %v750_v45, %v709_v25  ;;  %v7744_v62 = vadd.s32 7, %v7479_v5 }
 0x195   : > { %vm1144_vm1 = vcmp.eq.s32.totalorder %v7481_v6, %v7744_v62 }
 0x196   : > { %v891_v49 = vpop.permute.xlu1 %890  ;;  %v797_v51 = vpop.permute.xlu0 %796  ;;  %vm6816_vm3 = vmpackc.low %vm1145_vm2, %vm1144_vm1 }
 0x197   : > { %v902_v1 = vadd.f32 %v891_v49, %v853_v60  ;;  %v806_v37 = vadd.f32 %v797_v51, %v757_v4  ;;  %6817 = vmatprep.subr.msk.bf16.mxu0 %vm6816_vm3, %v7338_v19 }
 0x198   : > { %6819 = vmatpush3.bf16.msk.msra.mxu0 %vm6816_vm3, %v7338_v19  ;;  %vm2899_vm3 = vcmask 154624  }
 0x19a   : > { %v893_v55 = vpop.permute.xlu1 %892  ;;  %v799_v58 = vpop.permute.xlu0 %798 }
 0x19b   : > { %v903_v26 = vadd.f32 %v893_v55, %v854_v14  ;;  %v807_v30 = vadd.f32 %v799_v58, %v758_v31  ;;  %v1038_v55 = vsel %vm1033_vm15, 1.0, %v7336_v7  ;;  %vm2145_vm15 = vcmask 105472  }
 0x19c   : > { %6395 = vmatprep.subr.msk.mxu1 %vm1052_vm14, %v1038_v55 }
 0x19d   : > { %6396 = vmatpush3.msk.msra.mxu1 %vm1052_vm14, %v1038_v55  ;;  %vm2059_vm14 = vcmask 211968  }
 0x19e   : > { %v846_v2 = vpop.permute.xlu1 %845  ;;  %v940_v15 = vpop.permute.xlu0 %939 }
 0x19f   : > { %v951_v24 = vadd.f32 %v940_v15, %v902_v1  ;;  %v855_v43 = vadd.f32 %v846_v2, %v806_v37 }
 0x1a1   : > { %v979_v29 = vadd.f32 %v962_v20, %v951_v24 }
 0x1a2   : > { %v942_v16 = vpop.permute.xlu1 %941  ;;  %v848_v35 = vpop.permute.xlu0 %847 }
 0x1a3   : > { %v952_v33 = vadd.f32 %v942_v16, %v903_v26  ;;  %v983_v17 = vsub.f32 0.0, %v979_v29  ;;  %v856_v42 = vadd.f32 %v848_v35, %v807_v30  ;;  %v1143_v29 = vadd.s32 7, %v7490_v10 }
 0x1a5   : > { %v980_v28 = vadd.f32 %v7711_v18, %v952_v33  ;;  %v987_v40 = vmul.f32 1.442695, %v983_v17  ;;  %vm1146_vm6 = vcmp.eq.s32.totalorder %v7481_v6, %v1143_v29 }
 0x1a6   : > { %v897_v34 = vpop.permute.xlu1 %896  ;;  %v895_v32 = vpop.permute.xlu0 %894  ;;  %v1149_v16 = vsel %vm1146_vm6, 1.0, %v7336_v7  ;;  %vm2985_vm6 = vcmask 80896  }
 0x1a7   : > { %v984_v41 = vsub.f32 0.0, %v980_v28  ;;  %7230 = vpow2.f32 %v987_v40  ;;  %v905_v36 = vadd.f32 %v897_v34, %v856_v42  ;;  %v904_v20 = vadd.f32 %v895_v32, %v855_v43  ;;  %6407 = vmatprep.subr.msk.mxu0 %vm1163_vm5, %v1149_v16  ;;  %v6008_v40 = vld [vmem:[%s8369_s3 + $0x10] sm:$0xff]  ;;  %v2023_v43 = vld [vmem:[%s8331_s4] sm:$0xff] }
 0x1a8   : > { %6408 = vmatpush3.msk.msra.mxu0 %vm1163_vm5, %v1149_v16 }
 0x1a9   : > { %v989_v38 = vmul.f32 1.442695, %v984_v41  ;;  %6885 = vmatprep.subr.msk.bf16.mxu0 %vm7701_vm10, %v7338_v19 }
 0x1aa   : > { %v946_v44 = vpop.permute.xlu1 %945  ;;  %v944_v46 = vpop.permute.xlu0 %943 }
 0x1ab   : > { %7232 = vpow2.f32 %v989_v38  ;;  %v954_v45 = vadd.f32 %v946_v44, %v905_v36  ;;  %v953_v39 = vadd.f32 %v944_v46, %v904_v20  ;;  %v2024_v38 = vld [vmem:[%s8331_s4 + $0x8] sm:$0xff] }
 0x1ad   : > { %v982_v47 = vadd.f32 %v7713_v21, %v954_v45  ;;  %v981_v18 = vadd.f32 %v7715_v22, %v953_v39 }
 0x1af   : > { %v986_v48 = vsub.f32 0.0, %v982_v47  ;;  %v985_v49 = vsub.f32 0.0, %v981_v18 }
 0x1b1   : > { %v993_v50 = vmul.f32 1.442695, %v986_v48  ;;  %v7231_v51 = vpop.eup %7230  ;;  %v991_v52 = vmul.f32 1.442695, %v985_v49  ;;  %v6009_v49 = vld [vmem:[%s8369_s3 + $0x18] sm:$0xff] }
 0x1b2   : > { %v995_v53 = vadd.f32 1.0, %v7231_v51 }
 0x1b3   : > { %7234 = vpow2.f32 %v993_v50  ;;  %v1252_v50 = vld [vmem:[%s8369_s3] sm:$0xff] }
 0x1b4   : > { %7236 = vpow2.f32 %v991_v52 }
 0x1b5   : > { %v7233_v21 = vpop.eup %7232  ;;  %7238 = vrcp.f32 %v995_v53 }
 0x1b6   : > { %v996_v22 = vadd.f32 1.0, %v7233_v21 }
 0x1b8   : > { %7240 = vrcp.f32 %v996_v22 }
 0x1bd   : > { %v7235_v56 = vpop.eup %7234 }
 0x1be   : > { %v7237_v57 = vpop.eup %7236  ;;  %v998_v58 = vadd.f32 1.0, %v7235_v56 }
 0x1bf   : > { %v7239_v59 = vpop.eup %7238  ;;  %v997_v60 = vadd.f32 1.0, %v7237_v57  ;;  %v1253_v57 = vld [vmem:[%s8369_s3 + $0x8] sm:$0xff] }
 0x1c0   : > { %7242 = vrcp.f32 %v998_v58  ;;  %1011 = vrot.lane.b32.xlu0 %v7239_v59, %s8351_s18  ;;  %v6014_v58 = vld [vmem:[%s8369_s3 + $0x20] sm:$0xff] }
 0x1c1   : > { %7244 = vrcp.f32 %v997_v60 }
 0x1c2   : > { %v7241_v61 = vpop.eup %7240 }
 0x1c3   : > { %1013 = vrot.lane.b32.xlu1 %v7241_v61, %s8351_s18 }
 0x1ca   : > { %v7243_v1 = vpop.eup %7242 }
 0x1cb   : > { %v7245_v2 = vpop.eup %7244  ;;  %1017 = vrot.lane.b32.xlu1 %v7243_v1, %s8351_s18 }
 0x1cc   : > { %1015 = vrot.lane.b32.xlu0 %v7245_v2, %s8351_s18 }
 0x232   : > { %v1012_v8 = vpop.permute.xlu0 %1011 }
 0x233   : > { %v1023_v14 = vmax.f32 %v7239_v59, %v1012_v8 }
 0x235   : > { %6397 = vmatprep.mubr.msk.f32.mxu1 %vm1039_vm4, %v1023_v14  ;;  %v1014_v15 = vpop.permute.xlu1 %1013 }
 0x236   : > { %v1024_v23 = vmax.f32 %v7241_v61, %v1014_v15 }
 0x238   : > { %6398 = vmatmul.mubr.msk.f32.vlgmr.msra.gmra.mrb[0].mxu1 %vm1039_vm4, %v1024_v23  ;;  %v6015_v23 = vld [vmem:[%s8369_s3 + $0x28] sm:$0xff] }
 0x23d   : > { %v1018_v24 = vpop.permute.xlu1 %1017 }
 0x23e   : > { %v1026_v25 = vmax.f32 %v7243_v1, %v1018_v24  ;;  %v1016_v26 = vpop.permute.xlu0 %1015  ;;  %v6018_v24 = vld [vmem:[%s8369_s3 + $0x30] sm:$0xff] }
 0x23f   : > { %v1025_v27 = vmax.f32 %v7245_v2, %v1016_v26 }
 0x241   : > { %6400 = vmatprep.mubr.msk.f32.mxu1 %vm1039_vm4, %v1025_v27 }
 0x242   : > { %6401 = vmatmul.mubr.msk.f32.gmra.mrb[2].mxu1 %vm1039_vm4, %v1026_v25 }
 0x243   : > { %6423 = vmatprep.mubr.msk.f32.mxu1 %vm453_vm7, %v6008_v40 }
 0x30b   : > { %v6399_v31 = vpop.f32.mrb[0].mxu1 }
 0x30c   : > { %v1122_v33 = vpop.f32.mrb[1].mxu1 }
 0x30d   : > { %6409 = vmatprep.mubr.msk.f32.mxu0 %vm1150_vm8, %v1122_v33 }
 0x30e   : > { %6410 = vmatmul.mubr.msk.f32.vlgmr.msra.gmra.mrb[2].mxu0 %vm1150_vm8, %v6399_v31 }
 0x30f   : > { %6887 = vmatpush3.bf16.msk.msra.mxu0 %vm7701_vm10, %v7338_v19 }
 0x315   : > { %v6402_v35 = vpop.f32.mrb[2].mxu1 }
 0x316   : > { %v1132_v4 = vpop.f32.mrb[3].mxu1 }
 0x317   : > { %6412 = vmatprep.mubr.msk.f32.mxu0 %vm1150_vm8, %v1132_v4  ;;  %v6019_v4 = vld [vmem:[%s8369_s3 + $0x38] sm:$0xff] }
 0x318   : > { %6413 = vmatmul.mubr.msk.f32.gmra.mrb[4].mxu0 %vm1150_vm8, %v6402_v35  ;;  %vm3071_vm8 = vcmask 64512  }
 0x3e1   : > { %v6411_v17 = vpop.f32.mrb[2].mxu0 }
 0x3e2   : > { %v1233_v30 = vpop.f32.mrb[3].mxu0 }
 0x3e3   : > { %v7075_v28 = vpack.i.bf16 %v6411_v17, %v1233_v30  ;;  %v6828_v37 = vpack.c.bf16 %v6411_v17, %v1233_v30  ;;  %v6022_v17 = vld [vmem:[%s8369_s3 + $0x40] sm:$0xff] }
 0x3e5   : > { %7076 = vrot.lane.b32.xlu0 %v7075_v28, %s8351_s18 }
 0x3e9   : > { %7086 = vrot.lane.b32.xlu0 %v7075_v28, %s8343_s26 }
 0x3eb   : > { %v6414_v34 = vpop.f32.mrb[4].mxu0 }
 0x3ec   : > { %v1243_v41 = vpop.f32.mrb[5].mxu0 }
 0x3ed   : > { %7096 = vrot.lane.b32.xlu0 %v7075_v28, %s8355_s14  ;;  %v7080_v42 = vpack.i.bf16 %v6414_v34, %v1243_v41  ;;  %v6832_v32 = vpack.c.bf16 %v6414_v34, %v1243_v41 }
 0x3ef   : > { %7081 = vrot.lane.b32.xlu1 %v7080_v42, %s8351_s18 }
 0x3f1   : > { %7106 = vrot.lane.b32.xlu0 %v7075_v28, %s8349_s16 }
 0x3f3   : > { %7091 = vrot.lane.b32.xlu1 %v7080_v42, %s8343_s26  ;;  %s8372_s26 = smov 121  }
 0x3f5   : > { %7116 = vrot.lane.b32.xlu0 %v7075_v28, %s8347_s21 }
 0x3f7   : > { %7101 = vrot.lane.b32.xlu1 %v7080_v42, %s8355_s14 }
 0x3f9   : > { %7126 = vrot.lane.b32.xlu0 %v7075_v28, %s8353_s22 }
 0x3fb   : > { %7111 = vrot.lane.b32.xlu1 %v7080_v42, %s8349_s16 }
 0x3fd   : > { %7136 = vrot.lane.b32.xlu0 %v7075_v28, %s8345_s23 }
 0x3ff   : > { %7121 = vrot.lane.b32.xlu1 %v7080_v42, %s8347_s21  ;;  %s8370_s21 = smov 126  }
 0x401   : > { %2027 = vperm.xlu0 %7073, %v2023_v43   ;;  %v6023_v43 = vld [vmem:[%s8369_s3 + $0x48] sm:$0xff] }
 0x403   : > { %7131 = vrot.lane.b32.xlu1 %v7080_v42, %s8353_s22 }
 0x407   : > { %7141 = vrot.lane.b32.xlu1 %v7080_v42, %s8345_s23  ;;  %s8371_s23 = smov 123  }
 0x40b   : > { %2032 = vperm.xlu1 %7074, %v2024_v38   ;;  %v6026_v38 = vld [vmem:[%s8369_s3 + $0x50] sm:$0xff] }
 0x457   : > { %v7077_v36 = vpop.permute.xlu0 %7076 }
 0x458   : > { %v7079_v20 = vunpack.i.h.bf16 %v7077_v36  ;;  %v7078_v44 = vunpack.i.l.bf16 %v7077_v36 }
 0x45a   : > { %v6820_v45 = vpack.c.bf16 %v7079_v20, %v7078_v44 }
 0x45b   : > { %v7087_v48 = vpop.permute.xlu0 %7086 }
 0x45c   : > { %6821 = vmatprep.subr.bf16.mxu1 %v6820_v45  ;;  %v7089_v51 = vunpack.i.h.bf16 %v7087_v48  ;;  %v7088_v52 = vunpack.i.l.bf16 %v7087_v48  ;;  %v6027_v48 = vld [vmem:[%s8369_s3 + $0x58] sm:$0xff] }
 0x45d   : > { %6823 = vmatpush3.bf16.msra.mxu1 %v6820_v45 }
 0x45e   : > { %v6836_v21 = vpack.c.bf16 %v7089_v51, %v7088_v52 }
 0x45f   : > { %v7097_v56 = vpop.permute.xlu0 %7096 }
 0x460   : > { %v7099_v59 = vunpack.i.h.bf16 %v7097_v56  ;;  %v7098_v60 = vunpack.i.l.bf16 %v7097_v56  ;;  %v6031_v56 = vld [vmem:[%s8369_s3 + $0x68] sm:$0xff] }
 0x461   : > { %v7082_v46 = vpop.permute.xlu1 %7081 }
 0x462   : > { %v7084_v39 = vunpack.i.h.bf16 %v7082_v46  ;;  %v7083_v47 = vunpack.i.l.bf16 %v7082_v46  ;;  %v6844_v2 = vpack.c.bf16 %v7099_v59, %v7098_v60  ;;  %v6035_v59 = vld [vmem:[%s8369_s3 + $0x78] sm:$0xff] }
 0x463   : > { %v7107_v15 = vpop.permute.xlu0 %7106 }
 0x464   : > { %v6824_v18 = vpack.c.bf16 %v7084_v39, %v7083_v47  ;;  %v7109_v25 = vunpack.i.h.bf16 %v7107_v15  ;;  %v7108_v26 = vunpack.i.l.bf16 %v7107_v15 }
 0x465   : > { %v7092_v53 = vpop.permute.xlu1 %7091 }
 0x466   : > { %6825 = vmatprep.subr.bf16.mxu1 %v6824_v18  ;;  %v7094_v22 = vunpack.i.h.bf16 %v7092_v53  ;;  %v7093_v55 = vunpack.i.l.bf16 %v7092_v53  ;;  %v6852_v16 = vpack.c.bf16 %v7109_v25, %v7108_v26  ;;  %v1037_v26 = vsel %vm1032_vm12, 1.0, %v7336_v7 }
 0x467   : > { %6827 = vmatpush3.bf16.msra.mxu1 %v6824_v18  ;;  %v7117_v35 = vpop.permute.xlu0 %7116  ;;  %vm2152_vm12 = vcmask 1044480  }
 0x468   : > { %6829 = vmatprep.subr.bf16.mxu1 %v6828_v37  ;;  %v6840_v61 = vpack.c.bf16 %v7094_v22, %v7093_v55  ;;  %v7119_v30 = vunpack.i.h.bf16 %v7117_v35  ;;  %v7118_v28 = vunpack.i.l.bf16 %v7117_v35  ;;  %vm6895_vm13 = vmpackc.low %vm2152_vm12, %vm1144_vm1  ;;  %vm2242_vm1 = vcmask 130048  }
 0x469   : > { %v7102_v1 = vpop.permute.xlu1 %7101 }
 0x46a   : > { %6424 = vmatmul.mubr.msk.f32.vlgmr.msra.gmra.mrb[4].mxu1 %vm453_vm7, %v6009_v49  ;;  %v7104_v8 = vunpack.i.h.bf16 %v7102_v1  ;;  %v7103_v14 = vunpack.i.l.bf16 %v7102_v1  ;;  %v6860_v34 = vpack.c.bf16 %v7119_v30, %v7118_v28  ;;  %v6030_v49 = vld [vmem:[%s8369_s3 + $0x60] sm:$0xff] }
 0x46b   : > { %6831 = vmatpush3.bf16.msra.mxu1 %v6828_v37  ;;  %6434 = vmatprep.mubr.msk.f32.mxu1 %vm453_vm7, %v1252_v50 }
 0x46c   : > { %6833 = vmatprep.subr.bf16.mxu1 %v6832_v32  ;;  %v6848_v27 = vpack.c.bf16 %v7104_v8, %v7103_v14 }
 0x46d   : > { %v7112_v29 = vpop.permute.xlu1 %7111 }
 0x46e   : > { %v7114_v31 = vunpack.i.h.bf16 %v7112_v29  ;;  %v7113_v33 = vunpack.i.l.bf16 %v7112_v29 }
 0x46f   : > { %6835 = vmatpush3.bf16.msra.mxu1 %v6832_v32  ;;  %v7127_v32 = vpop.permute.xlu0 %7126 }
 0x470   : > { %6837 = vmatprep.subr.bf16.mxu1 %v6836_v21  ;;  %v6856_v37 = vpack.c.bf16 %v7114_v31, %v7113_v33  ;;  %v7129_v36 = vunpack.i.h.bf16 %v7127_v32  ;;  %v7128_v20 = vunpack.i.l.bf16 %v7127_v32  ;;  %v1148_v33 = vsel %vm1145_vm2, 1.0, %v7336_v7 }
 0x471   : > { %v7122_v40 = vpop.permute.xlu1 %7121 }
 0x472   : > { %6435 = vmatmul.mubr.msk.f32.vlgmr.msra.gmra.mrb[4].mxu1 %vm453_vm7, %v1253_v57  ;;  %v7124_v41 = vunpack.i.h.bf16 %v7122_v40  ;;  %v7123_v42 = vunpack.i.l.bf16 %v7122_v40  ;;  %v6868_v46 = vpack.c.bf16 %v7129_v36, %v7128_v20  ;;  %v6034_v57 = vld [vmem:[%s8369_s3 + $0x70] sm:$0xff]  ;;  %v2881_v36 = vld [vmem:[%s8333_s6] sm:$0xff]  ;;  %s7349_s3 = smov 118  }
 0x473   : > { %6839 = vmatpush3.bf16.msra.mxu1 %v6836_v21  ;;  %6445 = vmatprep.mubr.msk.f32.mxu1 %vm453_vm7, %v6014_v58  ;;  %v7137_v18 = vpop.permute.xlu0 %7136 }
 0x474   : > { %6841 = vmatprep.subr.bf16.mxu1 %v6840_v61  ;;  %v6864_v44 = vpack.c.bf16 %v7124_v41, %v7123_v42  ;;  %v7139_v50 = vunpack.i.h.bf16 %v7137_v18  ;;  %v7138_v51 = vunpack.i.l.bf16 %v7137_v18 }
 0x475   : > { %v7132_v45 = vpop.permute.xlu1 %7131 }
 0x476   : > { %v7134_v39 = vunpack.i.h.bf16 %v7132_v45  ;;  %v7133_v47 = vunpack.i.l.bf16 %v7132_v45  ;;  %v6876_v21 = vpack.c.bf16 %v7139_v50, %v7138_v51  ;;  %v2231_v50 = vld [vmem:[%s8332_s5] sm:$0xff] }
 0x477   : > { %6843 = vmatpush3.bf16.msra.mxu1 %v6840_v61 }
 0x478   : > { %6845 = vmatprep.subr.bf16.mxu1 %v6844_v2  ;;  %v6872_v52 = vpack.c.bf16 %v7134_v39, %v7133_v47  ;;  %v6048_v47 = vld [vmem:[%s8332_s5 + $0x8] sm:$0xff] }
 0x479   : > { %v7142_v53 = vpop.permute.xlu1 %7141 }
 0x47a   : > { %6446 = vmatmul.mubr.msk.f32.vlgmr.msra.gmra.mrb[4].mxu1 %vm453_vm7, %v6015_v23  ;;  %v7144_v22 = vunpack.i.h.bf16 %v7142_v53  ;;  %v7143_v55 = vunpack.i.l.bf16 %v7142_v53 }
 0x47b   : > { %6847 = vmatpush3.bf16.msra.mxu1 %v6844_v2  ;;  %6456 = vmatprep.mubr.msk.f32.mxu1 %vm453_vm7, %v6018_v24 }
 0x47c   : > { %6849 = vmatprep.subr.bf16.mxu1 %v6848_v27  ;;  %v6880_v58 = vpack.c.bf16 %v7144_v22, %v7143_v55  ;;  %v6051_v22 = vld [vmem:[%s8332_s5 + $0x10] sm:$0xff] }
 0x47f   : > { %6851 = vmatpush3.bf16.msra.mxu1 %v6848_v27  ;;  %v7347_v27 = vmov 1.0  }
 0x480   : > { %6853 = vmatprep.subr.bf16.mxu1 %v6852_v16  ;;  %v2028_v1 = vpop.permute.xlu0 %2027  ;;  %v6888_v29 = vpack.c.bf16 %v1037_v26, %v7347_v27 }
 0x482   : > { %6457 = vmatmul.mubr.msk.f32.vlgmr.msra.gmra.mrb[4].mxu1 %vm453_vm7, %v6019_v4 }
 0x483   : > { %6855 = vmatpush3.bf16.msra.mxu1 %v6852_v16  ;;  %6467 = vmatprep.mubr.msk.f32.mxu1 %vm453_vm7, %v6022_v17  ;;  %v6894_v17 = vpack.c.bf16 %v1148_v33, %v7347_v27 }
 0x484   : > { %6857 = vmatprep.subr.bf16.mxu1 %v6856_v37 }
 0x487   : > { %6859 = vmatpush3.bf16.msra.mxu1 %v6856_v37 }
 0x488   : > { %6861 = vmatprep.subr.bf16.mxu1 %v6860_v34 }
 0x48a   : > { %6468 = vmatmul.mubr.msk.f32.vlgmr.msra.gmra.mrb[4].mxu1 %vm453_vm7, %v6023_v43  ;;  %v2033_v60 = vpop.permute.xlu1 %2032 }
 0x48b   : > { %6863 = vmatpush3.bf16.msra.mxu1 %v6860_v34  ;;  %6478 = vmatprep.mubr.msk.f32.mxu1 %vm453_vm7, %v6026_v38 }
 0x48c   : > { %6865 = vmatprep.subr.bf16.mxu1 %v6864_v44 }
 0x48f   : > { %6867 = vmatpush3.bf16.msra.mxu1 %v6864_v44 }
 0x490   : > { %6869 = vmatprep.subr.bf16.mxu1 %v6868_v46 }
 0x492   : > { %6479 = vmatmul.mubr.msk.f32.vlgmr.msra.gmra.mrb[4].mxu1 %vm453_vm7, %v6027_v48 }
 0x493   : > { %6871 = vmatpush3.bf16.msra.mxu1 %v6868_v46  ;;  %6489 = vmatprep.mubr.msk.f32.mxu1 %vm453_vm7, %v6030_v49 }
 0x494   : > { %6873 = vmatprep.subr.bf16.mxu1 %v6872_v52 }
 0x497   : > { %6875 = vmatpush3.bf16.msra.mxu1 %v6872_v52 }
 0x498   : > { %6877 = vmatprep.subr.bf16.mxu1 %v6876_v21 }
 0x49a   : > { %6490 = vmatmul.mubr.msk.f32.vlgmr.msra.gmra.mrb[4].mxu1 %vm453_vm7, %v6031_v56 }
 0x49b   : > { %6879 = vmatpush3.bf16.msra.mxu1 %v6876_v21  ;;  %6500 = vmatprep.mubr.msk.f32.mxu1 %vm453_vm7, %v6034_v57 }
 0x49c   : > { %6881 = vmatprep.subr.bf16.mxu1 %v6880_v58 }
 0x49f   : > { %6883 = vmatpush3.bf16.msra.mxu1 %v6880_v58 }
 0x4a2   : > { %6501 = vmatmul.mubr.msk.f32.vlgmr.msra.gmra.mrb[4].mxu1 %vm453_vm7, %v6035_v59  ;;  %vm2066_vm7 = vcmask 1041408   ;;  %v6053_v59 = vld [vmem:[%s8332_s5 + $0x18] sm:$0xff] }
 0x4a3   : > { %vm6889_vm9 = vmpackc.low %vm2066_vm7, %vm1031_vm11 }
 0x4a4   : > { %6890 = vmatprep.subr.msk.bf16.mxu0 %vm6889_vm9, %v6888_v29 }
 0x4a5   : > { %6893 = vmatpush3.bf16.msk.msra.mxu0 %vm6889_vm9, %v6888_v29 }
 0x4a6   : > { %6896 = vmatprep.subr.msk.bf16.mxu0 %vm6895_vm13, %v6894_v17 }
 0x575   : > { %v6502_v61 = vpop.f32.mrb[4].mxu1 }
 0x576   : > { %v2036_v2 = vadd.f32 %v6502_v61, %v2033_v60  ;;  %v2012_v8 = vpop.f32.mrb[5].mxu1 }
 0x577   : > { %v2035_v14 = vadd.f32 %v2028_v1, %v2012_v8  ;;  %v6055_v8 = vld [vmem:[%s8332_s5 + $0x20] sm:$0xff] }
 0x578   : > { %v2038_v15 = vsub.f32 0.0, %v2036_v2 }
 0x579   : > { %v2037_v23 = vsub.f32 0.0, %v2035_v14 }
 0x57a   : > { %v2041_v24 = vmul.f32 1.442695, %v2038_v15 }
 0x57b   : > { %v2039_v25 = vmul.f32 1.442695, %v2037_v23 }
 0x57c   : > { %7246 = vpow2.f32 %v2041_v24 }
 0x57d   : > { %7248 = vpow2.f32 %v2039_v25  ;;  %v6057_v25 = vld [vmem:[%s8332_s5 + $0x28] sm:$0xff] }
 0x586   : > { %v7247_v16 = vpop.eup %7246 }
 0x587   : > { %v7249_v31 = vpop.eup %7248  ;;  %v2044_v35 = vadd.f32 1.0, %v7247_v16 }
 0x588   : > { %v2043_v4 = vadd.f32 1.0, %v7249_v31  ;;  %v6059_v31 = vld [vmem:[%s8332_s5 + $0x30] sm:$0xff] }
 0x589   : > { %7250 = vrcp.f32 %v2044_v35  ;;  %v6061_v35 = vld [vmem:[%s8332_s5 + $0x38] sm:$0xff] }
 0x58a   : > { %7252 = vrcp.f32 %v2043_v4 }
 0x593   : > { %v7251_v0 = vpop.eup %7250 }
 0x594   : > { %v7253_v30 = vpop.eup %7252  ;;  %2053 = vrot.lane.b32.xlu1 %v7251_v0, %s8351_s18 }
 0x595   : > { %2051 = vrot.lane.b32.xlu0 %v7253_v30, %s8351_s18 }
 0x606   : > { %v2054_v28 = vpop.permute.xlu1 %2053 }
 0x607   : > { %v2052_v37 = vpop.permute.xlu0 %2051  ;;  %v2058_v34 = vmax.f32 %v7251_v0, %v2054_v28 }
 0x608   : > { %v2057_v40 = vmax.f32 %v7253_v30, %v2052_v37 }
 0x60a   : > { %6511 = vmatprep.mubr.msk.f32.mxu0 %vm2059_vm14, %v2057_v40 }
 0x60b   : > { %6512 = vmatmul.mubr.msk.f32.vlgmr.msra.gmra.mrb[6].mxu0 %vm2059_vm14, %v2058_v34 }
 0x60c   : > { %6899 = vmatpush3.bf16.msk.msra.mxu0 %vm6895_vm13, %v6894_v17 }
 0x60d   : > { %6900 = vmatprep.subr.bf16.mxu0 %v7334_v3 }
 0x6de   : > { %v6513_v62 = vpop.f32.mrb[6].mxu0 }
 0x6df   : > { %v2136_v41 = vpop.f32.mrb[7].mxu0 }
 0x6e0   : > { %6518 = vmatprep.mubr.msk.f32.mxu0 %vm2145_vm15, %v2136_v41 }
 0x6e1   : > { %6519 = vmatmul.mubr.msk.f32.vlgmr.msra.gmra.mrb[8].mxu0 %vm2145_vm15, %v6513_v62 }
 0x6e2   : > { %6525 = vmatprep.mubr.msk.f32.mxu0 %vm7335_vm0, %v7336_v7 }
 0x7b4   : > { %v6520_v42 = vpop.f32.mrb[8].mxu0 }
 0x7b5   : > { %v2222_v32 = vpop.f32.mrb[9].mxu0 }
 0x7b6   : > { %v7150_v43 = vpack.i.bf16 %v6520_v42, %v2222_v32  ;;  %v6904_v38 = vpack.c.bf16 %v6520_v42, %v2222_v32 }
 0x7b8   : > { %7151 = vrot.lane.b32.xlu1 %v7150_v43, %s8370_s21  ;;  %7146 = vrot.lane.b32.xlu0 %v7150_v43, %s8351_s18 }
 0x7bc   : > { %7161 = vrot.lane.b32.xlu1 %v7150_v43, %s8349_s16  ;;  %7156 = vrot.lane.b32.xlu0 %v7150_v43, %s8355_s14 }
 0x7c0   : > { %7171 = vrot.lane.b32.xlu1 %v7150_v43, %s8353_s22  ;;  %7166 = vrot.lane.b32.xlu0 %v7150_v43, %s8371_s23 }
 0x7c4   : > { %2884 = vperm.xlu1 %7074, %v2881_v36   ;;  %7176 = vrot.lane.b32.xlu0 %v7150_v43, %s8372_s26 }
 0x82a   : > { %v7147_v20 = vpop.permute.xlu0 %7146  ;;  %v7152_v39 = vpop.permute.xlu1 %7151 }
 0x82b   : > { %v7149_v44 = vunpack.i.h.bf16 %v7147_v20  ;;  %v7148_v45 = vunpack.i.l.bf16 %v7147_v20  ;;  %v7154_v18 = vunpack.i.h.bf16 %v7152_v39  ;;  %v7153_v48 = vunpack.i.l.bf16 %v7152_v39 }
 0x82d   : > { %v6901_v46 = vpack.c.bf16 %v7149_v44, %v7148_v45  ;;  %v6907_v51 = vpack.c.bf16 %v7154_v18, %v7153_v48 }
 0x82e   : > { %v7157_v49 = vpop.permute.xlu0 %7156  ;;  %v7162_v21 = vpop.permute.xlu1 %7161 }
 0x82f   : > { %6902 = vmatpush3.bf16.msra.mxu0 %v6901_v46  ;;  %v7159_v52 = vunpack.i.h.bf16 %v7157_v49  ;;  %v7158_v53 = vunpack.i.l.bf16 %v7157_v49  ;;  %v7164_v55 = vunpack.i.h.bf16 %v7162_v21  ;;  %v7163_v56 = vunpack.i.l.bf16 %v7162_v21 }
 0x830   : > { %6903 = vmatprep.subr.bf16.mxu0 %v7334_v3  ;;  %v1036_v21 = vsel %vm1031_vm11, 1.0, %v7336_v7 }
 0x831   : > { %v6910_v57 = vpack.c.bf16 %v7159_v52, %v7158_v53  ;;  %v6913_v60 = vpack.c.bf16 %v7164_v55, %v7163_v56  ;;  %v2978_v55 = vmul.u32 2, %v7487_v9  ;;  %v2977_v56 = vmul.u32 2, %v7479_v5 }
 0x832   : > { %6526 = vmatmul.mubr.msk.f32.vlgmr.msra.gmra.mrb[10].mxu0 %vm2242_vm1, %v6048_v47  ;;  %v7167_v58 = vpop.permute.xlu0 %7166  ;;  %v7172_v2 = vpop.permute.xlu1 %7171 }
 0x833   : > { %6905 = vmatpush3.bf16.msra.mxu0 %v6904_v38  ;;  %6532 = vmatprep.mubr.msk.f32.mxu0 %vm7335_vm0, %v7336_v7  ;;  %v7169_v61 = vunpack.i.h.bf16 %v7167_v58  ;;  %v7168_v1 = vunpack.i.l.bf16 %v7167_v58  ;;  %v7174_v14 = vunpack.i.h.bf16 %v7172_v2  ;;  %v7173_v15 = vunpack.i.l.bf16 %v7172_v2 }
 0x834   : > { %6906 = vmatprep.subr.bf16.mxu0 %v7334_v3  ;;  %v2979_v58 = vadd.s32 9, %v2977_v56 }
 0x835   : > { %v6916_v23 = vpack.c.bf16 %v7169_v61, %v7168_v1  ;;  %v6919_v26 = vpack.c.bf16 %v7174_v14, %v7173_v15 }
 0x836   : > { %6533 = vmatmul.mubr.msk.f32.vlgmr.msra.gmra.mrb[12].mxu0 %vm2242_vm1, %v2231_v50  ;;  %v7177_v24 = vpop.permute.xlu0 %7176  ;;  %vm2981_vm2 = vcmp.eq.s32.totalorder %v7481_v6, %v2979_v58 }
 0x837   : > { %6908 = vmatpush3.bf16.msra.mxu0 %v6907_v51  ;;  %6539 = vmatprep.mubr.msk.f32.mxu0 %vm7335_vm0, %v7336_v7  ;;  %v7179_v29 = vunpack.i.h.bf16 %v7177_v24  ;;  %v7178_v16 = vunpack.i.l.bf16 %v7177_v24  ;;  %vm6929_vm4 = vmpackc.low %vm2066_vm7, %vm2981_vm2  ;;  %v3947_v24 = vld [vmem:[%s8335_s8 + $0x8] sm:$0xff] }
 0x838   : > { %6909 = vmatprep.subr.bf16.mxu0 %v7334_v3 }
 0x839   : > { %v6922_v33 = vpack.c.bf16 %v7179_v29, %v7178_v16  ;;  %v3062_v29 = vld [vmem:[%s8334_s7] sm:$0xff] }
 0x83a   : > { %6540 = vmatmul.mubr.msk.f32.vlgmr.msra.gmra.mrb[14].mxu0 %vm2242_vm1, %v6051_v22 }
 0x83b   : > { %6911 = vmatpush3.bf16.msra.mxu0 %v6910_v57  ;;  %6546 = vmatprep.mubr.msk.f32.mxu0 %vm7335_vm0, %v7336_v7  ;;  %v2980_v57 = vadd.s32 9, %v2978_v55 }
 0x83c   : > { %6912 = vmatprep.subr.bf16.mxu0 %v7334_v3 }
 0x83d   : > { %vm2982_vm11 = vcmp.eq.s32.totalorder %v7481_v6, %v2980_v57 }
 0x83e   : > { %6547 = vmatmul.mubr.msk.f32.vlgmr.msra.gmra.mrb[16].mxu0 %vm2242_vm1, %v6053_v59  ;;  %v2984_v12 = vsel %vm2982_vm11, 1.0, %v7336_v7 }
 0x83f   : > { %6914 = vmatpush3.bf16.msra.mxu0 %v6913_v60  ;;  %6553 = vmatprep.mubr.msk.f32.mxu0 %vm7335_vm0, %v7336_v7  ;;  %v6928_v60 = vpack.c.bf16 %v2984_v12, %v7347_v27 }
 0x840   : > { %6915 = vmatprep.subr.bf16.mxu0 %v7334_v3 }
 0x842   : > { %6554 = vmatmul.mubr.msk.f32.vlgmr.msra.gmra.mrb[18].mxu0 %vm2242_vm1, %v6055_v8  ;;  %v6070_v8 = vld [vmem:[%s8334_s7 + $0x10] sm:$0xff] }
 0x843   : > { %6917 = vmatpush3.bf16.msra.mxu0 %v6916_v23  ;;  %6560 = vmatprep.mubr.msk.f32.mxu0 %vm7335_vm0, %v7336_v7  ;;  %v2885_v48 = vpop.permute.xlu1 %2884  ;;  %v3946_v23 = vld [vmem:[%s8335_s8] sm:$0xff] }
 0x844   : > { %6918 = vmatprep.subr.bf16.mxu0 %v7334_v3 }
 0x846   : > { %6561 = vmatmul.mubr.msk.f32.vlgmr.msra.gmra.mrb[20].mxu0 %vm2242_vm1, %v6057_v25 }
 0x847   : > { %6920 = vmatpush3.bf16.msra.mxu0 %v6919_v26  ;;  %6567 = vmatprep.mubr.msk.f32.mxu0 %vm7335_vm0, %v7336_v7  ;;  %v6071_v26 = vld [vmem:[%s8334_s7 + $0x18] sm:$0xff] }
 0x848   : > { %6921 = vmatprep.subr.bf16.mxu0 %v7334_v3 }
 0x84a   : > { %6568 = vmatmul.mubr.msk.f32.vlgmr.msra.gmra.mrb[22].mxu0 %vm2242_vm1, %v6059_v31  ;;  %v3063_v31 = vld [vmem:[%s8334_s7 + $0x8] sm:$0xff] }
 0x84b   : > { %6923 = vmatpush3.bf16.msra.mxu0 %v6922_v33  ;;  %6574 = vmatprep.mubr.msk.f32.mxu0 %vm7335_vm0, %v7336_v7  ;;  %v6076_v33 = vld [vmem:[%s8334_s7 + $0x20] sm:$0xff] }
 0x84c   : > { %6924 = vmatprep.subr.bf16.mxu0 %v7334_v3 }
 0x84e   : > { %6575 = vmatmul.mubr.msk.f32.vlgmr.msra.gmra.mrb[24].mxu0 %vm2242_vm1, %v6061_v35 }
 0x84f   : > { %6926 = vmatpush3.bf16.msk.msra.mxu0 %vm7701_vm10, %v7338_v19  ;;  %6583 = vmatprep.mubr.msk.f32.mxu0 %vm7335_vm0, %v7336_v7  ;;  %vm2903_vm10 = vcmask 1042432  }
 0x850   : > { %6581 = vmatprep.subr.mxu0 %v7336_v7 }
 0x853   : > { %6582 = vmatpush3.msk.msra.mxu0 %vm2903_vm10, %v1036_v21 }
 0x854   : > { %6927 = vmatprep.subr.bf16.mxu0 %v7334_v3 }
 0x905   : > { %v2312_v4 = vpop.f32.mrb[10].mxu0 }
 0x906   : > { %v6527_v17 = vpop.f32.mrb[11].mxu0 }
 0x907   : > { %v6080_v17 = vld [vmem:[%s8334_s7 + $0x30] sm:$0xff] }
 0x909   : > { %v2385_v0 = vpop.f32.mrb[12].mxu0 }
 0x90a   : > { %v2386_v30 = vadd.f32 %v2385_v0, %v2312_v4  ;;  %v6534_v28 = vpop.f32.mrb[13].mxu0  ;;  %v6077_v4 = vld [vmem:[%s8334_s7 + $0x28] sm:$0xff] }
 0x90b   : > { %v6084_v28 = vld [vmem:[%s8334_s7 + $0x40] sm:$0xff] }
 0x90d   : > { %v2466_v37 = vpop.f32.mrb[14].mxu0 }
 0x90e   : > { %v2470_v40 = vadd.f32 %v2466_v37, %v2386_v30  ;;  %v6541_v34 = vpop.f32.mrb[15].mxu0  ;;  %v6081_v30 = vld [vmem:[%s8334_s7 + $0x38] sm:$0xff] }
 0x90f   : > { %v6088_v34 = vld [vmem:[%s8334_s7 + $0x50] sm:$0xff] }
 0x911   : > { %v2548_v62 = vpop.f32.mrb[16].mxu0 }
 0x912   : > { %v2552_v41 = vadd.f32 %v2548_v62, %v2470_v40  ;;  %v6548_v42 = vpop.f32.mrb[17].mxu0  ;;  %v6085_v40 = vld [vmem:[%s8334_s7 + $0x48] sm:$0xff] }
 0x913   : > { %v6092_v42 = vld [vmem:[%s8334_s7 + $0x60] sm:$0xff] }
 0x915   : > { %v2630_v32 = vpop.f32.mrb[18].mxu0 }
 0x916   : > { %v2634_v43 = vadd.f32 %v2630_v32, %v2552_v41  ;;  %v6555_v13 = vpop.f32.mrb[19].mxu0  ;;  %v6089_v41 = vld [vmem:[%s8334_s7 + $0x58] sm:$0xff] }
 0x917   : > { %v6096_v13 = vld [vmem:[%s8334_s7 + $0x70] sm:$0xff] }
 0x919   : > { %v2712_v38 = vpop.f32.mrb[20].mxu0 }
 0x91a   : > { %v2716_v36 = vadd.f32 %v2712_v38, %v2634_v43  ;;  %v6562_v20 = vpop.f32.mrb[21].mxu0  ;;  %v6093_v43 = vld [vmem:[%s8334_s7 + $0x68] sm:$0xff] }
 0x91b   : > { %v6100_v20 = vld [vmem:[%s8334_s7 + $0x80] sm:$0xff] }
 0x91d   : > { %v2794_v44 = vpop.f32.mrb[22].mxu0 }
 0x91e   : > { %v2798_v45 = vadd.f32 %v2794_v44, %v2716_v36  ;;  %v6569_v46 = vpop.f32.mrb[23].mxu0  ;;  %v6097_v36 = vld [vmem:[%s8334_s7 + $0x78] sm:$0xff] }
 0x91f   : > { %v6104_v46 = vld [vmem:[%s8334_s7 + $0x90] sm:$0xff] }
 0x921   : > { %v2876_v39 = vpop.f32.mrb[24].mxu0 }
 0x922   : > { %v2880_v47 = vadd.f32 %v2876_v39, %v2798_v45  ;;  %v6576_v18 = vpop.f32.mrb[25].mxu0  ;;  %v6101_v45 = vld [vmem:[%s8334_s7 + $0x88] sm:$0xff]  ;;  %v6105_v39 = vld [vmem:[%s8334_s7 + $0x98] sm:$0xff] }
 0x923   : > { %v3975_v18 = vadd.s32 10, %v2978_v55 }
 0x924   : > { %v2887_v49 = vadd.f32 %v2885_v48, %v2880_v47  ;;  %v3974_v47 = vadd.s32 10, %v2977_v56  ;;  %v3972_v48 = vmul.u32 2, %v7490_v10 }
 0x925   : > { %vm3979_vm9 = vcmp.eq.s32.totalorder %v7481_v6, %v3975_v18 }
 0x926   : > { %v2888_v50 = vsub.f32 0.0, %v2887_v49  ;;  %v3973_v49 = vmul.u32 2, %v7493_v11  ;;  %vm3978_vm7 = vcmp.eq.s32.totalorder %v7481_v6, %v3974_v47 }
 0x927   : > { %vm6931_vm12 = vmpackc.low %vm3979_vm9, %vm3978_vm7 }
 0x928   : > { %v2889_v51 = vmul.f32 1.442695, %v2888_v50  ;;  %v3976_v50 = vadd.s32 10, %v3972_v48  ;;  %6932 = vmatprep.subr.msk.bf16.mxu1 %vm6931_vm12, %v7338_v19  ;;  %v6119_v48 = vld [vmem:[%s8336_s9 + $0x18] sm:$0xff] }
 0x929   : > { %6934 = vmatpush3.bf16.msk.msra.mxu1 %vm6931_vm12, %v7338_v19 }
 0x92a   : > { %7254 = vpow2.f32 %v2889_v51  ;;  %v3977_v51 = vadd.s32 10, %v3973_v49  ;;  %vm3980_vm13 = vcmp.eq.s32.totalorder %v7481_v6, %v3976_v50  ;;  %v6127_v49 = vld [vmem:[%s8336_s9 + $0x38] sm:$0xff] }
 0x92b   : > { %vm6936_vm15 = vmpackc.low %vm1163_vm5, %vm3980_vm13  ;;  %vm3986_vm5 = vcmask 228352  }
 0x92c   : > { %vm3981_vm14 = vcmp.eq.s32.totalorder %v7481_v6, %v3977_v51 }
 0x934   : > { %v7255_v52 = vpop.eup %7254 }
 0x935   : > { %v2891_v53 = vadd.f32 1.0, %v7255_v52  ;;  %v3985_v52 = vsel %vm3981_vm14, 1.0, %v7336_v7 }
 0x937   : > { %7256 = vrcp.f32 %v2891_v53  ;;  %v6935_v53 = vpack.c.bf16 %v3985_v52, %v7347_v27 }
 0x939   : > { %6937 = vmatprep.subr.msk.bf16.mxu1 %vm6936_vm15, %v6935_v53 }
 0x93a   : > { %6940 = vmatpush3.bf16.msk.msra.mxu1 %vm6936_vm15, %v6935_v53 }
 0x93b   : > { %6941 = vmatprep.subr.bf16.mxu1 %v7334_v3 }
 0x941   : > { %v7257_v22 = vpop.eup %7256 }
 0x942   : > { %2895 = vrot.lane.b32.xlu0 %v7257_v22, %s8351_s18 }
 0x9b4   : > { %v2896_v59 = vpop.permute.xlu0 %2895 }
 0x9b5   : > { %v2898_v61 = vmax.f32 %v7257_v22, %v2896_v59 }
 0x9b7   : > { %6584 = vmatmul.mubr.msk.f32.vlgmr.msra.gmra.mrb[26].mxu0 %vm2899_vm3, %v2898_v61 }
 0x9b8   : > { %6930 = vmatpush3.bf16.msk.msra.mxu0 %vm6929_vm4, %v6928_v60  ;;  %6590 = vmatprep.mubr.msk.f32.mxu0 %vm7335_vm0, %v7336_v7 }
 0xa8a   : > { %v2973_v1 = vpop.f32.mrb[26].mxu0 }
 0xa8b   : > { %v6585_v2 = vpop.f32.mrb[27].mxu0  ;;  %6591 = vmatmul.mubr.msk.f32.vlgmr.msra.gmra.mrb[28].mxu0 %vm2985_vm6, %v2973_v1 }
 0xa8c   : > { %6595 = vmatprep.mubr.msk.f32.mxu0 %vm3071_vm8, %v6070_v8 }
 0xb5e   : > { %v3058_v14 = vpop.f32.mrb[28].mxu0 }
 0xb5f   : > { %3237 = vrot.lane.b32.xlu0 %v3058_v14, %s8370_s21  ;;  %3068 = vrot.lane.b32.xlu1 %v3058_v14, %s8351_s18  ;;  %v6592_v15 = vpop.f32.mrb[29].mxu0 }
 0xb63   : > { %3415 = vrot.lane.b32.xlu0 %v3058_v14, %s8373_s17  ;;  %3326 = vrot.lane.b32.xlu1 %v3058_v14, %s8355_s14  ;;  %s8375_s14 = smov 127  }
 0xb67   : > { %3593 = vrot.lane.b32.xlu0 %v3058_v14, %s8353_s22  ;;  %3504 = vrot.lane.b32.xlu1 %v3058_v14, %s8371_s23  ;;  %s8376_s22 = smov 125  }
 0xb6b   : > { %3771 = vrot.lane.b32.xlu0 %v3058_v14, %s8374_s25  ;;  %3682 = vrot.lane.b32.xlu1 %v3058_v14, %s8372_s26 }
 0xb6f   : > { %3950 = vperm.xlu0 %7073, %v3946_v23   ;;  %3860 = vrot.lane.b32.xlu1 %v3058_v14, %s7348_s0 }
 0xb73   : > { %3955 = vperm.xlu1 %7074, %v3947_v24  }
 0xbd1   : > { %v3069_v25 = vpop.permute.xlu1 %3068  ;;  %v3238_v16 = vpop.permute.xlu0 %3237 }
 0xbd2   : > { %6593 = vmatprep.subr.mxu0 %v3069_v25 }
 0xbd3   : > { %6594 = vmatpush3.msra.mxu0 %v3069_v25 }
 0xbd4   : > { %6596 = vmatmul.mubr.msk.f32.vlgmr.msra.gmra.mrb[30].mxu0 %vm3071_vm8, %v6071_v26  ;;  %6598 = vmatprep.subr.mxu0 %v3058_v14 }
 0xbd5   : > { %6599 = vmatpush3.msra.mxu0 %v3058_v14  ;;  %6600 = vmatprep.mubr.msk.f32.mxu0 %vm3071_vm8, %v3062_v29  ;;  %v3327_v35 = vpop.permute.xlu1 %3326  ;;  %v3416_v0 = vpop.permute.xlu0 %3415  ;;  %v4966_v29 = vld [vmem:[%s8337_s10] sm:$0xff] }
 0xbd6   : > { %6603 = vmatprep.subr.mxu0 %v3238_v16 }
 0xbd9   : > { %v3505_v37 = vpop.permute.xlu1 %3504  ;;  %v3594_v62 = vpop.permute.xlu0 %3593 }
 0xbdc   : > { %6601 = vmatmul.mubr.msk.f32.vlgmr.msra.gmra.mrb[30].mxu0 %vm3071_vm8, %v3063_v31 }
 0xbdd   : > { %6604 = vmatpush3.msra.mxu0 %v3238_v16  ;;  %6605 = vmatprep.mubr.msk.f32.mxu0 %vm3071_vm8, %v6076_v33  ;;  %v3683_v32 = vpop.permute.xlu1 %3682  ;;  %v3772_v38 = vpop.permute.xlu0 %3771 }
 0xbde   : > { %6608 = vmatprep.subr.mxu0 %v3327_v35 }
 0xbe1   : > { %v3861_v44 = vpop.permute.xlu1 %3860 }
 0xbe4   : > { %6606 = vmatmul.mubr.msk.f32.vlgmr.msra.gmra.mrb[30].mxu0 %vm3071_vm8, %v6077_v4 }
 0xbe5   : > { %6609 = vmatpush3.msra.mxu0 %v3327_v35  ;;  %6610 = vmatprep.mubr.msk.f32.mxu0 %vm3071_vm8, %v6080_v17 }
 0xbe6   : > { %6613 = vmatprep.subr.mxu0 %v3416_v0 }
 0xbec   : > { %6611 = vmatmul.mubr.msk.f32.vlgmr.msra.gmra.mrb[30].mxu0 %vm3071_vm8, %v6081_v30 }
 0xbed   : > { %6614 = vmatpush3.msra.mxu0 %v3416_v0  ;;  %6615 = vmatprep.mubr.msk.f32.mxu0 %vm3071_vm8, %v6084_v28  ;;  %v6114_v0 = vld [vmem:[%s8336_s9 + $0x8] sm:$0xff] }
 0xbee   : > { %6618 = vmatprep.subr.mxu0 %v3505_v37  ;;  %v3951_v55 = vpop.permute.xlu0 %3950 }
 0xbf2   : > { %v3956_v21 = vpop.permute.xlu1 %3955 }
 0xbf4   : > { %6616 = vmatmul.mubr.msk.f32.vlgmr.msra.gmra.mrb[30].mxu0 %vm3071_vm8, %v6085_v40  ;;  %v4071_v40 = vld [vmem:[%s8336_s9] sm:$0xff] }
 0xbf5   : > { %6619 = vmatpush3.msra.mxu0 %v3505_v37  ;;  %6620 = vmatprep.mubr.msk.f32.mxu0 %vm3071_vm8, %v6088_v34 }
 0xbf6   : > { %6623 = vmatprep.subr.mxu0 %v3594_v62 }
 0xbfc   : > { %6621 = vmatmul.mubr.msk.f32.vlgmr.msra.gmra.mrb[30].mxu0 %vm3071_vm8, %v6089_v41 }
 0xbfd   : > { %6624 = vmatpush3.msra.mxu0 %v3594_v62  ;;  %6625 = vmatprep.mubr.msk.f32.mxu0 %vm3071_vm8, %v6092_v42 }
 0xbfe   : > { %6628 = vmatprep.subr.mxu0 %v3683_v32 }
 0xc04   : > { %6626 = vmatmul.mubr.msk.f32.vlgmr.msra.gmra.mrb[30].mxu0 %vm3071_vm8, %v6093_v43 }
 0xc05   : > { %6629 = vmatpush3.msra.mxu0 %v3683_v32  ;;  %6630 = vmatprep.mubr.msk.f32.mxu0 %vm3071_vm8, %v6096_v13 }
 0xc06   : > { %6633 = vmatprep.subr.mxu0 %v3772_v38 }
 0xc0c   : > { %6631 = vmatmul.mubr.msk.f32.vlgmr.msra.gmra.mrb[30].mxu0 %vm3071_vm8, %v6097_v36 }
 0xc0d   : > { %6634 = vmatpush3.msra.mxu0 %v3772_v38  ;;  %6635 = vmatprep.mubr.msk.f32.mxu0 %vm3071_vm8, %v6100_v20  ;;  %v6117_v38 = vld [vmem:[%s8336_s9 + $0x10] sm:$0xff] }
 0xc0e   : > { %6638 = vmatprep.subr.mxu0 %v3861_v44 }
 0xc14   : > { %6636 = vmatmul.mubr.msk.f32.vlgmr.msra.gmra.mrb[30].mxu0 %vm3071_vm8, %v6101_v45 }
 0xc15   : > { %6639 = vmatpush3.msra.mxu0 %v3861_v44  ;;  %6640 = vmatprep.mubr.msk.f32.mxu0 %vm3071_vm8, %v6104_v46 }
 0xc16   : > { %6962 = vmatprep.subr.bf16.mxu0 %v7334_v3 }
 0xc1c   : > { %6641 = vmatmul.mubr.msk.f32.vlgmr.msra.gmra.mrb[30].mxu0 %vm3071_vm8, %v6105_v39 }
 0xc1d   : > { %6707 = vmatprep.mubr.msk.f32.mxu0 %vm7335_vm0, %v7336_v7 }
 0xcef   : > { %v6642_v22 = vpop.f32.mrb[30].mxu0 }
 0xcf0   : > { %v3959_v56 = vadd.f32 %v6642_v22, %v3956_v21  ;;  %v3935_v57 = vpop.f32.mrb[31].mxu0  ;;  %v6121_v21 = vld [vmem:[%s8336_s9 + $0x20] sm:$0xff]  ;;  %v6131_v22 = vld [vmem:[%s8336_s9 + $0x48] sm:$0xff] }
 0xcf1   : > { %v3958_v58 = vadd.f32 %v3951_v55, %v3935_v57 }
 0xcf2   : > { %v3961_v12 = vsub.f32 0.0, %v3959_v56 }
 0xcf3   : > { %v3960_v59 = vsub.f32 0.0, %v3958_v58 }
 0xcf4   : > { %v3964_v60 = vmul.f32 1.442695, %v3961_v12  ;;  %v6123_v12 = vld [vmem:[%s8336_s9 + $0x28] sm:$0xff] }
 0xcf5   : > { %v3962_v61 = vmul.f32 1.442695, %v3960_v59 }
 0xcf6   : > { %7258 = vpow2.f32 %v3964_v60 }
 0xcf7   : > { %7260 = vpow2.f32 %v3962_v61 }
 0xd00   : > { %v7259_v1 = vpop.eup %7258 }
 0xd01   : > { %v7261_v2 = vpop.eup %7260  ;;  %v3967_v8 = vadd.f32 1.0, %v7259_v1 }
 0xd02   : > { %v3966_v27 = vadd.f32 1.0, %v7261_v2  ;;  %v6125_v2 = vld [vmem:[%s8336_s9 + $0x30] sm:$0xff] }
 0xd04   : > { %7262 = vrcp.f32 %v3966_v27 }
 0xd05   : > { %7264 = vrcp.f32 %v3967_v8 }
 0xd0e   : > { %v7263_v14 = vpop.eup %7262 }
 0xd0f   : > { %v7265_v15 = vpop.eup %7264  ;;  %6651 = vmatprep.mubr.msk.f32.mxu1 %vm3986_vm5, %v7263_v14 }
 0xd10   : > { %6652 = vmatmul.mubr.msk.f32.vlgmr.msra.gmra.mrb[6].mxu1 %vm3986_vm5, %v7265_v15  ;;  %v6129_v15 = vld [vmem:[%s8336_s9 + $0x40] sm:$0xff]  ;;  %vm5014_vm5 = vcmask 1040384  }
 0xd11   : > { %6658 = vmatprep.mubr.msk.f32.mxu1 %vm7335_vm0, %v7336_v7 }
 0xde3   : > { %v6653_v23 = vpop.f32.mrb[6].mxu1 }
 0xde4   : > { %v4062_v24 = vpop.f32.mrb[7].mxu1 }
 0xde5   : > { %v7185_v25 = vpack.i.bf16 %v6653_v23, %v4062_v24  ;;  %v6945_v26 = vpack.c.bf16 %v6653_v23, %v4062_v24  ;;  %v6133_v24 = vld [vmem:[%s8336_s9 + $0x50] sm:$0xff] }
 0xde7   : > { %7186 = vrot.lane.b32.xlu1 %v7185_v25, %s8370_s21  ;;  %7181 = vrot.lane.b32.xlu0 %v7185_v25, %s8375_s14 }
 0xdeb   : > { %7196 = vrot.lane.b32.xlu1 %v7185_v25, %s8373_s17  ;;  %7191 = vrot.lane.b32.xlu0 %v7185_v25, %s8376_s22 }
 0xdef   : > { %7206 = vrot.lane.b32.xlu1 %v7185_v25, %s8377_s2  ;;  %7201 = vrot.lane.b32.xlu0 %v7185_v25, %s8371_s23 }
 0xdf3   : > { %7216 = vrot.lane.b32.xlu1 %v7185_v25, %s8374_s25  ;;  %7211 = vrot.lane.b32.xlu0 %v7185_v25, %s8372_s26 }
 0xdf7   : > { %7226 = vrot.lane.b32.xlu1 %v7185_v25, %s7349_s3  ;;  %7221 = vrot.lane.b32.xlu0 %v7185_v25, %s7348_s0  ;;  %v4983_v25 = vadd.s32 9, %v7479_v5 }
 0xdf9   : > { %vm4992_vm10 = vcmp.eq.s32.totalorder %v7481_v6, %v4983_v25 }
 0xdfb   : > { %4969 = vperm.xlu0 %7073, %v4966_v29   ;;  %v4987_v29 = vadd.s32 9, %v7737_v54  ;;  %v4981_v54 = vadd.s32 56, %v7479_v5 }
 0xe59   : > { %v7182_v16 = vpop.permute.xlu0 %7181  ;;  %v7187_v4 = vpop.permute.xlu1 %7186 }
 0xe5a   : > { %v7184_v31 = vunpack.i.h.bf16 %v7182_v16  ;;  %v7183_v33 = vunpack.i.l.bf16 %v7182_v16  ;;  %v7189_v30 = vunpack.i.h.bf16 %v7187_v4  ;;  %v7188_v28 = vunpack.i.l.bf16 %v7187_v4 }
 0xe5b   : > { %v4985_v16 = vadd.s32 9, %v7490_v10  ;;  %v4982_v4 = vadd.s32 64, %v7479_v5 }
 0xe5c   : > { %v6942_v35 = vpack.c.bf16 %v7184_v31, %v7183_v33  ;;  %v6948_v62 = vpack.c.bf16 %v7189_v30, %v7188_v28  ;;  %v4986_v31 = vadd.s32 9, %v7493_v11  ;;  %v4979_v33 = vadd.s32 40, %v7479_v5 }
 0xe5d   : > { %v7192_v17 = vpop.permute.xlu0 %7191  ;;  %v7197_v34 = vpop.permute.xlu1 %7196  ;;  %vm4994_vm3 = vcmp.eq.s32.totalorder %v7481_v6, %v4985_v16  ;;  %v4990_v11 = vadd.s32 9, %v4981_v54 }
 0xe5e   : > { %6943 = vmatpush3.bf16.msra.mxu1 %v6942_v35  ;;  %v7194_v41 = vunpack.i.h.bf16 %v7192_v17  ;;  %v7193_v42 = vunpack.i.l.bf16 %v7192_v17  ;;  %v7199_v36 = vunpack.i.h.bf16 %v7197_v34  ;;  %v7198_v20 = vunpack.i.l.bf16 %v7197_v34 }
 0xe5f   : > { %6944 = vmatprep.subr.bf16.mxu1 %v7334_v3  ;;  %vm4995_vm4 = vcmp.eq.s32.totalorder %v7481_v6, %v4986_v31  ;;  %v4988_v35 = vadd.s32 9, %v4979_v33  ;;  %vm4999_vm13 = vcmp.eq.s32.totalorder %v7481_v6, %v4990_v11  ;;  %v4991_v17 = vadd.s32 9, %v4982_v4  ;;  %v6156_v31 = vld [vmem:[%s8338_s11 + $0x6] sm:$0x1]  ;;  %v6154_v4 = vld [vmem:[%s8338_s11 + $0x5] sm:$0x1] }
 0xe60   : > { %v6951_v44 = vpack.c.bf16 %v7194_v41, %v7193_v42  ;;  %v6954_v50 = vpack.c.bf16 %v7199_v36, %v7198_v20  ;;  %vm6978_vm6 = vmpackc.low %vm4995_vm4, %vm4994_vm3  ;;  %v6158_v11 = vld [vmem:[%s8338_s11 + $0x7] sm:$0x1] }
 0xe61   : > { %v7202_v37 = vpop.permute.xlu0 %7201  ;;  %6659 = vmatmul.mubr.msk.f32.vlgmr.msra.gmra.mrb[8].mxu1 %vm2242_vm1, %v6114_v0  ;;  %v7207_v46 = vpop.permute.xlu1 %7206  ;;  %vm4997_vm7 = vcmp.eq.s32.totalorder %v7481_v6, %v4988_v35  ;;  %vm5000_vm15 = vcmp.eq.s32.totalorder %v7481_v6, %v4991_v17  ;;  %v6160_v35 = vld [vmem:[%s8338_s11 + $0x8] sm:$0x1] }
 0xe62   : > { %6946 = vmatpush3.bf16.msra.mxu1 %v6945_v26  ;;  %6665 = vmatprep.mubr.msk.f32.mxu1 %vm7335_vm0, %v7336_v7  ;;  %v7204_v51 = vunpack.i.h.bf16 %v7202_v37  ;;  %v7203_v52 = vunpack.i.l.bf16 %v7202_v37  ;;  %v7209_v56 = vunpack.i.h.bf16 %v7207_v46  ;;  %v7208_v57 = vunpack.i.l.bf16 %v7207_v46 }
 0xe63   : > { %6947 = vmatprep.subr.bf16.mxu1 %v7334_v3  ;;  %v4984_v26 = vadd.s32 9, %v7487_v9  ;;  %v4980_v9 = vadd.s32 48, %v7479_v5  ;;  %v5009_v0 = vsel %vm5000_vm15, 1.0, %v7336_v7 }
 0xe64   : > { %v6957_v58 = vpack.c.bf16 %v7204_v51, %v7203_v52  ;;  %v6960_v59 = vpack.c.bf16 %v7209_v56, %v7208_v57 }
 0xe65   : > { %v7212_v32 = vpop.permute.xlu0 %7211  ;;  %6666 = vmatmul.mubr.msk.f32.vlgmr.msra.gmra.mrb[10].mxu1 %vm2242_vm1, %v4071_v40  ;;  %v7217_v55 = vpop.permute.xlu1 %7216  ;;  %vm4993_vm11 = vcmp.eq.s32.totalorder %v7481_v6, %v4984_v26  ;;  %v4989_v10 = vadd.s32 9, %v4980_v9  ;;  %v6152_v26 = vld [vmem:[%s8338_s11 + $0x4] sm:$0x1]  ;;  %v6150_v9 = vld [vmem:[%s8338_s11 + $0x3] sm:$0x1] }
 0xe66   : > { %v7214_v43 = vunpack.i.h.bf16 %v7212_v32  ;;  %v7213_v13 = vunpack.i.l.bf16 %v7212_v32  ;;  %6949 = vmatpush3.bf16.msra.mxu1 %v6948_v62  ;;  %6672 = vmatprep.mubr.msk.f32.mxu1 %vm7335_vm0, %v7336_v7  ;;  %v7219_v60 = vunpack.i.h.bf16 %v7217_v55  ;;  %v7218_v61 = vunpack.i.l.bf16 %v7217_v55  ;;  %vm6975_vm2 = vmpackc.low %vm4993_vm11, %vm4992_vm10 }
 0xe67   : > { %6950 = vmatprep.subr.bf16.mxu1 %v7334_v3  ;;  %vm4998_vm12 = vcmp.eq.s32.totalorder %v7481_v6, %v4989_v10  ;;  %vm5010_vm10 = vcmask 531456  }
 0xe68   : > { %v6963_v45 = vpack.c.bf16 %v7214_v43, %v7213_v13  ;;  %v6966_v8 = vpack.c.bf16 %v7219_v60, %v7218_v61  ;;  %vm6984_vm14 = vmpackc.low %vm4999_vm13, %vm4998_vm12 }
 0xe69   : > { %v7222_v39 = vpop.permute.xlu0 %7221  ;;  %6673 = vmatmul.mubr.msk.f32.vlgmr.msra.gmra.mrb[12].mxu1 %vm2242_vm1, %v6117_v38  ;;  %v7227_v1 = vpop.permute.xlu1 %7226 }
 0xe6a   : > { %v7224_v47 = vunpack.i.h.bf16 %v7222_v39  ;;  %v7223_v18 = vunpack.i.l.bf16 %v7222_v39  ;;  %6952 = vmatpush3.bf16.msra.mxu1 %v6951_v44  ;;  %6964 = vmatpush3.bf16.msra.mxu0 %v6963_v45  ;;  %v7229_v27 = vunpack.i.h.bf16 %v7227_v1  ;;  %v7228_v14 = vunpack.i.l.bf16 %v7227_v1 }
 0xe6b   : > { %6679 = vmatprep.mubr.msk.f32.mxu1 %vm7335_vm0, %v7336_v7  ;;  %6953 = vmatprep.subr.bf16.mxu1 %v7334_v3 }
 0xe6c   : > { %v6969_v53 = vpack.c.bf16 %v7224_v47, %v7223_v18  ;;  %6968 = vmatprep.subr.bf16.mxu0 %v7334_v3  ;;  %v6972_v23 = vpack.c.bf16 %v7229_v27, %v7228_v14  ;;  %v6145_v27 = vld [vmem:[%s8338_s11 + $0x1] sm:$0x1] }
 0xe6d   : > { %6680 = vmatmul.mubr.msk.f32.vlgmr.msra.gmra.mrb[14].mxu1 %vm2242_vm1, %v6119_v48  ;;  %6708 = vmatmul.mubr.msk.f32.vlgmr.msra.gmra.mrb[32].mxu0 %vm2242_vm1, %v6127_v49 }
 0xe6e   : > { %6955 = vmatpush3.bf16.msra.mxu1 %v6954_v50  ;;  %6970 = vmatpush3.bf16.msra.mxu0 %v6969_v53 }
 0xe6f   : > { %6686 = vmatprep.mubr.msk.f32.mxu1 %vm7335_vm0, %v7336_v7  ;;  %6956 = vmatprep.subr.bf16.mxu1 %v7334_v3 }
 0xe70   : > { %6721 = vmatprep.mubr.msk.f32.mxu0 %vm7335_vm0, %v7336_v7  ;;  %6974 = vmatprep.subr.bf16.mxu0 %v7334_v3 }
 0xe71   : > { %6687 = vmatmul.mubr.msk.f32.vlgmr.msra.gmra.mrb[16].mxu1 %vm2242_vm1, %v6121_v21  ;;  %6722 = vmatmul.mubr.msk.f32.vlgmr.msra.gmra.mrb[34].mxu0 %vm2242_vm1, %v6131_v22 }
 0xe72   : > { %6958 = vmatpush3.bf16.msra.mxu1 %v6957_v58  ;;  %6693 = vmatprep.mubr.msk.f32.mxu1 %vm7335_vm0, %v7336_v7 }
 0xe73   : > { %6959 = vmatprep.subr.bf16.mxu1 %v7334_v3  ;;  %6749 = vmatprep.mubr.msk.f32.mxu0 %vm7335_vm0, %v7336_v7 }
 0xe74   : > { %6976 = vmatpush3.bf16.msk.msra.mxu0 %vm6975_vm2, %v7338_v19 }
 0xe75   : > { %6694 = vmatmul.mubr.msk.f32.vlgmr.msra.gmra.mrb[18].mxu1 %vm2242_vm1, %v6123_v12  ;;  %6977 = vmatprep.subr.bf16.mxu0 %v7334_v3 }
 0xe76   : > { %6961 = vmatpush3.bf16.msra.mxu1 %v6960_v59  ;;  %6700 = vmatprep.mubr.msk.f32.mxu1 %vm7335_vm0, %v7336_v7 }
 0xe77   : > { %6965 = vmatprep.subr.bf16.mxu1 %v7334_v3 }
 0xe78   : > { %6979 = vmatpush3.bf16.msk.msra.mxu0 %vm6978_vm6, %v7338_v19 }
 0xe79   : > { %6701 = vmatmul.mubr.msk.f32.vlgmr.msra.gmra.mrb[20].mxu1 %vm2242_vm1, %v6125_v2  ;;  %6980 = vmatprep.subr.bf16.mxu0 %v7334_v3 }
 0xe7a   : > { %6967 = vmatpush3.bf16.msra.mxu1 %v6966_v8  ;;  %6714 = vmatprep.mubr.msk.f32.mxu1 %vm7335_vm0, %v7336_v7  ;;  %v4970_v56 = vpop.permute.xlu0 %4969  ;;  %v5873_v8 = vld [vmem:[#allocation2] sm:$0x1] }
 0xe7b   : > { %6971 = vmatprep.subr.bf16.mxu1 %v7334_v3 }
 0xe7d   : > { %6715 = vmatmul.mubr.msk.f32.vlgmr.msra.gmra.mrb[22].mxu1 %vm2242_vm1, %v6129_v15 }
 0xe7e   : > { %6973 = vmatpush3.bf16.msra.mxu1 %v6972_v23  ;;  %6728 = vmatprep.mubr.msk.f32.mxu1 %vm7335_vm0, %v7336_v7  ;;  %v5088_v23 = vld [vmem:[%s8338_s11] sm:$0x1] }
 0xe7f   : > { %6752 = vmatprep.subr.mxu1 %v7336_v7 }
 0xe81   : > { %6729 = vmatmul.mubr.msk.f32.vlgmr.msra.gmra.mrb[24].mxu1 %vm2242_vm1, %v6133_v24  ;;  %vm4996_vm1 = vcmp.eq.s32.totalorder %v7481_v6, %v4987_v29  ;;  %v6148_v29 = vld [vmem:[%s8338_s11 + $0x2] sm:$0x1] }
 0xe82   : > { %6754 = vmatprep.mubr.msk.f32.mxu1 %vm7335_vm0, %v7336_v7  ;;  %vm6981_vm9 = vmpackc.low %vm4997_vm7, %vm4996_vm1 }
 0xe83   : > { %6982 = vmatpush3.bf16.msk.msra.mxu0 %vm6981_vm9, %v7338_v19 }
 0xe84   : > { %6983 = vmatprep.subr.bf16.mxu0 %v7334_v3 }
 0xe87   : > { %6985 = vmatpush3.bf16.msk.msra.mxu0 %vm6984_vm14, %v7338_v19 }
 0xe88   : > { %6747 = vmatprep.subr.mxu0 %v7336_v7 }
 0xe8b   : > { %6748 = vmatpush3.msk.msra.mxu0 %vm5014_vm5, %v5009_v0  ;;  %v6162_v0 = vld [vmem:[%s8338_s11 + $0x9] sm:$0x1] }
 0xe8c   : > { %6772 = vmatprep.subr.mxu0 %v7336_v7 }
 0xf34   : > { %v4151_v30 = vpop.f32.mrb[8].mxu1 }
 0xf35   : > { %v6660_v28 = vpop.f32.mrb[9].mxu1 }
 0xf38   : > { %v4224_v37 = vpop.f32.mrb[10].mxu1 }
 0xf39   : > { %v4225_v40 = vadd.f32 %v4224_v37, %v4151_v30  ;;  %v6667_v34 = vpop.f32.mrb[11].mxu1 }
 0xf3c   : > { %v4305_v62 = vpop.f32.mrb[12].mxu1 }
 0xf3d   : > { %v4309_v3 = vadd.f32 %v4305_v62, %v4225_v40  ;;  %v6674_v41 = vpop.f32.mrb[13].mxu1 }
 0xf40   : > { %v4387_v42 = vpop.f32.mrb[14].mxu1  ;;  %v4715_v6 = vpop.f32.mrb[32].mxu0 }
 0xf41   : > { %v4391_v32 = vadd.f32 %v4387_v42, %v4309_v3  ;;  %v6681_v19 = vpop.f32.mrb[15].mxu1  ;;  %v6709_v43 = vpop.f32.mrb[33].mxu0 }
 0xf44   : > { %v4469_v13 = vpop.f32.mrb[16].mxu1  ;;  %v4879_v38 = vpop.f32.mrb[34].mxu0 }
 0xf45   : > { %v4473_v36 = vadd.f32 %v4469_v13, %v4391_v32  ;;  %v6688_v20 = vpop.f32.mrb[17].mxu1  ;;  %v6723_v44 = vpop.f32.mrb[35].mxu0 }
 0xf48   : > { %v4551_v45 = vpop.f32.mrb[18].mxu1 }
 0xf49   : > { %v4555_v46 = vadd.f32 %v4551_v45, %v4473_v36  ;;  %v6695_v39 = vpop.f32.mrb[19].mxu1 }
 0xf4c   : > { %v4633_v47 = vpop.f32.mrb[20].mxu1 }
 0xf4d   : > { %v4637_v18 = vadd.f32 %v4633_v47, %v4555_v46  ;;  %v6702_v48 = vpop.f32.mrb[21].mxu1 }
 0xf4f   : > { %v4719_v49 = vadd.f32 %v4715_v6, %v4637_v18 }
 0xf50   : > { %v4797_v50 = vpop.f32.mrb[22].mxu1 }
 0xf51   : > { %v4801_v51 = vadd.f32 %v4797_v50, %v4719_v49  ;;  %v6716_v52 = vpop.f32.mrb[23].mxu1 }
 0xf53   : > { %v4883_v53 = vadd.f32 %v4879_v38, %v4801_v51 }
 0xf54   : > { %v4961_v21 = vpop.f32.mrb[24].mxu1 }
 0xf55   : > { %v4965_v22 = vadd.f32 %v4961_v21, %v4883_v53  ;;  %v6730_v55 = vpop.f32.mrb[25].mxu1 }
 0xf57   : > { %v4972_v57 = vadd.f32 %v4970_v56, %v4965_v22 }
 0xf59   : > { %v4973_v58 = vsub.f32 0.0, %v4972_v57 }
 0xf5b   : > { %v4974_v12 = vmul.f32 1.442695, %v4973_v58 }
 0xf5d   : > { %7266 = vpow2.f32 %v4974_v12 }
 0xf67   : > { %v7267_v59 = vpop.eup %7266 }
 0xf68   : > { %v4976_v60 = vadd.f32 1.0, %v7267_v59 }
 0xf6a   : > { %7268 = vrcp.f32 %v4976_v60 }
 0xf74   : > { %v7269_v61 = vpop.eup %7268 }
 0xf75   : > { %6750 = vmatmul.mubr.msk.f32.vlgmr.msra.gmra.mrb[36].mxu0 %vm5010_vm10, %v7269_v61 }
 0xf76   : > { %6774 = vmatprep.mubr.msk.f32.mxu0 %vm7335_vm0, %v7336_v7 }
0x1048   : > { %v5084_v1 = vpop.f32.mrb[36].mxu0 }
0x1049   : > { %5243 = vrot.lane.b32.xlu0 %v5084_v1, %s8370_s21  ;;  %5092 = vrot.lane.b32.xlu1 %v5084_v1, %s8375_s14  ;;  %v6751_v2 = vpop.f32.mrb[37].mxu0  ;;  %s6164_s14 = sshll.u32 %s7445_s12, 4  ;;  %s7350_s21 = smov [#allocation3]  }
0x104a   : > { %s8285_s1 = scalar_lea.hbm %s8340_s13, %s6164_s14  ;;  %s7274_s3 = sshll.u32 %s7350_s21, 4  ;;  %s7275_s3 = int_to_ptr.vmem [resolvable:$false] %s7274_s3 }
0x104d   : > { %5401 = vrot.lane.b32.xlu0 %v5084_v1, %s8373_s17  ;;  %5322 = vrot.lane.b32.xlu1 %v5084_v1, %s8376_s22 }
0x1051   : > { %5559 = vrot.lane.b32.xlu0 %v5084_v1, %s8377_s2  ;;  %5480 = vrot.lane.b32.xlu1 %v5084_v1, %s8371_s23  ;;  %s7276_s23 = scalar_lea.vmem %s7275_s3, 32 }
0x1055   : > { %5717 = vrot.lane.b32.xlu0 %v5084_v1, %s8374_s25  ;;  %5638 = vrot.lane.b32.xlu1 %v5084_v1, %s8372_s26  ;;  %s429_s25 = sand.u32 1, %s7324_s28  }
0x1056   : > { %s430_s22 = scalar_lea.vmem [#allocation3], %s429_s25  ;;  %s5887_s12 = scalar_lea.sflag [#allocation4], %s429_s25 }
0x1057   : > { %s5899_s2 = sshll.u32 %s430_s22, 4  ;;  %s8287_s2 = int_to_ptr.vmem [resolvable:$true] %s5899_s2 }
0x1058   : > { %s7270_s18 = scalar_lea.vmem %s8287_s2, 16  ;;  %p7277_p0 = scmp.lt.s32.totalorder %s8287_s2, %s7275_s3 }
0x1059   : > { %5876 = vperm.xlu0 %7073, %v5873_v8   ;;  %5796 = vrot.lane.b32.xlu1 %v5084_v1, %s7348_s0  ;;  %p7271_p11 = scmp.ne.s32.totalorder %s8287_s2, %s7270_s18  ;;  %p7278_p1 = scmp.lt.s32.totalorder %s7276_s23, %s7270_s18 }
0x105b   : > { %p7272_p12 = pnand %p7271_p11, %p7462_p5  ;;  %p7279_p2 = por %p7278_p1, %p7277_p0 }
0x105d   : > { %p7273_p13 = pneg %p7272_p12 }
0x105f   : > { %p7280_p3 = pnand %p7279_p2, %p7273_p13 }
0x10bb   : > { %v5244_v14 = vpop.permute.xlu0 %5243  ;;  %v5093_v15 = vpop.permute.xlu1 %5092 }
0x10bc   : > { %6753 = vmatpush3.msra.mxu1 %v5093_v15 }
0x10bd   : > { %6755 = vmatmul.mubr.msk.f32.vlgmr.msra.gmra.mrb[26].mxu1 %vm3071_vm8, %v6145_v27  ;;  %6757 = vmatprep.subr.mxu1 %v7336_v7 }
0x10be   : > { %6758 = vmatpush3.msra.mxu1 %v5084_v1  ;;  %6759 = vmatprep.mubr.msk.f32.mxu1 %vm7335_vm0, %v7336_v7 }
0x10bf   : > { %v5402_v24 = vpop.permute.xlu0 %5401  ;;  %v5323_v25 = vpop.permute.xlu1 %5322  ;;  %6762 = vmatprep.subr.mxu1 %v7336_v7 }
0x10c0   : > { %6773 = vmatpush3.msra.mxu0 %v5402_v24 }
0x10c1   : > { %6760 = vmatmul.mubr.msk.f32.vlgmr.msra.gmra.mrb[28].mxu1 %vm3071_vm8, %v5088_v23  ;;  %6782 = vmatprep.subr.mxu0 %v7336_v7 }
0x10c2   : > { %6763 = vmatpush3.msra.mxu1 %v5244_v14  ;;  %6764 = vmatprep.mubr.msk.f32.mxu1 %vm7335_vm0, %v7336_v7 }
0x10c3   : > { %v5560_v16 = vpop.permute.xlu0 %5559  ;;  %6767 = vmatprep.subr.mxu1 %v7336_v7  ;;  %6775 = vmatmul.mubr.msk.f32.vlgmr.msra.gmra.mrb[38].mxu0 %vm3071_vm8, %v6152_v26  ;;  %v5481_v33 = vpop.permute.xlu1 %5480 }
0x10c4   : > { %6783 = vmatpush3.msra.mxu0 %v5560_v16  ;;  %6784 = vmatprep.mubr.msk.f32.mxu0 %vm7335_vm0, %v7336_v7 }
0x10c5   : > { %6765 = vmatmul.mubr.msk.f32.vlgmr.msra.gmra.mrb[30].mxu1 %vm3071_vm8, %v6148_v29  ;;  %6792 = vmatprep.subr.mxu0 %v7336_v7 }
0x10c6   : > { %6768 = vmatpush3.msra.mxu1 %v5323_v25  ;;  %6769 = vmatprep.mubr.msk.f32.mxu1 %vm7335_vm0, %v7336_v7 }
0x10c7   : > { %v5718_v54 = vpop.permute.xlu0 %5717  ;;  %6777 = vmatprep.subr.mxu1 %v7336_v7  ;;  %6785 = vmatmul.mubr.msk.f32.vlgmr.msra.gmra.mrb[40].mxu0 %vm3071_vm8, %v6156_v31  ;;  %v5639_v10 = vpop.permute.xlu1 %5638 }
0x10c8   : > { %6793 = vmatpush3.msra.mxu0 %v5718_v54  ;;  %6794 = vmatprep.mubr.msk.f32.mxu0 %vm7335_vm0, %v7336_v7 }
0x10c9   : > { %6770 = vmatmul.mubr.msk.f32.vlgmr.msra.gmra.mrb[32].mxu1 %vm3071_vm8, %v6150_v9 }
0x10ca   : > { %6778 = vmatpush3.msra.mxu1 %v5481_v33  ;;  %6779 = vmatprep.mubr.msk.f32.mxu1 %vm7335_vm0, %v7336_v7 }
0x10cb   : > { %6787 = vmatprep.subr.mxu1 %v7336_v7  ;;  %6795 = vmatmul.mubr.msk.f32.vlgmr.msra.gmra.mrb[42].mxu0 %vm3071_vm8, %v6160_v35  ;;  %v5797_v17 = vpop.permute.xlu1 %5796 }
0x10cd   : > { %6780 = vmatmul.mubr.msk.f32.vlgmr.msra.gmra.mrb[34].mxu1 %vm3071_vm8, %v6154_v4 }
0x10ce   : > { %6788 = vmatpush3.msra.mxu1 %v5639_v10  ;;  %6789 = vmatprep.mubr.msk.f32.mxu1 %vm7335_vm0, %v7336_v7 }
0x10cf   : > { %6797 = vmatprep.subr.mxu1 %v7336_v7 }
0x10d1   : > { %6790 = vmatmul.mubr.msk.f32.vlgmr.msra.gmra.mrb[36].mxu1 %vm3071_vm8, %v6158_v11 }
0x10d2   : > { %6798 = vmatpush3.msra.mxu1 %v5797_v17  ;;  %6799 = vmatprep.mubr.msk.f32.mxu1 %vm7335_vm0, %v7336_v7  ;;  %vm5884_vm0 = vcmask 598016  }
0x10d5   : > { %6800 = vmatmul.mubr.msk.f32.vlgmr.msra.gmra.mrb[38].mxu1 %vm3071_vm8, %v6162_v0 }
0x10d8   : > { %v5877_v49 = vpop.permute.xlu0 %5876 }
0x10d9   : > { %v5882_v52 = vrot.slane %v5877_v49, %v553_v63 }
0x1190   : > { %v5164_v30 = vpop.f32.mrb[26].mxu1 }
0x1191   : > { %v6756_v28 = vpop.f32.mrb[27].mxu1 }
0x1194   : > { %v5237_v37 = vpop.f32.mrb[28].mxu1 }
0x1195   : > { %v5238_v40 = vadd.f32 %v5237_v37, %v5164_v30  ;;  %v6761_v34 = vpop.f32.mrb[29].mxu1 }
0x1196   : > { %v5473_v62 = vpop.f32.mrb[38].mxu0 }
0x1197   : > { %v6776_v3 = vpop.f32.mrb[39].mxu0 }
0x1198   : > { %v5315_v41 = vpop.f32.mrb[30].mxu1 }
0x1199   : > { %v5319_v42 = vadd.f32 %v5315_v41, %v5238_v40  ;;  %v6766_v6 = vpop.f32.mrb[31].mxu1 }
0x119a   : > { %v5631_v32 = vpop.f32.mrb[40].mxu0 }
0x119b   : > { %v6786_v19 = vpop.f32.mrb[41].mxu0 }
0x119c   : > { %v5394_v7 = vpop.f32.mrb[32].mxu1 }
0x119d   : > { %v5398_v43 = vadd.f32 %v5394_v7, %v5319_v42  ;;  %v6771_v13 = vpop.f32.mrb[33].mxu1 }
0x119e   : > { %v5789_v38 = vpop.f32.mrb[42].mxu0 }
0x119f   : > { %v5477_v36 = vadd.f32 %v5473_v62, %v5398_v43  ;;  %v6796_v20 = vpop.f32.mrb[43].mxu0 }
0x11a0   : > { %v5552_v44 = vpop.f32.mrb[34].mxu1 }
0x11a1   : > { %v5556_v45 = vadd.f32 %v5552_v44, %v5477_v36  ;;  %v6781_v46 = vpop.f32.mrb[35].mxu1 }
0x11a3   : > { %v5635_v39 = vadd.f32 %v5631_v32, %v5556_v45 }
0x11a4   : > { %v5710_v47 = vpop.f32.mrb[36].mxu1 }
0x11a5   : > { %v5714_v18 = vadd.f32 %v5710_v47, %v5635_v39  ;;  %v6791_v48 = vpop.f32.mrb[37].mxu1 }
0x11a7   : > { %v5793_v50 = vadd.f32 %v5789_v38, %v5714_v18 }
0x11a8   : > { %v5868_v51 = vpop.f32.mrb[38].mxu1 }
0x11a9   : > { %v5872_v53 = vadd.f32 %v5868_v51, %v5793_v50  ;;  %v6801_v21 = vpop.f32.mrb[39].mxu1 }
0x11ab   : > { %v5883_v22 = vadd.f32 %v5882_v52, %v5872_v53 }
0x11ad   : > { %5885 = vst.msk [vmem:[%s430_s22] sm:$0x1] %vm5884_vm0, %v5883_v22 }
0x11ae   : > { %7283 = shalt.err (!%p7280_p3)
}
0x11af   : > { %s7284_s26 = scalar_lea.hbm %s8285_s1, 16  ;;  %s7288_s25 = scalar_lea.hbm %s8340_s13, 32 }
0x11b0   : > { %p7285_p4 = scmp.ne.s32.totalorder %s8285_s1, %s7284_s26  ;;  %p7289_p9 = scmp.lt.u32.totalorder %s8285_s1, %s8340_s13 }
0x11b1   : > { %p7290_p10 = scmp.lt.u32.totalorder %s7288_s25, %s7284_s26  ;;  %p7292_p12 = scmp.lt.u32.totalorder %s7284_s26, %s8285_s1 }
0x11b2   : > { %p7286_p7 = pnand %p7285_p4, %p7462_p5 }
0x11b3   : > { %p7291_p11 = por %p7290_p10, %p7289_p9 }
0x11b4   : > { %p7287_p8 = pneg %p7286_p7 }
0x11b5   : > { %p7293_p13 = por %p7292_p12, %p7291_p11 }
0x11b7   : > { %p7294_p0 = pnand %p7293_p13, %p7287_p8 }
0x11b9   : > { %7297 = shalt.err (!%p7294_p0)
}
0x11ba   : > { %7018 = dma.vmem_to_hbm [thread:$0]  (%p7462_p5), %s8287_s2, 16, %s8285_s1, %s5887_s12  }
0x11bb PF: > { %p7024_p1 = scmp.ge.s32.totalorder %s7332_s30, 2  ;;  %s5911_s16 = sand.u32 1, %s7320_s27  }
0x11bc   : > { %s5912_s24 = scalar_lea.sflag [#allocation4], %s5911_s16 }
0x11bd   : > { %p7021_p2 = pnand %p7024_p1, %p7466_p6 }
0x11bf   : > { %7315 = dma.done.wait (!%p7021_p2), %s5912_s24, 16  }
0x11c0   : > { %7317 = vsyncadd (!%p7021_p2), %s5912_s24, 4294967280  ;;  %s8378_s18 = sld [smem:[#allocation6_spill]]  ;;  %p25_p3 = scmp.ge.s32.totalorder %s7449_s15, 4  }
0x11c1   : > { %s8379_s27 = smov %s7324_s28  ;;  %s8380_s28 = smov %s7328_s29 }
0x11c2   : > { %s8382_s30 = smov %s7449_s15  ;;  %27 = sbr.rel (!%p25_p3) target bundleno = 8 (0x8), region = 157 }
0x11c6   : > { %s8381_s29 = smov %s8378_s18 }
0x11c9   :  { %5916 = vsyncpa [#allocation4], 1 }
0x11ca   :  { %5918 = vsyncpa [#allocation4 + $0x1], 1 }

</bundles_post_ra>
